<compile_context>
chip_gen: v6e
topology: v6e:2x2x1
jax: 0.10.0
libtpu: 0.0.40
codegen_flags: <defaults>
</compile_context>

<pallas_src>
import functools

import numpy as np
import jax
import jax.numpy as jnp
from jax.experimental import pallas as pl
from jax.experimental.pallas import tpu as pltpu


def _ode_block_kernel(n_nodes, n_steps, delta_t,
                      s0_ref, i0_ref, r0_ref,
                      wS1_ref, bS1_ref, wode_ref,
                      w3_ref, b3_ref, wS2_ref, bS2_ref,
                      out_ref):
    n = n_nodes
    dt = jnp.float32(delta_t)

    # Hoist all parameters into values once -- no per-step ref reloads.
    wS1 = wS1_ref[...]          # (1, H)   linearS1.weight^T
    bS1 = bS1_ref[...]          # (1, H)   linearS1.bias
    wode = wode_ref[...]        # (H, H)   synthetic odefunc weight
    w3 = w3_ref[...]            # (H, 4)   linear3.weight^T
    b3 = b3_ref[...]            # (1, 4)   linear3.bias
    wS2 = wS2_ref[...]          # (1, 4)   linearS2.weight (row layout, lane-broadcastable)
    bS2 = bS2_ref[0, 0]         # scalar   linearS2.bias (SMEM)

    # linearS1 (Linear(1, H)) applied to BOTH S0 and I0 (as in the PyTorch code), then ReLU.
    S = jnp.maximum(s0_ref[...] * wS1 + bS1, 0.0)      # (n, H)
    I = jnp.maximum(i0_ref[...] * wS1 + bS1, 0.0)      # (n, H)
    # ODE state, carried as a plain value across the unrolled time loop (built once).
    y = jnp.concatenate([S, I, r0_ref[...]], axis=0)   # (3n, H)

    def f(y_):
        # TODO(synk): odefunc is an external module passed to __init__; a deterministic
        # synthetic autonomous tanh-linear vector field stands in for it.
        return jnp.tanh(jnp.dot(y_, wode, preferred_element_type=jnp.float32))

    for t in range(n_steps):
        # ---- readout head at this integration time (fused over all 3n rows) ----
        h = jnp.maximum(jnp.dot(y, w3, preferred_element_type=jnp.float32) + b3, 0.0)  # (3n, 4)
        # linearS2 (K=4, N=1): VPU multiply + tiny lane reduce instead of a degenerate MXU op.
        s2 = jnp.sum(h * wS2, axis=-1, keepdims=True) + bS2                            # (3n, 1)

        sS = s2[:n]
        sI = s2[n:2 * n]
        sR = s2[2 * n:]
        # softmax over the S/I/R axis (PyTorch Softmax(dim=2))
        m = jnp.maximum(jnp.maximum(sS, sI), sR)
        eS = jnp.exp(sS - m)
        eI = jnp.exp(sI - m)
        eR = jnp.exp(sR - m)
        inv = 1.0 / (eS + eI + eR)
        out_ref[t, :, :] = jnp.concatenate([eS * inv, eI * inv, eR * inv], axis=-1)

        # ---- RK4 step to the next time (torchdiffeq 'rk4' = 3/8 rule) ----
        if t + 1 < n_steps:   # the final step's updated y is never read -> skip it
            k1 = f(y)
            k2 = f(y + dt * k1 / 3.0)
            k3 = f(y + dt * (k2 - k1 / 3.0))
            k4 = f(y + dt * (k1 - k2 + k3))
            y = y + dt * (k1 + 3.0 * k2 + 3.0 * k3 + k4) / 8.0


def ode_block_forward(S0, I0, R0, params, *, max_time, delta_t, n_nodes, hidden1):
    """S0, I0: (B, n_nodes) ; R0: (B, n_nodes, hidden1). Returns (S, I, R), each (T, n_nodes, 1)."""
    T = len(np.arange(0.0, max_time, delta_t))

    s0_col = S0[0].astype(jnp.float32)[:, None]          # (n_nodes, 1)
    i0_col = I0[0].astype(jnp.float32)[:, None]          # (n_nodes, 1)
    r0 = R0[0].astype(jnp.float32)                       # (n_nodes, hidden1)

    vmem = pl.BlockSpec(memory_space=pltpu.MemorySpace.VMEM)
    smem = pl.BlockSpec(memory_space=pltpu.MemorySpace.SMEM)

    out = pl.pallas_call(
        functools.partial(_ode_block_kernel, n_nodes, T, float(delta_t)),
        out_shape=jax.ShapeDtypeStruct((T, n_nodes, 3), jnp.float32),
        in_specs=[
            vmem,   # s0 column
            vmem,   # i0 column
            vmem,   # R0[0]
            vmem,   # linearS1.weight^T   (1, H)
            vmem,   # linearS1.bias       (1, H)
            vmem,   # synthetic odefunc weight (H, H)
            vmem,   # linear3.weight^T    (H, 4)
            vmem,   # linear3.bias        (1, 4)
            vmem,   # linearS2.weight row (1, 4)
            smem,   # linearS2.bias scalar (1, 1)
        ],
        out_specs=vmem,
    )(s0_col, i0_col, r0,
      params["wS1"], params["bS1"], params["wode"],
      params["w3"], params["b3"], params["wS2"].T, params["bS2"])

    S, I, R = jnp.split(out, 3, axis=-1)                 # each (T, n_nodes, 1)
    return S, I, R


def init_params(key, hidden1):
    ks = jax.random.split(key, 7)

    def u(k, shape, fan_in):
        b = 1.0 / np.sqrt(fan_in)
        return jax.random.uniform(k, shape, jnp.float32, -b, b)

    return {
        "wS1": u(ks[0], (1, hidden1), 1.0),       # Linear(1, hidden1).weight^T
        "bS1": u(ks[1], (1, hidden1), 1.0),
        "w3": u(ks[2], (hidden1, 4), hidden1),    # Linear(hidden1, 4).weight^T
        "b3": u(ks[3], (1, 4), hidden1),
        "wS2": u(ks[4], (4, 1), 4.0),             # Linear(4, 1).weight^T
        "bS2": u(ks[5], (1, 1), 4.0),
        "wode": jax.random.normal(ks[6], (hidden1, hidden1), jnp.float32) / np.sqrt(hidden1),
    }


def reference_forward(S0, I0, R0, p, *, max_time, delta_t, n_nodes, hidden1):
    """Pure-JAX reference (same math, highest matmul precision)."""
    hp = jax.lax.Precision.HIGHEST
    n = n_nodes
    dt = jnp.float32(delta_t)
    T = len(np.arange(0.0, max_time, delta_t))

    S = jnp.maximum(S0[0][:, None] * p["wS1"] + p["bS1"], 0.0)
    I = jnp.maximum(I0[0][:, None] * p["wS1"] + p["bS1"], 0.0)
    y = jnp.concatenate([S, I, R0[0]], axis=0)

    f = lambda y_: jnp.tanh(jnp.dot(y_, p["wode"], precision=hp))

    def head(x):
        h = jnp.maximum(jnp.dot(x, p["w3"], precision=hp) + p["b3"], 0.0)
        return jnp.dot(h, p["wS2"], precision=hp) + p["bS2"]

    outs = []
    for _ in range(T):
        sir = jnp.concatenate([head(y[:n]), head(y[n:2 * n]), head(y[2 * n:])], axis=-1)
        outs.append(jax.nn.softmax(sir, axis=-1))
        k1 = f(y)
        k2 = f(y + dt * k1 / 3.0)
        k3 = f(y + dt * (k2 - k1 / 3.0))
        k4 = f(y + dt * (k1 - k2 + k3))
        y = y + dt * (k1 + 3.0 * k2 + 3.0 * k3 + k4) / 8.0
    out = jnp.stack(outs, axis=0)
    return jnp.split(out, 3, axis=-1)


if __name__ == "__main__":
    B, N_NODES, HIDDEN1 = 2, 8, 32
    MAX_TIME, DELTA_T = 0.8, 0.1

    root = jax.random.PRNGKey(0)
    k0, k1, k2, k3 = jax.random.split(root, 4)
    S0 = jax.random.uniform(k0, (B, N_NODES), jnp.float32)
    I0 = jax.random.uniform(k1, (B, N_NODES), jnp.float32)
    R0 = jax.random.uniform(k2, (B, N_NODES, HIDDEN1), jnp.float32)
    params = init_params(k3, HIDDEN1)

    S, I, R = ode_block_forward(
        S0, I0, R0, params,
        max_time=MAX_TIME, delta_t=DELTA_T, n_nodes=N_NODES, hidden1=HIDDEN1)
    jax.block_until_ready((S, I, R))

    S_ref, I_ref, R_ref = reference_forward(
        S0, I0, R0, params,
        max_time=MAX_TIME, delta_t=DELTA_T, n_nodes=N_NODES, hidden1=HIDDEN1)

    for got, ref in ((S, S_ref), (I, I_ref), (R, R_ref)):
        assert got.shape == ref.shape
        np.testing.assert_allclose(np.asarray(got), np.asarray(ref), rtol=2e-3, atol=2e-3)

    print("KERNEL_OK")
</pallas_src>

<mosaic_0001>
module attributes {stable_mosaic.version = 11 : i64} {
  func.func @_ode_block_kernel(%arg0: memref<8x1xf32, #tpu.memory_space<vmem>>, %arg1: memref<8x1xf32, #tpu.memory_space<vmem>>, %arg2: memref<8x32xf32, #tpu.memory_space<vmem>>, %arg3: memref<1x32xf32, #tpu.memory_space<vmem>>, %arg4: memref<1x32xf32, #tpu.memory_space<vmem>>, %arg5: memref<32x32xf32, #tpu.memory_space<vmem>>, %arg6: memref<32x4xf32, #tpu.memory_space<vmem>>, %arg7: memref<1x4xf32, #tpu.memory_space<vmem>>, %arg8: memref<1x4xf32, #tpu.memory_space<vmem>>, %arg9: memref<1x1xf32, #tpu.memory_space<smem>>, %arg10: memref<8x8x3xf32, #tpu.memory_space<vmem>>) attributes {dimension_semantics = [], scalar_prefetch = 0 : i64, scratch_operands = 0 : i64, tpu.core_type = #tpu.core_type<tc>} {
    %c0 = arith.constant 0 : index
    %c0_0 = arith.constant 0 : index
    %0 = vector.load %arg3[%c0, %c0_0] : memref<1x32xf32, #tpu.memory_space<vmem>>, vector<1x32xf32>
    %c0_1 = arith.constant 0 : index
    %c0_2 = arith.constant 0 : index
    %1 = vector.load %arg4[%c0_1, %c0_2] : memref<1x32xf32, #tpu.memory_space<vmem>>, vector<1x32xf32>
    %c0_3 = arith.constant 0 : index
    %c0_4 = arith.constant 0 : index
    %2 = vector.load %arg5[%c0_3, %c0_4] : memref<32x32xf32, #tpu.memory_space<vmem>>, vector<32x32xf32>
    %c0_5 = arith.constant 0 : index
    %c0_6 = arith.constant 0 : index
    %3 = vector.load %arg6[%c0_5, %c0_6] : memref<32x4xf32, #tpu.memory_space<vmem>>, vector<32x4xf32>
    %c0_7 = arith.constant 0 : index
    %c0_8 = arith.constant 0 : index
    %4 = vector.load %arg7[%c0_7, %c0_8] : memref<1x4xf32, #tpu.memory_space<vmem>>, vector<1x4xf32>
    %c0_9 = arith.constant 0 : index
    %c0_10 = arith.constant 0 : index
    %5 = vector.load %arg8[%c0_9, %c0_10] : memref<1x4xf32, #tpu.memory_space<vmem>>, vector<1x4xf32>
    %c0_11 = arith.constant 0 : index
    %c0_12 = arith.constant 0 : index
    %6 = memref.load %arg9[%c0_11, %c0_12] : memref<1x1xf32, #tpu.memory_space<smem>>
    %c0_13 = arith.constant 0 : index
    %c0_14 = arith.constant 0 : index
    %7 = vector.load %arg0[%c0_13, %c0_14] : memref<8x1xf32, #tpu.memory_space<vmem>>, vector<8x1xf32>
    %8 = vector.broadcast %7 : vector<8x1xf32> to vector<8x32xf32>
    %9 = vector.broadcast %0 : vector<1x32xf32> to vector<8x32xf32>
    %10 = arith.mulf %8, %9 : vector<8x32xf32>
    %11 = vector.broadcast %1 : vector<1x32xf32> to vector<8x32xf32>
    %12 = arith.addf %10, %11 : vector<8x32xf32>
    %cst = arith.constant 0.000000e+00 : f32
    %13 = vector.broadcast %cst : f32 to vector<8x32xf32>
    %14 = arith.maximumf %12, %13 : vector<8x32xf32>
    %c0_15 = arith.constant 0 : index
    %c0_16 = arith.constant 0 : index
    %15 = vector.load %arg1[%c0_15, %c0_16] : memref<8x1xf32, #tpu.memory_space<vmem>>, vector<8x1xf32>
    %16 = vector.broadcast %15 : vector<8x1xf32> to vector<8x32xf32>
    %17 = vector.broadcast %0 : vector<1x32xf32> to vector<8x32xf32>
    %18 = arith.mulf %16, %17 : vector<8x32xf32>
    %19 = vector.broadcast %1 : vector<1x32xf32> to vector<8x32xf32>
    %20 = arith.addf %18, %19 : vector<8x32xf32>
    %cst_17 = arith.constant 0.000000e+00 : f32
    %21 = vector.broadcast %cst_17 : f32 to vector<8x32xf32>
    %22 = arith.maximumf %20, %21 : vector<8x32xf32>
    %c0_18 = arith.constant 0 : index
    %c0_19 = arith.constant 0 : index
    %23 = vector.load %arg2[%c0_18, %c0_19] : memref<8x32xf32, #tpu.memory_space<vmem>>, vector<8x32xf32>
    %24 = tpu.concatenate %14, %22, %23 in 0 : vector<8x32xf32>, vector<8x32xf32>, vector<8x32xf32> -> vector<24x32xf32>
    %cst_20 = arith.constant dense<0.000000e+00> : vector<24x4xf32>
    %25 = tpu.matmul %24, %3, %cst_20 {dimension_numbers = #tpu.dot_dimension_numbers<[1], [0], [0], [1], [0, 0, 1, 1], [], []>} : vector<24x32xf32>, vector<32x4xf32>, vector<24x4xf32> -> vector<24x4xf32>
    %26 = vector.broadcast %4 : vector<1x4xf32> to vector<24x4xf32>
    %27 = arith.addf %25, %26 : vector<24x4xf32>
    %cst_21 = arith.constant 0.000000e+00 : f32
    %28 = vector.broadcast %cst_21 : f32 to vector<24x4xf32>
    %29 = arith.maximumf %27, %28 : vector<24x4xf32>
    %30 = vector.broadcast %5 : vector<1x4xf32> to vector<24x4xf32>
    %31 = arith.mulf %29, %30 : vector<24x4xf32>
    %cst_22 = arith.constant dense<0.000000e+00> : vector<24xf32>
    %32 = vector.multi_reduction <add>, %31, %cst_22 [1] : vector<24x4xf32> to vector<24xf32>
    %33 = vector.shape_cast %32 : vector<24xf32> to vector<24x1xf32>
    %34 = vector.broadcast %6 : f32 to vector<24x1xf32>
    %35 = arith.addf %33, %34 : vector<24x1xf32>
    %36 = vector.extract_strided_slice %35 {offsets = [0, 0], sizes = [8, 1], strides = [1, 1]} : vector<24x1xf32> to vector<8x1xf32>
    %37 = vector.extract_strided_slice %35 {offsets = [8, 0], sizes = [8, 1], strides = [1, 1]} : vector<24x1xf32> to vector<8x1xf32>
    %38 = vector.extract_strided_slice %35 {offsets = [16, 0], sizes = [8, 1], strides = [1, 1]} : vector<24x1xf32> to vector<8x1xf32>
    %39 = arith.maximumf %36, %37 : vector<8x1xf32>
    %40 = arith.maximumf %39, %38 : vector<8x1xf32>
    %41 = arith.subf %36, %40 : vector<8x1xf32>
    %42 = math.exp %41 : vector<8x1xf32>
    %43 = arith.subf %37, %40 : vector<8x1xf32>
    %44 = math.exp %43 : vector<8x1xf32>
    %45 = arith.subf %38, %40 : vector<8x1xf32>
    %46 = math.exp %45 : vector<8x1xf32>
    %47 = arith.addf %42, %44 : vector<8x1xf32>
    %48 = arith.addf %47, %46 : vector<8x1xf32>
    %cst_23 = arith.constant 1.000000e+00 : f32
    %49 = vector.broadcast %cst_23 : f32 to vector<8x1xf32>
    %50 = arith.divf %49, %48 : vector<8x1xf32>
    %51 = arith.mulf %42, %50 : vector<8x1xf32>
    %52 = arith.mulf %44, %50 : vector<8x1xf32>
    %53 = arith.mulf %46, %50 : vector<8x1xf32>
    %54 = tpu.concatenate %51, %52, %53 in 1 : vector<8x1xf32>, vector<8x1xf32>, vector<8x1xf32> -> vector<8x3xf32>
    %c0_24 = arith.constant 0 : index
    %c0_25 = arith.constant 0 : index
    %c0_26 = arith.constant 0 : index
    %55 = vector.load %arg10[%c0_24, %c0_25, %c0_26] : memref<8x8x3xf32, #tpu.memory_space<vmem>>, vector<1x8x3xf32>
    %56 = vector.shape_cast %55 : vector<1x8x3xf32> to vector<8x3xf32>
    %57 = vector.shape_cast %54 : vector<8x3xf32> to vector<1x8x3xf32>
    tpu.vector_store %arg10[%c0_24, %c0_25, %c0_26], %57 {strides = array<i32>} : memref<8x8x3xf32, #tpu.memory_space<vmem>>, vector<1x8x3xf32>,
    %cst_27 = arith.constant dense<0.000000e+00> : vector<24x32xf32>
    %58 = tpu.matmul %24, %2, %cst_27 {dimension_numbers = #tpu.dot_dimension_numbers<[1], [0], [0], [1], [0, 0, 1, 1], [], []>} : vector<24x32xf32>, vector<32x32xf32>, vector<24x32xf32> -> vector<24x32xf32>
    %59 = math.tanh %58 : vector<24x32xf32>
    %cst_28 = arith.constant 1.000000e-01 : f32
    %60 = vector.broadcast %cst_28 : f32 to vector<24x32xf32>
    %61 = arith.mulf %60, %59 : vector<24x32xf32>
    %cst_29 = arith.constant 3.000000e+00 : f32
    %62 = vector.broadcast %cst_29 : f32 to vector<24x32xf32>
    %63 = arith.divf %61, %62 : vector<24x32xf32>
    %64 = arith.addf %24, %63 : vector<24x32xf32>
    %cst_30 = arith.constant dense<0.000000e+00> : vector<24x32xf32>
    %65 = tpu.matmul %64, %2, %cst_30 {dimension_numbers = #tpu.dot_dimension_numbers<[1], [0], [0], [1], [0, 0, 1, 1], [], []>} : vector<24x32xf32>, vector<32x32xf32>, vector<24x32xf32> -> vector<24x32xf32>
    %66 = math.tanh %65 : vector<24x32xf32>
    %cst_31 = arith.constant 3.000000e+00 : f32
    %67 = vector.broadcast %cst_31 : f32 to vector<24x32xf32>
    %68 = arith.divf %59, %67 : vector<24x32xf32>
    %69 = arith.subf %66, %68 : vector<24x32xf32>
    %cst_32 = arith.constant 1.000000e-01 : f32
    %70 = vector.broadcast %cst_32 : f32 to vector<24x32xf32>
    %71 = arith.mulf %70, %69 : vector<24x32xf32>
    %72 = arith.addf %24, %71 : vector<24x32xf32>
    %cst_33 = arith.constant dense<0.000000e+00> : vector<24x32xf32>
    %73 = tpu.matmul %72, %2, %cst_33 {dimension_numbers = #tpu.dot_dimension_numbers<[1], [0], [0], [1], [0, 0, 1, 1], [], []>} : vector<24x32xf32>, vector<32x32xf32>, vector<24x32xf32> -> vector<24x32xf32>
    %74 = math.tanh %73 : vector<24x32xf32>
    %75 = arith.subf %59, %66 : vector<24x32xf32>
    %76 = arith.addf %75, %74 : vector<24x32xf32>
    %cst_34 = arith.constant 1.000000e-01 : f32
    %77 = vector.broadcast %cst_34 : f32 to vector<24x32xf32>
    %78 = arith.mulf %77, %76 : vector<24x32xf32>
    %79 = arith.addf %24, %78 : vector<24x32xf32>
    %cst_35 = arith.constant dense<0.000000e+00> : vector<24x32xf32>
    %80 = tpu.matmul %79, %2, %cst_35 {dimension_numbers = #tpu.dot_dimension_numbers<[1], [0], [0], [1], [0, 0, 1, 1], [], []>} : vector<24x32xf32>, vector<32x32xf32>, vector<24x32xf32> -> vector<24x32xf32>
    %81 = math.tanh %80 : vector<24x32xf32>
    %cst_36 = arith.constant 3.000000e+00 : f32
    %82 = vector.broadcast %cst_36 : f32 to vector<24x32xf32>
    %83 = arith.mulf %82, %66 : vector<24x32xf32>
    %84 = arith.addf %59, %83 : vector<24x32xf32>
    %cst_37 = arith.constant 3.000000e+00 : f32
    %85 = vector.broadcast %cst_37 : f32 to vector<24x32xf32>
    %86 = arith.mulf %85, %74 : vector<24x32xf32>
    %87 = arith.addf %84, %86 : vector<24x32xf32>
    %88 = arith.addf %87, %81 : vector<24x32xf32>
    %cst_38 = arith.constant 1.000000e-01 : f32
    %89 = vector.broadcast %cst_38 : f32 to vector<24x32xf32>
    %90 = arith.mulf %89, %88 : vector<24x32xf32>
    %cst_39 = arith.constant 8.000000e+00 : f32
    %91 = vector.broadcast %cst_39 : f32 to vector<24x32xf32>
    %92 = arith.divf %90, %91 : vector<24x32xf32>
    %93 = arith.addf %24, %92 : vector<24x32xf32>
    %cst_40 = arith.constant dense<0.000000e+00> : vector<24x4xf32>
    %94 = tpu.matmul %93, %3, %cst_40 {dimension_numbers = #tpu.dot_dimension_numbers<[1], [0], [0], [1], [0, 0, 1, 1], [], []>} : vector<24x32xf32>, vector<32x4xf32>, vector<24x4xf32> -> vector<24x4xf32>
    %95 = vector.broadcast %4 : vector<1x4xf32> to vector<24x4xf32>
    %96 = arith.addf %94, %95 : vector<24x4xf32>
    %cst_41 = arith.constant 0.000000e+00 : f32
    %97 = vector.broadcast %cst_41 : f32 to vector<24x4xf32>
    %98 = arith.maximumf %96, %97 : vector<24x4xf32>
    %99 = vector.broadcast %5 : vector<1x4xf32> to vector<24x4xf32>
    %100 = arith.mulf %98, %99 : vector<24x4xf32>
    %cst_42 = arith.constant dense<0.000000e+00> : vector<24xf32>
    %101 = vector.multi_reduction <add>, %100, %cst_42 [1] : vector<24x4xf32> to vector<24xf32>
    %102 = vector.shape_cast %101 : vector<24xf32> to vector<24x1xf32>
    %103 = vector.broadcast %6 : f32 to vector<24x1xf32>
    %104 = arith.addf %102, %103 : vector<24x1xf32>
    %105 = vector.extract_strided_slice %104 {offsets = [0, 0], sizes = [8, 1], strides = [1, 1]} : vector<24x1xf32> to vector<8x1xf32>
    %106 = vector.extract_strided_slice %104 {offsets = [8, 0], sizes = [8, 1], strides = [1, 1]} : vector<24x1xf32> to vector<8x1xf32>
    %107 = vector.extract_strided_slice %104 {offsets = [16, 0], sizes = [8, 1], strides = [1, 1]} : vector<24x1xf32> to vector<8x1xf32>
    %108 = arith.maximumf %105, %106 : vector<8x1xf32>
    %109 = arith.maximumf %108, %107 : vector<8x1xf32>
    %110 = arith.subf %105, %109 : vector<8x1xf32>
    %111 = math.exp %110 : vector<8x1xf32>
    %112 = arith.subf %106, %109 : vector<8x1xf32>
    %113 = math.exp %112 : vector<8x1xf32>
    %114 = arith.subf %107, %109 : vector<8x1xf32>
    %115 = math.exp %114 : vector<8x1xf32>
    %116 = arith.addf %111, %113 : vector<8x1xf32>
    %117 = arith.addf %116, %115 : vector<8x1xf32>
    %cst_43 = arith.constant 1.000000e+00 : f32
    %118 = vector.broadcast %cst_43 : f32 to vector<8x1xf32>
    %119 = arith.divf %118, %117 : vector<8x1xf32>
    %120 = arith.mulf %111, %119 : vector<8x1xf32>
    %121 = arith.mulf %113, %119 : vector<8x1xf32>
    %122 = arith.mulf %115, %119 : vector<8x1xf32>
    %123 = tpu.concatenate %120, %121, %122 in 1 : vector<8x1xf32>, vector<8x1xf32>, vector<8x1xf32> -> vector<8x3xf32>
    %c1 = arith.constant 1 : index
    %c0_44 = arith.constant 0 : index
    %c0_45 = arith.constant 0 : index
    %124 = vector.load %arg10[%c1, %c0_44, %c0_45] : memref<8x8x3xf32, #tpu.memory_space<vmem>>, vector<1x8x3xf32>
    %125 = vector.shape_cast %124 : vector<1x8x3xf32> to vector<8x3xf32>
    %126 = vector.shape_cast %123 : vector<8x3xf32> to vector<1x8x3xf32>
    tpu.vector_store %arg10[%c1, %c0_44, %c0_45], %126 {strides = array<i32>} : memref<8x8x3xf32, #tpu.memory_space<vmem>>, vector<1x8x3xf32>,
    %cst_46 = arith.constant dense<0.000000e+00> : vector<24x32xf32>
    %127 = tpu.matmul %93, %2, %cst_46 {dimension_numbers = #tpu.dot_dimension_numbers<[1], [0], [0], [1], [0, 0, 1, 1], [], []>} : vector<24x32xf32>, vector<32x32xf32>, vector<24x32xf32> -> vector<24x32xf32>
    %128 = math.tanh %127 : vector<24x32xf32>
    %cst_47 = arith.constant 1.000000e-01 : f32
    %129 = vector.broadcast %cst_47 : f32 to vector<24x32xf32>
    %130 = arith.mulf %129, %128 : vector<24x32xf32>
    %cst_48 = arith.constant 3.000000e+00 : f32
    %131 = vector.broadcast %cst_48 : f32 to vector<24x32xf32>
    %132 = arith.divf %130, %131 : vector<24x32xf32>
    %133 = arith.addf %93, %132 : vector<24x32xf32>
    %cst_49 = arith.constant dense<0.000000e+00> : vector<24x32xf32>
    %134 = tpu.matmul %133, %2, %cst_49 {dimension_numbers = #tpu.dot_dimension_numbers<[1], [0], [0], [1], [0, 0, 1, 1], [], []>} : vector<24x32xf32>, vector<32x32xf32>, vector<24x32xf32> -> vector<24x32xf32>
    %135 = math.tanh %134 : vector<24x32xf32>
    %cst_50 = arith.constant 3.000000e+00 : f32
    %136 = vector.broadcast %cst_50 : f32 to vector<24x32xf32>
    %137 = arith.divf %128, %136 : vector<24x32xf32>
    %138 = arith.subf %135, %137 : vector<24x32xf32>
    %cst_51 = arith.constant 1.000000e-01 : f32
    %139 = vector.broadcast %cst_51 : f32 to vector<24x32xf32>
    %140 = arith.mulf %139, %138 : vector<24x32xf32>
    %141 = arith.addf %93, %140 : vector<24x32xf32>
    %cst_52 = arith.constant dense<0.000000e+00> : vector<24x32xf32>
    %142 = tpu.matmul %141, %2, %cst_52 {dimension_numbers = #tpu.dot_dimension_numbers<[1], [0], [0], [1], [0, 0, 1, 1], [], []>} : vector<24x32xf32>, vector<32x32xf32>, vector<24x32xf32> -> vector<24x32xf32>
    %143 = math.tanh %142 : vector<24x32xf32>
    %144 = arith.subf %128, %135 : vector<24x32xf32>
    %145 = arith.addf %144, %143 : vector<24x32xf32>
    %cst_53 = arith.constant 1.000000e-01 : f32
    %146 = vector.broadcast %cst_53 : f32 to vector<24x32xf32>
    %147 = arith.mulf %146, %145 : vector<24x32xf32>
    %148 = arith.addf %93, %147 : vector<24x32xf32>
    %cst_54 = arith.constant dense<0.000000e+00> : vector<24x32xf32>
    %149 = tpu.matmul %148, %2, %cst_54 {dimension_numbers = #tpu.dot_dimension_numbers<[1], [0], [0], [1], [0, 0, 1, 1], [], []>} : vector<24x32xf32>, vector<32x32xf32>, vector<24x32xf32> -> vector<24x32xf32>
    %150 = math.tanh %149 : vector<24x32xf32>
    %cst_55 = arith.constant 3.000000e+00 : f32
    %151 = vector.broadcast %cst_55 : f32 to vector<24x32xf32>
    %152 = arith.mulf %151, %135 : vector<24x32xf32>
    %153 = arith.addf %128, %152 : vector<24x32xf32>
    %cst_56 = arith.constant 3.000000e+00 : f32
    %154 = vector.broadcast %cst_56 : f32 to vector<24x32xf32>
    %155 = arith.mulf %154, %143 : vector<24x32xf32>
    %156 = arith.addf %153, %155 : vector<24x32xf32>
    %157 = arith.addf %156, %150 : vector<24x32xf32>
    %cst_57 = arith.constant 1.000000e-01 : f32
    %158 = vector.broadcast %cst_57 : f32 to vector<24x32xf32>
    %159 = arith.mulf %158, %157 : vector<24x32xf32>
    %cst_58 = arith.constant 8.000000e+00 : f32
    %160 = vector.broadcast %cst_58 : f32 to vector<24x32xf32>
    %161 = arith.divf %159, %160 : vector<24x32xf32>
    %162 = arith.addf %93, %161 : vector<24x32xf32>
    %cst_59 = arith.constant dense<0.000000e+00> : vector<24x4xf32>
    %163 = tpu.matmul %162, %3, %cst_59 {dimension_numbers = #tpu.dot_dimension_numbers<[1], [0], [0], [1], [0, 0, 1, 1], [], []>} : vector<24x32xf32>, vector<32x4xf32>, vector<24x4xf32> -> vector<24x4xf32>
    %164 = vector.broadcast %4 : vector<1x4xf32> to vector<24x4xf32>
    %165 = arith.addf %163, %164 : vector<24x4xf32>
    %cst_60 = arith.constant 0.000000e+00 : f32
    %166 = vector.broadcast %cst_60 : f32 to vector<24x4xf32>
    %167 = arith.maximumf %165, %166 : vector<24x4xf32>
    %168 = vector.broadcast %5 : vector<1x4xf32> to vector<24x4xf32>
    %169 = arith.mulf %167, %168 : vector<24x4xf32>
    %cst_61 = arith.constant dense<0.000000e+00> : vector<24xf32>
    %170 = vector.multi_reduction <add>, %169, %cst_61 [1] : vector<24x4xf32> to vector<24xf32>
    %171 = vector.shape_cast %170 : vector<24xf32> to vector<24x1xf32>
    %172 = vector.broadcast %6 : f32 to vector<24x1xf32>
    %173 = arith.addf %171, %172 : vector<24x1xf32>
    %174 = vector.extract_strided_slice %173 {offsets = [0, 0], sizes = [8, 1], strides = [1, 1]} : vector<24x1xf32> to vector<8x1xf32>
    %175 = vector.extract_strided_slice %173 {offsets = [8, 0], sizes = [8, 1], strides = [1, 1]} : vector<24x1xf32> to vector<8x1xf32>
    %176 = vector.extract_strided_slice %173 {offsets = [16, 0], sizes = [8, 1], strides = [1, 1]} : vector<24x1xf32> to vector<8x1xf32>
    %177 = arith.maximumf %174, %175 : vector<8x1xf32>
    %178 = arith.maximumf %177, %176 : vector<8x1xf32>
    %179 = arith.subf %174, %178 : vector<8x1xf32>
    %180 = math.exp %179 : vector<8x1xf32>
    %181 = arith.subf %175, %178 : vector<8x1xf32>
    %182 = math.exp %181 : vector<8x1xf32>
    %183 = arith.subf %176, %178 : vector<8x1xf32>
    %184 = math.exp %183 : vector<8x1xf32>
    %185 = arith.addf %180, %182 : vector<8x1xf32>
    %186 = arith.addf %185, %184 : vector<8x1xf32>
    %cst_62 = arith.constant 1.000000e+00 : f32
    %187 = vector.broadcast %cst_62 : f32 to vector<8x1xf32>
    %188 = arith.divf %187, %186 : vector<8x1xf32>
    %189 = arith.mulf %180, %188 : vector<8x1xf32>
    %190 = arith.mulf %182, %188 : vector<8x1xf32>
    %191 = arith.mulf %184, %188 : vector<8x1xf32>
    %192 = tpu.concatenate %189, %190, %191 in 1 : vector<8x1xf32>, vector<8x1xf32>, vector<8x1xf32> -> vector<8x3xf32>
    %c2 = arith.constant 2 : index
    %c0_63 = arith.constant 0 : index
    %c0_64 = arith.constant 0 : index
    %193 = vector.load %arg10[%c2, %c0_63, %c0_64] : memref<8x8x3xf32, #tpu.memory_space<vmem>>, vector<1x8x3xf32>
    %194 = vector.shape_cast %193 : vector<1x8x3xf32> to vector<8x3xf32>
    %195 = vector.shape_cast %192 : vector<8x3xf32> to vector<1x8x3xf32>
    tpu.vector_store %arg10[%c2, %c0_63, %c0_64], %195 {strides = array<i32>} : memref<8x8x3xf32, #tpu.memory_space<vmem>>, vector<1x8x3xf32>,
    %cst_65 = arith.constant dense<0.000000e+00> : vector<24x32xf32>
    %196 = tpu.matmul %162, %2, %cst_65 {dimension_numbers = #tpu.dot_dimension_numbers<[1], [0], [0], [1], [0, 0, 1, 1], [], []>} : vector<24x32xf32>, vector<32x32xf32>, vector<24x32xf32> -> vector<24x32xf32>
    %197 = math.tanh %196 : vector<24x32xf32>
    %cst_66 = arith.constant 1.000000e-01 : f32
    %198 = vector.broadcast %cst_66 : f32 to vector<24x32xf32>
    %199 = arith.mulf %198, %197 : vector<24x32xf32>
    %cst_67 = arith.constant 3.000000e+00 : f32
    %200 = vector.broadcast %cst_67 : f32 to vector<24x32xf32>
    %201 = arith.divf %199, %200 : vector<24x32xf32>
    %202 = arith.addf %162, %201 : vector<24x32xf32>
    %cst_68 = arith.constant dense<0.000000e+00> : vector<24x32xf32>
    %203 = tpu.matmul %202, %2, %cst_68 {dimension_numbers = #tpu.dot_dimension_numbers<[1], [0], [0], [1], [0, 0, 1, 1], [], []>} : vector<24x32xf32>, vector<32x32xf32>, vector<24x32xf32> -> vector<24x32xf32>
    %204 = math.tanh %203 : vector<24x32xf32>
    %cst_69 = arith.constant 3.000000e+00 : f32
    %205 = vector.broadcast %cst_69 : f32 to vector<24x32xf32>
    %206 = arith.divf %197, %205 : vector<24x32xf32>
    %207 = arith.subf %204, %206 : vector<24x32xf32>
    %cst_70 = arith.constant 1.000000e-01 : f32
    %208 = vector.broadcast %cst_70 : f32 to vector<24x32xf32>
    %209 = arith.mulf %208, %207 : vector<24x32xf32>
    %210 = arith.addf %162, %209 : vector<24x32xf32>
    %cst_71 = arith.constant dense<0.000000e+00> : vector<24x32xf32>
    %211 = tpu.matmul %210, %2, %cst_71 {dimension_numbers = #tpu.dot_dimension_numbers<[1], [0], [0], [1], [0, 0, 1, 1], [], []>} : vector<24x32xf32>, vector<32x32xf32>, vector<24x32xf32> -> vector<24x32xf32>
    %212 = math.tanh %211 : vector<24x32xf32>
    %213 = arith.subf %197, %204 : vector<24x32xf32>
    %214 = arith.addf %213, %212 : vector<24x32xf32>
    %cst_72 = arith.constant 1.000000e-01 : f32
    %215 = vector.broadcast %cst_72 : f32 to vector<24x32xf32>
    %216 = arith.mulf %215, %214 : vector<24x32xf32>
    %217 = arith.addf %162, %216 : vector<24x32xf32>
    %cst_73 = arith.constant dense<0.000000e+00> : vector<24x32xf32>
    %218 = tpu.matmul %217, %2, %cst_73 {dimension_numbers = #tpu.dot_dimension_numbers<[1], [0], [0], [1], [0, 0, 1, 1], [], []>} : vector<24x32xf32>, vector<32x32xf32>, vector<24x32xf32> -> vector<24x32xf32>
    %219 = math.tanh %218 : vector<24x32xf32>
    %cst_74 = arith.constant 3.000000e+00 : f32
    %220 = vector.broadcast %cst_74 : f32 to vector<24x32xf32>
    %221 = arith.mulf %220, %204 : vector<24x32xf32>
    %222 = arith.addf %197, %221 : vector<24x32xf32>
    %cst_75 = arith.constant 3.000000e+00 : f32
    %223 = vector.broadcast %cst_75 : f32 to vector<24x32xf32>
    %224 = arith.mulf %223, %212 : vector<24x32xf32>
    %225 = arith.addf %222, %224 : vector<24x32xf32>
    %226 = arith.addf %225, %219 : vector<24x32xf32>
    %cst_76 = arith.constant 1.000000e-01 : f32
    %227 = vector.broadcast %cst_76 : f32 to vector<24x32xf32>
    %228 = arith.mulf %227, %226 : vector<24x32xf32>
    %cst_77 = arith.constant 8.000000e+00 : f32
    %229 = vector.broadcast %cst_77 : f32 to vector<24x32xf32>
    %230 = arith.divf %228, %229 : vector<24x32xf32>
    %231 = arith.addf %162, %230 : vector<24x32xf32>
    %cst_78 = arith.constant dense<0.000000e+00> : vector<24x4xf32>
    %232 = tpu.matmul %231, %3, %cst_78 {dimension_numbers = #tpu.dot_dimension_numbers<[1], [0], [0], [1], [0, 0, 1, 1], [], []>} : vector<24x32xf32>, vector<32x4xf32>, vector<24x4xf32> -> vector<24x4xf32>
    %233 = vector.broadcast %4 : vector<1x4xf32> to vector<24x4xf32>
    %234 = arith.addf %232, %233 : vector<24x4xf32>
    %cst_79 = arith.constant 0.000000e+00 : f32
    %235 = vector.broadcast %cst_79 : f32 to vector<24x4xf32>
    %236 = arith.maximumf %234, %235 : vector<24x4xf32>
    %237 = vector.broadcast %5 : vector<1x4xf32> to vector<24x4xf32>
    %238 = arith.mulf %236, %237 : vector<24x4xf32>
    %cst_80 = arith.constant dense<0.000000e+00> : vector<24xf32>
    %239 = vector.multi_reduction <add>, %238, %cst_80 [1] : vector<24x4xf32> to vector<24xf32>
    %240 = vector.shape_cast %239 : vector<24xf32> to vector<24x1xf32>
    %241 = vector.broadcast %6 : f32 to vector<24x1xf32>
    %242 = arith.addf %240, %241 : vector<24x1xf32>
    %243 = vector.extract_strided_slice %242 {offsets = [0, 0], sizes = [8, 1], strides = [1, 1]} : vector<24x1xf32> to vector<8x1xf32>
    %244 = vector.extract_strided_slice %242 {offsets = [8, 0], sizes = [8, 1], strides = [1, 1]} : vector<24x1xf32> to vector<8x1xf32>
    %245 = vector.extract_strided_slice %242 {offsets = [16, 0], sizes = [8, 1], strides = [1, 1]} : vector<24x1xf32> to vector<8x1xf32>
    %246 = arith.maximumf %243, %244 : vector<8x1xf32>
    %247 = arith.maximumf %246, %245 : vector<8x1xf32>
    %248 = arith.subf %243, %247 : vector<8x1xf32>
    %249 = math.exp %248 : vector<8x1xf32>
    %250 = arith.subf %244, %247 : vector<8x1xf32>
    %251 = math.exp %250 : vector<8x1xf32>
    %252 = arith.subf %245, %247 : vector<8x1xf32>
    %253 = math.exp %252 : vector<8x1xf32>
    %254 = arith.addf %249, %251 : vector<8x1xf32>
    %255 = arith.addf %254, %253 : vector<8x1xf32>
    %cst_81 = arith.constant 1.000000e+00 : f32
    %256 = vector.broadcast %cst_81 : f32 to vector<8x1xf32>
    %257 = arith.divf %256, %255 : vector<8x1xf32>
    %258 = arith.mulf %249, %257 : vector<8x1xf32>
    %259 = arith.mulf %251, %257 : vector<8x1xf32>
    %260 = arith.mulf %253, %257 : vector<8x1xf32>
    %261 = tpu.concatenate %258, %259, %260 in 1 : vector<8x1xf32>, vector<8x1xf32>, vector<8x1xf32> -> vector<8x3xf32>
    %c3 = arith.constant 3 : index
    %c0_82 = arith.constant 0 : index
    %c0_83 = arith.constant 0 : index
    %262 = vector.load %arg10[%c3, %c0_82, %c0_83] : memref<8x8x3xf32, #tpu.memory_space<vmem>>, vector<1x8x3xf32>
    %263 = vector.shape_cast %262 : vector<1x8x3xf32> to vector<8x3xf32>
    %264 = vector.shape_cast %261 : vector<8x3xf32> to vector<1x8x3xf32>
    tpu.vector_store %arg10[%c3, %c0_82, %c0_83], %264 {strides = array<i32>} : memref<8x8x3xf32, #tpu.memory_space<vmem>>, vector<1x8x3xf32>,
    %cst_84 = arith.constant dense<0.000000e+00> : vector<24x32xf32>
    %265 = tpu.matmul %231, %2, %cst_84 {dimension_numbers = #tpu.dot_dimension_numbers<[1], [0], [0], [1], [0, 0, 1, 1], [], []>} : vector<24x32xf32>, vector<32x32xf32>, vector<24x32xf32> -> vector<24x32xf32>
    %266 = math.tanh %265 : vector<24x32xf32>
    %cst_85 = arith.constant 1.000000e-01 : f32
    %267 = vector.broadcast %cst_85 : f32 to vector<24x32xf32>
    %268 = arith.mulf %267, %266 : vector<24x32xf32>
    %cst_86 = arith.constant 3.000000e+00 : f32
    %269 = vector.broadcast %cst_86 : f32 to vector<24x32xf32>
    %270 = arith.divf %268, %269 : vector<24x32xf32>
    %271 = arith.addf %231, %270 : vector<24x32xf32>
    %cst_87 = arith.constant dense<0.000000e+00> : vector<24x32xf32>
    %272 = tpu.matmul %271, %2, %cst_87 {dimension_numbers = #tpu.dot_dimension_numbers<[1], [0], [0], [1], [0, 0, 1, 1], [], []>} : vector<24x32xf32>, vector<32x32xf32>, vector<24x32xf32> -> vector<24x32xf32>
    %273 = math.tanh %272 : vector<24x32xf32>
    %cst_88 = arith.constant 3.000000e+00 : f32
    %274 = vector.broadcast %cst_88 : f32 to vector<24x32xf32>
    %275 = arith.divf %266, %274 : vector<24x32xf32>
    %276 = arith.subf %273, %275 : vector<24x32xf32>
    %cst_89 = arith.constant 1.000000e-01 : f32
    %277 = vector.broadcast %cst_89 : f32 to vector<24x32xf32>
    %278 = arith.mulf %277, %276 : vector<24x32xf32>
    %279 = arith.addf %231, %278 : vector<24x32xf32>
    %cst_90 = arith.constant dense<0.000000e+00> : vector<24x32xf32>
    %280 = tpu.matmul %279, %2, %cst_90 {dimension_numbers = #tpu.dot_dimension_numbers<[1], [0], [0], [1], [0, 0, 1, 1], [], []>} : vector<24x32xf32>, vector<32x32xf32>, vector<24x32xf32> -> vector<24x32xf32>
    %281 = math.tanh %280 : vector<24x32xf32>
    %282 = arith.subf %266, %273 : vector<24x32xf32>
    %283 = arith.addf %282, %281 : vector<24x32xf32>
    %cst_91 = arith.constant 1.000000e-01 : f32
    %284 = vector.broadcast %cst_91 : f32 to vector<24x32xf32>
    %285 = arith.mulf %284, %283 : vector<24x32xf32>
    %286 = arith.addf %231, %285 : vector<24x32xf32>
    %cst_92 = arith.constant dense<0.000000e+00> : vector<24x32xf32>
    %287 = tpu.matmul %286, %2, %cst_92 {dimension_numbers = #tpu.dot_dimension_numbers<[1], [0], [0], [1], [0, 0, 1, 1], [], []>} : vector<24x32xf32>, vector<32x32xf32>, vector<24x32xf32> -> vector<24x32xf32>
    %288 = math.tanh %287 : vector<24x32xf32>
    %cst_93 = arith.constant 3.000000e+00 : f32
    %289 = vector.broadcast %cst_93 : f32 to vector<24x32xf32>
    %290 = arith.mulf %289, %273 : vector<24x32xf32>
    %291 = arith.addf %266, %290 : vector<24x32xf32>
    %cst_94 = arith.constant 3.000000e+00 : f32
    %292 = vector.broadcast %cst_94 : f32 to vector<24x32xf32>
    %293 = arith.mulf %292, %281 : vector<24x32xf32>
    %294 = arith.addf %291, %293 : vector<24x32xf32>
    %295 = arith.addf %294, %288 : vector<24x32xf32>
    %cst_95 = arith.constant 1.000000e-01 : f32
    %296 = vector.broadcast %cst_95 : f32 to vector<24x32xf32>
    %297 = arith.mulf %296, %295 : vector<24x32xf32>
    %cst_96 = arith.constant 8.000000e+00 : f32
    %298 = vector.broadcast %cst_96 : f32 to vector<24x32xf32>
    %299 = arith.divf %297, %298 : vector<24x32xf32>
    %300 = arith.addf %231, %299 : vector<24x32xf32>
    %cst_97 = arith.constant dense<0.000000e+00> : vector<24x4xf32>
    %301 = tpu.matmul %300, %3, %cst_97 {dimension_numbers = #tpu.dot_dimension_numbers<[1], [0], [0], [1], [0, 0, 1, 1], [], []>} : vector<24x32xf32>, vector<32x4xf32>, vector<24x4xf32> -> vector<24x4xf32>
    %302 = vector.broadcast %4 : vector<1x4xf32> to vector<24x4xf32>
    %303 = arith.addf %301, %302 : vector<24x4xf32>
    %cst_98 = arith.constant 0.000000e+00 : f32
    %304 = vector.broadcast %cst_98 : f32 to vector<24x4xf32>
    %305 = arith.maximumf %303, %304 : vector<24x4xf32>
    %306 = vector.broadcast %5 : vector<1x4xf32> to vector<24x4xf32>
    %307 = arith.mulf %305, %306 : vector<24x4xf32>
    %cst_99 = arith.constant dense<0.000000e+00> : vector<24xf32>
    %308 = vector.multi_reduction <add>, %307, %cst_99 [1] : vector<24x4xf32> to vector<24xf32>
    %309 = vector.shape_cast %308 : vector<24xf32> to vector<24x1xf32>
    %310 = vector.broadcast %6 : f32 to vector<24x1xf32>
    %311 = arith.addf %309, %310 : vector<24x1xf32>
    %312 = vector.extract_strided_slice %311 {offsets = [0, 0], sizes = [8, 1], strides = [1, 1]} : vector<24x1xf32> to vector<8x1xf32>
    %313 = vector.extract_strided_slice %311 {offsets = [8, 0], sizes = [8, 1], strides = [1, 1]} : vector<24x1xf32> to vector<8x1xf32>
    %314 = vector.extract_strided_slice %311 {offsets = [16, 0], sizes = [8, 1], strides = [1, 1]} : vector<24x1xf32> to vector<8x1xf32>
    %315 = arith.maximumf %312, %313 : vector<8x1xf32>
    %316 = arith.maximumf %315, %314 : vector<8x1xf32>
    %317 = arith.subf %312, %316 : vector<8x1xf32>
    %318 = math.exp %317 : vector<8x1xf32>
    %319 = arith.subf %313, %316 : vector<8x1xf32>
    %320 = math.exp %319 : vector<8x1xf32>
    %321 = arith.subf %314, %316 : vector<8x1xf32>
    %322 = math.exp %321 : vector<8x1xf32>
    %323 = arith.addf %318, %320 : vector<8x1xf32>
    %324 = arith.addf %323, %322 : vector<8x1xf32>
    %cst_100 = arith.constant 1.000000e+00 : f32
    %325 = vector.broadcast %cst_100 : f32 to vector<8x1xf32>
    %326 = arith.divf %325, %324 : vector<8x1xf32>
    %327 = arith.mulf %318, %326 : vector<8x1xf32>
    %328 = arith.mulf %320, %326 : vector<8x1xf32>
    %329 = arith.mulf %322, %326 : vector<8x1xf32>
    %330 = tpu.concatenate %327, %328, %329 in 1 : vector<8x1xf32>, vector<8x1xf32>, vector<8x1xf32> -> vector<8x3xf32>
    %c4 = arith.constant 4 : index
    %c0_101 = arith.constant 0 : index
    %c0_102 = arith.constant 0 : index
    %331 = vector.load %arg10[%c4, %c0_101, %c0_102] : memref<8x8x3xf32, #tpu.memory_space<vmem>>, vector<1x8x3xf32>
    %332 = vector.shape_cast %331 : vector<1x8x3xf32> to vector<8x3xf32>
    %333 = vector.shape_cast %330 : vector<8x3xf32> to vector<1x8x3xf32>
    tpu.vector_store %arg10[%c4, %c0_101, %c0_102], %333 {strides = array<i32>} : memref<8x8x3xf32, #tpu.memory_space<vmem>>, vector<1x8x3xf32>,
    %cst_103 = arith.constant dense<0.000000e+00> : vector<24x32xf32>
    %334 = tpu.matmul %300, %2, %cst_103 {dimension_numbers = #tpu.dot_dimension_numbers<[1], [0], [0], [1], [0, 0, 1, 1], [], []>} : vector<24x32xf32>, vector<32x32xf32>, vector<24x32xf32> -> vector<24x32xf32>
    %335 = math.tanh %334 : vector<24x32xf32>
    %cst_104 = arith.constant 1.000000e-01 : f32
    %336 = vector.broadcast %cst_104 : f32 to vector<24x32xf32>
    %337 = arith.mulf %336, %335 : vector<24x32xf32>
    %cst_105 = arith.constant 3.000000e+00 : f32
    %338 = vector.broadcast %cst_105 : f32 to vector<24x32xf32>
    %339 = arith.divf %337, %338 : vector<24x32xf32>
    %340 = arith.addf %300, %339 : vector<24x32xf32>
    %cst_106 = arith.constant dense<0.000000e+00> : vector<24x32xf32>
    %341 = tpu.matmul %340, %2, %cst_106 {dimension_numbers = #tpu.dot_dimension_numbers<[1], [0], [0], [1], [0, 0, 1, 1], [], []>} : vector<24x32xf32>, vector<32x32xf32>, vector<24x32xf32> -> vector<24x32xf32>
    %342 = math.tanh %341 : vector<24x32xf32>
    %cst_107 = arith.constant 3.000000e+00 : f32
    %343 = vector.broadcast %cst_107 : f32 to vector<24x32xf32>
    %344 = arith.divf %335, %343 : vector<24x32xf32>
    %345 = arith.subf %342, %344 : vector<24x32xf32>
    %cst_108 = arith.constant 1.000000e-01 : f32
    %346 = vector.broadcast %cst_108 : f32 to vector<24x32xf32>
    %347 = arith.mulf %346, %345 : vector<24x32xf32>
    %348 = arith.addf %300, %347 : vector<24x32xf32>
    %cst_109 = arith.constant dense<0.000000e+00> : vector<24x32xf32>
    %349 = tpu.matmul %348, %2, %cst_109 {dimension_numbers = #tpu.dot_dimension_numbers<[1], [0], [0], [1], [0, 0, 1, 1], [], []>} : vector<24x32xf32>, vector<32x32xf32>, vector<24x32xf32> -> vector<24x32xf32>
    %350 = math.tanh %349 : vector<24x32xf32>
    %351 = arith.subf %335, %342 : vector<24x32xf32>
    %352 = arith.addf %351, %350 : vector<24x32xf32>
    %cst_110 = arith.constant 1.000000e-01 : f32
    %353 = vector.broadcast %cst_110 : f32 to vector<24x32xf32>
    %354 = arith.mulf %353, %352 : vector<24x32xf32>
    %355 = arith.addf %300, %354 : vector<24x32xf32>
    %cst_111 = arith.constant dense<0.000000e+00> : vector<24x32xf32>
    %356 = tpu.matmul %355, %2, %cst_111 {dimension_numbers = #tpu.dot_dimension_numbers<[1], [0], [0], [1], [0, 0, 1, 1], [], []>} : vector<24x32xf32>, vector<32x32xf32>, vector<24x32xf32> -> vector<24x32xf32>
    %357 = math.tanh %356 : vector<24x32xf32>
    %cst_112 = arith.constant 3.000000e+00 : f32
    %358 = vector.broadcast %cst_112 : f32 to vector<24x32xf32>
    %359 = arith.mulf %358, %342 : vector<24x32xf32>
    %360 = arith.addf %335, %359 : vector<24x32xf32>
    %cst_113 = arith.constant 3.000000e+00 : f32
    %361 = vector.broadcast %cst_113 : f32 to vector<24x32xf32>
    %362 = arith.mulf %361, %350 : vector<24x32xf32>
    %363 = arith.addf %360, %362 : vector<24x32xf32>
    %364 = arith.addf %363, %357 : vector<24x32xf32>
    %cst_114 = arith.constant 1.000000e-01 : f32
    %365 = vector.broadcast %cst_114 : f32 to vector<24x32xf32>
    %366 = arith.mulf %365, %364 : vector<24x32xf32>
    %cst_115 = arith.constant 8.000000e+00 : f32
    %367 = vector.broadcast %cst_115 : f32 to vector<24x32xf32>
    %368 = arith.divf %366, %367 : vector<24x32xf32>
    %369 = arith.addf %300, %368 : vector<24x32xf32>
    %cst_116 = arith.constant dense<0.000000e+00> : vector<24x4xf32>
    %370 = tpu.matmul %369, %3, %cst_116 {dimension_numbers = #tpu.dot_dimension_numbers<[1], [0], [0], [1], [0, 0, 1, 1], [], []>} : vector<24x32xf32>, vector<32x4xf32>, vector<24x4xf32> -> vector<24x4xf32>
    %371 = vector.broadcast %4 : vector<1x4xf32> to vector<24x4xf32>
    %372 = arith.addf %370, %371 : vector<24x4xf32>
    %cst_117 = arith.constant 0.000000e+00 : f32
    %373 = vector.broadcast %cst_117 : f32 to vector<24x4xf32>
    %374 = arith.maximumf %372, %373 : vector<24x4xf32>
    %375 = vector.broadcast %5 : vector<1x4xf32> to vector<24x4xf32>
    %376 = arith.mulf %374, %375 : vector<24x4xf32>
    %cst_118 = arith.constant dense<0.000000e+00> : vector<24xf32>
    %377 = vector.multi_reduction <add>, %376, %cst_118 [1] : vector<24x4xf32> to vector<24xf32>
    %378 = vector.shape_cast %377 : vector<24xf32> to vector<24x1xf32>
    %379 = vector.broadcast %6 : f32 to vector<24x1xf32>
    %380 = arith.addf %378, %379 : vector<24x1xf32>
    %381 = vector.extract_strided_slice %380 {offsets = [0, 0], sizes = [8, 1], strides = [1, 1]} : vector<24x1xf32> to vector<8x1xf32>
    %382 = vector.extract_strided_slice %380 {offsets = [8, 0], sizes = [8, 1], strides = [1, 1]} : vector<24x1xf32> to vector<8x1xf32>
    %383 = vector.extract_strided_slice %380 {offsets = [16, 0], sizes = [8, 1], strides = [1, 1]} : vector<24x1xf32> to vector<8x1xf32>
    %384 = arith.maximumf %381, %382 : vector<8x1xf32>
    %385 = arith.maximumf %384, %383 : vector<8x1xf32>
    %386 = arith.subf %381, %385 : vector<8x1xf32>
    %387 = math.exp %386 : vector<8x1xf32>
    %388 = arith.subf %382, %385 : vector<8x1xf32>
    %389 = math.exp %388 : vector<8x1xf32>
    %390 = arith.subf %383, %385 : vector<8x1xf32>
    %391 = math.exp %390 : vector<8x1xf32>
    %392 = arith.addf %387, %389 : vector<8x1xf32>
    %393 = arith.addf %392, %391 : vector<8x1xf32>
    %cst_119 = arith.constant 1.000000e+00 : f32
    %394 = vector.broadcast %cst_119 : f32 to vector<8x1xf32>
    %395 = arith.divf %394, %393 : vector<8x1xf32>
    %396 = arith.mulf %387, %395 : vector<8x1xf32>
    %397 = arith.mulf %389, %395 : vector<8x1xf32>
    %398 = arith.mulf %391, %395 : vector<8x1xf32>
    %399 = tpu.concatenate %396, %397, %398 in 1 : vector<8x1xf32>, vector<8x1xf32>, vector<8x1xf32> -> vector<8x3xf32>
    %c5 = arith.constant 5 : index
    %c0_120 = arith.constant 0 : index
    %c0_121 = arith.constant 0 : index
    %400 = vector.load %arg10[%c5, %c0_120, %c0_121] : memref<8x8x3xf32, #tpu.memory_space<vmem>>, vector<1x8x3xf32>
    %401 = vector.shape_cast %400 : vector<1x8x3xf32> to vector<8x3xf32>
    %402 = vector.shape_cast %399 : vector<8x3xf32> to vector<1x8x3xf32>
    tpu.vector_store %arg10[%c5, %c0_120, %c0_121], %402 {strides = array<i32>} : memref<8x8x3xf32, #tpu.memory_space<vmem>>, vector<1x8x3xf32>,
    %cst_122 = arith.constant dense<0.000000e+00> : vector<24x32xf32>
    %403 = tpu.matmul %369, %2, %cst_122 {dimension_numbers = #tpu.dot_dimension_numbers<[1], [0], [0], [1], [0, 0, 1, 1], [], []>} : vector<24x32xf32>, vector<32x32xf32>, vector<24x32xf32> -> vector<24x32xf32>
    %404 = math.tanh %403 : vector<24x32xf32>
    %cst_123 = arith.constant 1.000000e-01 : f32
    %405 = vector.broadcast %cst_123 : f32 to vector<24x32xf32>
    %406 = arith.mulf %405, %404 : vector<24x32xf32>
    %cst_124 = arith.constant 3.000000e+00 : f32
    %407 = vector.broadcast %cst_124 : f32 to vector<24x32xf32>
    %408 = arith.divf %406, %407 : vector<24x32xf32>
    %409 = arith.addf %369, %408 : vector<24x32xf32>
    %cst_125 = arith.constant dense<0.000000e+00> : vector<24x32xf32>
    %410 = tpu.matmul %409, %2, %cst_125 {dimension_numbers = #tpu.dot_dimension_numbers<[1], [0], [0], [1], [0, 0, 1, 1], [], []>} : vector<24x32xf32>, vector<32x32xf32>, vector<24x32xf32> -> vector<24x32xf32>
    %411 = math.tanh %410 : vector<24x32xf32>
    %cst_126 = arith.constant 3.000000e+00 : f32
    %412 = vector.broadcast %cst_126 : f32 to vector<24x32xf32>
    %413 = arith.divf %404, %412 : vector<24x32xf32>
    %414 = arith.subf %411, %413 : vector<24x32xf32>
    %cst_127 = arith.constant 1.000000e-01 : f32
    %415 = vector.broadcast %cst_127 : f32 to vector<24x32xf32>
    %416 = arith.mulf %415, %414 : vector<24x32xf32>
    %417 = arith.addf %369, %416 : vector<24x32xf32>
    %cst_128 = arith.constant dense<0.000000e+00> : vector<24x32xf32>
    %418 = tpu.matmul %417, %2, %cst_128 {dimension_numbers = #tpu.dot_dimension_numbers<[1], [0], [0], [1], [0, 0, 1, 1], [], []>} : vector<24x32xf32>, vector<32x32xf32>, vector<24x32xf32> -> vector<24x32xf32>
    %419 = math.tanh %418 : vector<24x32xf32>
    %420 = arith.subf %404, %411 : vector<24x32xf32>
    %421 = arith.addf %420, %419 : vector<24x32xf32>
    %cst_129 = arith.constant 1.000000e-01 : f32
    %422 = vector.broadcast %cst_129 : f32 to vector<24x32xf32>
    %423 = arith.mulf %422, %421 : vector<24x32xf32>
    %424 = arith.addf %369, %423 : vector<24x32xf32>
    %cst_130 = arith.constant dense<0.000000e+00> : vector<24x32xf32>
    %425 = tpu.matmul %424, %2, %cst_130 {dimension_numbers = #tpu.dot_dimension_numbers<[1], [0], [0], [1], [0, 0, 1, 1], [], []>} : vector<24x32xf32>, vector<32x32xf32>, vector<24x32xf32> -> vector<24x32xf32>
    %426 = math.tanh %425 : vector<24x32xf32>
    %cst_131 = arith.constant 3.000000e+00 : f32
    %427 = vector.broadcast %cst_131 : f32 to vector<24x32xf32>
    %428 = arith.mulf %427, %411 : vector<24x32xf32>
    %429 = arith.addf %404, %428 : vector<24x32xf32>
    %cst_132 = arith.constant 3.000000e+00 : f32
    %430 = vector.broadcast %cst_132 : f32 to vector<24x32xf32>
    %431 = arith.mulf %430, %419 : vector<24x32xf32>
    %432 = arith.addf %429, %431 : vector<24x32xf32>
    %433 = arith.addf %432, %426 : vector<24x32xf32>
    %cst_133 = arith.constant 1.000000e-01 : f32
    %434 = vector.broadcast %cst_133 : f32 to vector<24x32xf32>
    %435 = arith.mulf %434, %433 : vector<24x32xf32>
    %cst_134 = arith.constant 8.000000e+00 : f32
    %436 = vector.broadcast %cst_134 : f32 to vector<24x32xf32>
    %437 = arith.divf %435, %436 : vector<24x32xf32>
    %438 = arith.addf %369, %437 : vector<24x32xf32>
    %cst_135 = arith.constant dense<0.000000e+00> : vector<24x4xf32>
    %439 = tpu.matmul %438, %3, %cst_135 {dimension_numbers = #tpu.dot_dimension_numbers<[1], [0], [0], [1], [0, 0, 1, 1], [], []>} : vector<24x32xf32>, vector<32x4xf32>, vector<24x4xf32> -> vector<24x4xf32>
    %440 = vector.broadcast %4 : vector<1x4xf32> to vector<24x4xf32>
    %441 = arith.addf %439, %440 : vector<24x4xf32>
    %cst_136 = arith.constant 0.000000e+00 : f32
    %442 = vector.broadcast %cst_136 : f32 to vector<24x4xf32>
    %443 = arith.maximumf %441, %442 : vector<24x4xf32>
    %444 = vector.broadcast %5 : vector<1x4xf32> to vector<24x4xf32>
    %445 = arith.mulf %443, %444 : vector<24x4xf32>
    %cst_137 = arith.constant dense<0.000000e+00> : vector<24xf32>
    %446 = vector.multi_reduction <add>, %445, %cst_137 [1] : vector<24x4xf32> to vector<24xf32>
    %447 = vector.shape_cast %446 : vector<24xf32> to vector<24x1xf32>
    %448 = vector.broadcast %6 : f32 to vector<24x1xf32>
    %449 = arith.addf %447, %448 : vector<24x1xf32>
    %450 = vector.extract_strided_slice %449 {offsets = [0, 0], sizes = [8, 1], strides = [1, 1]} : vector<24x1xf32> to vector<8x1xf32>
    %451 = vector.extract_strided_slice %449 {offsets = [8, 0], sizes = [8, 1], strides = [1, 1]} : vector<24x1xf32> to vector<8x1xf32>
    %452 = vector.extract_strided_slice %449 {offsets = [16, 0], sizes = [8, 1], strides = [1, 1]} : vector<24x1xf32> to vector<8x1xf32>
    %453 = arith.maximumf %450, %451 : vector<8x1xf32>
    %454 = arith.maximumf %453, %452 : vector<8x1xf32>
    %455 = arith.subf %450, %454 : vector<8x1xf32>
    %456 = math.exp %455 : vector<8x1xf32>
    %457 = arith.subf %451, %454 : vector<8x1xf32>
    %458 = math.exp %457 : vector<8x1xf32>
    %459 = arith.subf %452, %454 : vector<8x1xf32>
    %460 = math.exp %459 : vector<8x1xf32>
    %461 = arith.addf %456, %458 : vector<8x1xf32>
    %462 = arith.addf %461, %460 : vector<8x1xf32>
    %cst_138 = arith.constant 1.000000e+00 : f32
    %463 = vector.broadcast %cst_138 : f32 to vector<8x1xf32>
    %464 = arith.divf %463, %462 : vector<8x1xf32>
    %465 = arith.mulf %456, %464 : vector<8x1xf32>
    %466 = arith.mulf %458, %464 : vector<8x1xf32>
    %467 = arith.mulf %460, %464 : vector<8x1xf32>
    %468 = tpu.concatenate %465, %466, %467 in 1 : vector<8x1xf32>, vector<8x1xf32>, vector<8x1xf32> -> vector<8x3xf32>
    %c6 = arith.constant 6 : index
    %c0_139 = arith.constant 0 : index
    %c0_140 = arith.constant 0 : index
    %469 = vector.load %arg10[%c6, %c0_139, %c0_140] : memref<8x8x3xf32, #tpu.memory_space<vmem>>, vector<1x8x3xf32>
    %470 = vector.shape_cast %469 : vector<1x8x3xf32> to vector<8x3xf32>
    %471 = vector.shape_cast %468 : vector<8x3xf32> to vector<1x8x3xf32>
    tpu.vector_store %arg10[%c6, %c0_139, %c0_140], %471 {strides = array<i32>} : memref<8x8x3xf32, #tpu.memory_space<vmem>>, vector<1x8x3xf32>,
    %cst_141 = arith.constant dense<0.000000e+00> : vector<24x32xf32>
    %472 = tpu.matmul %438, %2, %cst_141 {dimension_numbers = #tpu.dot_dimension_numbers<[1], [0], [0], [1], [0, 0, 1, 1], [], []>} : vector<24x32xf32>, vector<32x32xf32>, vector<24x32xf32> -> vector<24x32xf32>
    %473 = math.tanh %472 : vector<24x32xf32>
    %cst_142 = arith.constant 1.000000e-01 : f32
    %474 = vector.broadcast %cst_142 : f32 to vector<24x32xf32>
    %475 = arith.mulf %474, %473 : vector<24x32xf32>
    %cst_143 = arith.constant 3.000000e+00 : f32
    %476 = vector.broadcast %cst_143 : f32 to vector<24x32xf32>
    %477 = arith.divf %475, %476 : vector<24x32xf32>
    %478 = arith.addf %438, %477 : vector<24x32xf32>
    %cst_144 = arith.constant dense<0.000000e+00> : vector<24x32xf32>
    %479 = tpu.matmul %478, %2, %cst_144 {dimension_numbers = #tpu.dot_dimension_numbers<[1], [0], [0], [1], [0, 0, 1, 1], [], []>} : vector<24x32xf32>, vector<32x32xf32>, vector<24x32xf32> -> vector<24x32xf32>
    %480 = math.tanh %479 : vector<24x32xf32>
    %cst_145 = arith.constant 3.000000e+00 : f32
    %481 = vector.broadcast %cst_145 : f32 to vector<24x32xf32>
    %482 = arith.divf %473, %481 : vector<24x32xf32>
    %483 = arith.subf %480, %482 : vector<24x32xf32>
    %cst_146 = arith.constant 1.000000e-01 : f32
    %484 = vector.broadcast %cst_146 : f32 to vector<24x32xf32>
    %485 = arith.mulf %484, %483 : vector<24x32xf32>
    %486 = arith.addf %438, %485 : vector<24x32xf32>
    %cst_147 = arith.constant dense<0.000000e+00> : vector<24x32xf32>
    %487 = tpu.matmul %486, %2, %cst_147 {dimension_numbers = #tpu.dot_dimension_numbers<[1], [0], [0], [1], [0, 0, 1, 1], [], []>} : vector<24x32xf32>, vector<32x32xf32>, vector<24x32xf32> -> vector<24x32xf32>
    %488 = math.tanh %487 : vector<24x32xf32>
    %489 = arith.subf %473, %480 : vector<24x32xf32>
    %490 = arith.addf %489, %488 : vector<24x32xf32>
    %cst_148 = arith.constant 1.000000e-01 : f32
    %491 = vector.broadcast %cst_148 : f32 to vector<24x32xf32>
    %492 = arith.mulf %491, %490 : vector<24x32xf32>
    %493 = arith.addf %438, %492 : vector<24x32xf32>
    %cst_149 = arith.constant dense<0.000000e+00> : vector<24x32xf32>
    %494 = tpu.matmul %493, %2, %cst_149 {dimension_numbers = #tpu.dot_dimension_numbers<[1], [0], [0], [1], [0, 0, 1, 1], [], []>} : vector<24x32xf32>, vector<32x32xf32>, vector<24x32xf32> -> vector<24x32xf32>
    %495 = math.tanh %494 : vector<24x32xf32>
    %cst_150 = arith.constant 3.000000e+00 : f32
    %496 = vector.broadcast %cst_150 : f32 to vector<24x32xf32>
    %497 = arith.mulf %496, %480 : vector<24x32xf32>
    %498 = arith.addf %473, %497 : vector<24x32xf32>
    %cst_151 = arith.constant 3.000000e+00 : f32
    %499 = vector.broadcast %cst_151 : f32 to vector<24x32xf32>
    %500 = arith.mulf %499, %488 : vector<24x32xf32>
    %501 = arith.addf %498, %500 : vector<24x32xf32>
    %502 = arith.addf %501, %495 : vector<24x32xf32>
    %cst_152 = arith.constant 1.000000e-01 : f32
    %503 = vector.broadcast %cst_152 : f32 to vector<24x32xf32>
    %504 = arith.mulf %503, %502 : vector<24x32xf32>
    %cst_153 = arith.constant 8.000000e+00 : f32
    %505 = vector.broadcast %cst_153 : f32 to vector<24x32xf32>
    %506 = arith.divf %504, %505 : vector<24x32xf32>
    %507 = arith.addf %438, %506 : vector<24x32xf32>
    %cst_154 = arith.constant dense<0.000000e+00> : vector<24x4xf32>
    %508 = tpu.matmul %507, %3, %cst_154 {dimension_numbers = #tpu.dot_dimension_numbers<[1], [0], [0], [1], [0, 0, 1, 1], [], []>} : vector<24x32xf32>, vector<32x4xf32>, vector<24x4xf32> -> vector<24x4xf32>
    %509 = vector.broadcast %4 : vector<1x4xf32> to vector<24x4xf32>
    %510 = arith.addf %508, %509 : vector<24x4xf32>
    %cst_155 = arith.constant 0.000000e+00 : f32
    %511 = vector.broadcast %cst_155 : f32 to vector<24x4xf32>
    %512 = arith.maximumf %510, %511 : vector<24x4xf32>
    %513 = vector.broadcast %5 : vector<1x4xf32> to vector<24x4xf32>
    %514 = arith.mulf %512, %513 : vector<24x4xf32>
    %cst_156 = arith.constant dense<0.000000e+00> : vector<24xf32>
    %515 = vector.multi_reduction <add>, %514, %cst_156 [1] : vector<24x4xf32> to vector<24xf32>
    %516 = vector.shape_cast %515 : vector<24xf32> to vector<24x1xf32>
    %517 = vector.broadcast %6 : f32 to vector<24x1xf32>
    %518 = arith.addf %516, %517 : vector<24x1xf32>
    %519 = vector.extract_strided_slice %518 {offsets = [0, 0], sizes = [8, 1], strides = [1, 1]} : vector<24x1xf32> to vector<8x1xf32>
    %520 = vector.extract_strided_slice %518 {offsets = [8, 0], sizes = [8, 1], strides = [1, 1]} : vector<24x1xf32> to vector<8x1xf32>
    %521 = vector.extract_strided_slice %518 {offsets = [16, 0], sizes = [8, 1], strides = [1, 1]} : vector<24x1xf32> to vector<8x1xf32>
    %522 = arith.maximumf %519, %520 : vector<8x1xf32>
    %523 = arith.maximumf %522, %521 : vector<8x1xf32>
    %524 = arith.subf %519, %523 : vector<8x1xf32>
    %525 = math.exp %524 : vector<8x1xf32>
    %526 = arith.subf %520, %523 : vector<8x1xf32>
    %527 = math.exp %526 : vector<8x1xf32>
    %528 = arith.subf %521, %523 : vector<8x1xf32>
    %529 = math.exp %528 : vector<8x1xf32>
    %530 = arith.addf %525, %527 : vector<8x1xf32>
    %531 = arith.addf %530, %529 : vector<8x1xf32>
    %cst_157 = arith.constant 1.000000e+00 : f32
    %532 = vector.broadcast %cst_157 : f32 to vector<8x1xf32>
    %533 = arith.divf %532, %531 : vector<8x1xf32>
    %534 = arith.mulf %525, %533 : vector<8x1xf32>
    %535 = arith.mulf %527, %533 : vector<8x1xf32>
    %536 = arith.mulf %529, %533 : vector<8x1xf32>
    %537 = tpu.concatenate %534, %535, %536 in 1 : vector<8x1xf32>, vector<8x1xf32>, vector<8x1xf32> -> vector<8x3xf32>
    %c7 = arith.constant 7 : index
    %c0_158 = arith.constant 0 : index
    %c0_159 = arith.constant 0 : index
    %538 = vector.load %arg10[%c7, %c0_158, %c0_159] : memref<8x8x3xf32, #tpu.memory_space<vmem>>, vector<1x8x3xf32>
    %539 = vector.shape_cast %538 : vector<1x8x3xf32> to vector<8x3xf32>
    %540 = vector.shape_cast %537 : vector<8x3xf32> to vector<1x8x3xf32>
    tpu.vector_store %arg10[%c7, %c0_158, %c0_159], %540 {strides = array<i32>} : memref<8x8x3xf32, #tpu.memory_space<vmem>>, vector<1x8x3xf32>,
    return
  }
}

</mosaic_0001>

<bundles_post_ra>
// kernel: tpu_custom_call.1
= control target key start
LH: loop header
LB: loop body
LE: loop exit
PB: predicated region body
PF: predicated region fallthrough
CT: control target
= control target key end

     0   :  { %v5286_v0 = vmov 0   ;;  %v5287_v2 = vmov 0.0   ;;  %vm5288_vm0 = vmmov 0   ;;  %vm86_vm1 = vcmask 261120   ;;  %s6567_s0 = inlined_call_operand.vmem [shape: f32[8,1], index: 0, kind: input, shape index: {}]   ;;  %s6568_s1 = inlined_call_operand.vmem [shape: f32[8,1], index: 1, kind: input, shape index: {}]   ;;  %s6569_s6 = inlined_call_operand.vmem [shape: f32[32,4], index: 6, kind: input, shape index: {}]   ;;  %s6570_s5 = inlined_call_operand.vmem [shape: f32[32,32], index: 5, kind: input, shape index: {}]   ;;  %s6571_s3 = inlined_call_operand.vmem [shape: f32[1,32], index: 3, kind: input, shape index: {}]   ;;  %s6572_s4 = inlined_call_operand.vmem [shape: f32[1,32], index: 4, kind: input, shape index: {}]   ;;  %s6573_s2 = inlined_call_operand.vmem [shape: f32[8,32], index: 2, kind: input, shape index: {}]   ;;  %s6574_s7 = inlined_call_operand.vmem [shape: f32[1,4], index: 7, kind: input, shape index: {}]   ;;  %s6575_s8 = inlined_call_operand.vmem [shape: f32[1,4], index: 8, kind: input, shape index: {}]   ;;  %s6576_s9 = inlined_call_operand.<no memory space> [shape: f32[1,1], index: 9, kind: input, shape index: {}]   ;;  %s6577_s10 = inlined_call_operand.vmem [shape: f32[8,8,3], index: 10, kind: output, shape index: {}]  }
   0x1   :  { %5033 = vset.pattern.permute.xlu0 %v5286_v0  ;;  %v49_v1 = vld [vmem:[%s6567_s0] sm:$0xff]  ;;  %4418 = vmatprep.subr.mxu0 %v5287_v2  ;;  %v5351_v3 = vld [vmem:[%s6569_s6 + $0x18] sm:$0xff]  ;;  %v5367_v6 = vld [vmem:[%s6569_s6 + $0x10] sm:$0xff]  ;;  %vm188_vm2 = vcmask 31744   ;;  %v5518_v62 = vstv %s6576_s9  ;;  %vm220_vm3 = vcmask 7168   ;;  %vm222_vm4 = vcmask 15360  }
   0x2   :  { %52 = vperm.xlu0 %5033, %v49_v1   ;;  %4435 = vmatprep.subr.mxu1 %v5287_v2  ;;  %v5357_v4 = vld [vmem:[%s6570_s5 + $0x18] sm:$0xff]  ;;  %v70_v5 = vld [vmem:[%s6568_s1] sm:$0xff]  ;;  %v5372_v7 = vld [vmem:[%s6570_s5 + $0x10] sm:$0xff]  ;;  %vm224_vm5 = vcmask 23552  }
   0x3   :  { %4419 = vmatpush3.msra.mxu0 %v5351_v3  ;;  %4436 = vmatpush3.msra.mxu1 %v5357_v4  ;;  %v5379_v8 = vld [vmem:[%s6569_s6 + $0x8] sm:$0xff]  ;;  %v5392_v10 = vld [vmem:[%s6569_s6] sm:$0xff] }
   0x4   :  { %4420 = vmatprep.subr.mxu0 %v5287_v2  ;;  %4437 = vmatprep.subr.mxu1 %v5287_v2  ;;  %v5386_v9 = vld [vmem:[%s6570_s5 + $0x8] sm:$0xff]  ;;  %v5399_v11 = vld [vmem:[%s6570_s5] sm:$0xff] }
   0x5   :  { %4421 = vmatpush3.msra.mxu0 %v5367_v6  ;;  %4438 = vmatpush3.msra.mxu1 %v5372_v7  ;;  %v4047_v12 = vld [vmem:[%s6571_s3] ss:$0 sm:$0xff] }
   0x6   :  { %73 = vperm.xlu0 %5033, %v70_v5   ;;  %4422 = vmatprep.subr.mxu0 %v5287_v2  ;;  %v4048_v13 = vld [vmem:[%s6572_s4] ss:$0 sm:$0xff] }
   0x7   :  { %4439 = vmatprep.subr.mxu1 %v5287_v2  ;;  %4423 = vmatpush3.msra.mxu0 %v5379_v8  ;;  %v5445_v22 = vld [vmem:[%s6573_s2] sm:$0xff] }
   0x8   :  { %4440 = vmatpush3.msra.mxu1 %v5386_v9  ;;  %4424 = vmatprep.subr.mxu0 %v5287_v2  ;;  %v5470_v23 = vld [vmem:[%s6574_s7] ss:$0 sm:$0xff] }
   0x9   :  { %4441 = vmatprep.subr.mxu1 %v5287_v2  ;;  %4425 = vmatpush3.msra.mxu0 %v5392_v10  ;;  %v5476_v29 = vld [vmem:[%s6575_s8] ss:$0 sm:$0xff] }
   0xa   :  { %4426 = vmatprep.mubr.msk.f32.mxu0 %vm5288_vm0, %v5287_v2  ;;  %4442 = vmatpush3.msra.mxu1 %v5399_v11 }
   0xb   :  { %4443 = vmatprep.mubr.msk.f32.mxu1 %vm5288_vm0, %v5287_v2  ;;  %4452 = vmatprep.subr.mxu0 %v5287_v2 }
   0xc   :  { %4469 = vmatprep.subr.mxu1 %v5287_v2 }
  0x7d   :  { %v53_v14 = vpop.permute.xlu0 %52 }
  0x7e   :  { %v61_v15 = vmul.f32 %v4047_v12, %v53_v14 }
  0x80   :  { %v68_v16 = vadd.f32 %v4048_v13, %v61_v15 }
  0x81   :  { %v74_v17 = vpop.permute.xlu0 %73 }
  0x82   :  { %v5418_v18 = vmax.f32 %v68_v16, 0.0  ;;  %v76_v19 = vmul.f32 %v4047_v12, %v74_v17 }
  0x84   :  { %v77_v20 = vadd.f32 %v4048_v13, %v76_v19  ;;  %4427 = vmatmul.mubr.msk.f32.vlgmr.msra.gmra.mxu0 %vm86_vm1, %v5418_v18  ;;  %4444 = vmatmul.mubr.msk.f32.vlgmr.msra.gmra.mxu1 %vm86_vm1, %v5418_v18 }
  0x85   :  { %4429 = vmatprep.mubr.msk.f32.mxu0 %vm5288_vm0, %v5287_v2  ;;  %4446 = vmatprep.mubr.msk.f32.mxu1 %vm5288_vm0, %v5287_v2 }
  0x86   :  { %v5428_v21 = vmax.f32 %v77_v20, 0.0  ;;  %4453 = vmatpush3.msra.mxu0 %v5357_v4  ;;  %4470 = vmatpush3.msra.mxu1 %v5357_v4 }
  0x87   :  { %4454 = vmatprep.subr.mxu0 %v5287_v2  ;;  %4471 = vmatprep.subr.mxu1 %v5287_v2 }
  0x88   :  { %4430 = vmatmul.mubr.msk.f32.gmra.mxu0 %vm86_vm1, %v5428_v21  ;;  %4447 = vmatmul.mubr.msk.f32.gmra.mxu1 %vm86_vm1, %v5428_v21 }
  0x89   :  { %4432 = vmatprep.mubr.msk.f32.mxu0 %vm5288_vm0, %v5287_v2  ;;  %4449 = vmatprep.mubr.msk.f32.mxu1 %vm5288_vm0, %v5287_v2 }
  0x8a   :  { %4455 = vmatpush3.msra.mxu0 %v5372_v7  ;;  %4472 = vmatpush3.msra.mxu1 %v5372_v7 }
  0x8b   :  { %4456 = vmatprep.subr.mxu0 %v5287_v2  ;;  %4473 = vmatprep.subr.mxu1 %v5287_v2 }
  0x8c   :  { %4433 = vmatmul.mubr.msk.f32.gmra.mxu0 %vm86_vm1, %v5445_v22  ;;  %4450 = vmatmul.mubr.msk.f32.gmra.mxu1 %vm86_vm1, %v5445_v22 }
  0x8d   :  { %4457 = vmatpush3.msra.mxu0 %v5386_v9  ;;  %4460 = vmatprep.mubr.msk.f32.mxu0 %vm5288_vm0, %v5287_v2 }
  0x8e   :  { %4458 = vmatprep.subr.mxu0 %v5287_v2  ;;  %4474 = vmatpush3.msra.mxu1 %v5386_v9 }
  0x8f   :  { %4459 = vmatpush3.msra.mxu0 %v5399_v11  ;;  %4475 = vmatprep.subr.mxu1 %v5287_v2 }
  0x90   :  { %4476 = vmatpush3.msra.mxu1 %v5399_v11  ;;  %4477 = vmatprep.mubr.msk.f32.mxu1 %vm5288_vm0, %v5287_v2 }
  0x91   :  { %4486 = vmatprep.subr.mxu0 %v5287_v2  ;;  %4503 = vmatprep.subr.mxu1 %v5287_v2 }
 0x144   :  { %v162_v24 = vpop.f32.mrf.mxu0  ;;  %v292_v25 = vpop.f32.mrf.mxu1 }
 0x145   :  { %v163_v26 = vadd.f32 %v5470_v23, %v162_v24  ;;  %5034 = vtanh.f32 %v292_v25 }
 0x146   :  { %v4428_v27 = vpop.f32.mrf.mxu0  ;;  %v4445_v28 = vpop.f32.mrf.mxu1 }
 0x147   :  { %v176_v30 = vmax.f32 %v163_v26, 0.0 }
 0x148   :  { %v167_v31 = vpop.f32.mrf.mxu0  ;;  %v297_v32 = vpop.f32.mrf.mxu1 }
 0x149   :  { %v168_v33 = vadd.f32 %v5470_v23, %v167_v31  ;;  %5036 = vtanh.f32 %v297_v32  ;;  %v185_v34 = vmul.f32 %v5476_v29, %v176_v30 }
 0x14a   :  { %v4431_v35 = vpop.f32.mrf.mxu0  ;;  %v4448_v36 = vpop.f32.mrf.mxu1 }
 0x14b   :  { %v177_v37 = vmax.f32 %v168_v33, 0.0  ;;  %v189_v38 = vsel %vm188_vm2, %v185_v34, 0.0 }
 0x14c   :  { %190 = vadd.xlane.f32.xlu1 %v189_v38  ;;  %v172_v39 = vpop.f32.mrf.mxu0  ;;  %v302_v40 = vpop.f32.mrf.mxu1 }
 0x14d   :  { %v173_v41 = vadd.f32 %v5470_v23, %v172_v39  ;;  %5038 = vtanh.f32 %v302_v40  ;;  %v186_v42 = vmul.f32 %v5476_v29, %v177_v37 }
 0x14e   :  { %v4451_v43 = vpop.f32.mrf.mxu1  ;;  %v4434_v44 = vpop.f32.mrf.mxu0 }
 0x14f   :  { %v178_v45 = vmax.f32 %v173_v41, 0.0  ;;  %v192_v46 = vsel %vm188_vm2, %v186_v42, 0.0 }
 0x150   :  { %193 = vadd.xlane.f32.xlu1 %v192_v46 }
 0x151   :  { %v187_v47 = vmul.f32 %v5476_v29, %v178_v45 }
 0x152   :  { %v5485_v48 = vpop.eup %5034 }
 0x153   :  { %v195_v49 = vsel %vm188_vm2, %v187_v47, 0.0  ;;  %v309_v50 = vmul.f32 0.1, %v5485_v48  ;;  %v411_v43 = vmul.f32 0.33333334, %v5485_v48 }
 0x154   :  { %196 = vadd.xlane.f32.xlu1 %v195_v49 }
 0x155   :  { %v313_v51 = vmul.f32 0.33333334, %v309_v50 }
 0x156   :  { %v5489_v52 = vpop.eup %5036 }
 0x157   :  { %v316_v53 = vadd.f32 %v313_v51, %v5418_v18  ;;  %v310_v54 = vmul.f32 0.1, %v5489_v52  ;;  %v412_v47 = vmul.f32 0.33333334, %v5489_v52 }
 0x159   :  { %4461 = vmatmul.mubr.msk.f32.vlgmr.msra.gmra.mxu0 %vm86_vm1, %v316_v53  ;;  %v314_v55 = vmul.f32 0.33333334, %v310_v54 }
 0x15a   :  { %v5494_v56 = vpop.eup %5038  ;;  %4463 = vmatprep.mubr.msk.f32.mxu0 %vm5288_vm0, %v5287_v2  ;;  %4487 = vmatpush3.msra.mxu0 %v5357_v4 }
 0x15b   :  { %v317_v57 = vadd.f32 %v314_v55, %v5428_v21  ;;  %v311_v58 = vmul.f32 0.1, %v5494_v56  ;;  %4488 = vmatprep.subr.mxu0 %v5287_v2  ;;  %v413_v54 = vmul.f32 0.33333334, %v5494_v56 }
 0x15c   :  { %4489 = vmatpush3.msra.mxu0 %v5372_v7 }
 0x15d   :  { %4464 = vmatmul.mubr.msk.f32.gmra.mxu0 %vm86_vm1, %v317_v57  ;;  %v315_v59 = vmul.f32 0.33333334, %v311_v58  ;;  %4490 = vmatprep.subr.mxu0 %v5287_v2 }
 0x15e   :  { %4466 = vmatprep.mubr.msk.f32.mxu0 %vm5288_vm0, %v5287_v2  ;;  %4491 = vmatpush3.msra.mxu0 %v5386_v9 }
 0x15f   :  { %v318_v60 = vadd.f32 %v315_v59, %v5445_v22  ;;  %4492 = vmatprep.subr.mxu0 %v5287_v2 }
 0x160   :  { %4493 = vmatpush3.msra.mxu0 %v5399_v11 }
 0x161   :  { %4467 = vmatmul.mubr.msk.f32.gmra.mxu0 %vm86_vm1, %v318_v60  ;;  %4520 = vmatprep.subr.mxu0 %v5287_v2 }
 0x162   :  { %4494 = vmatprep.mubr.msk.f32.mxu0 %vm5288_vm0, %v5287_v2 }
 0x1d5   :  { %v191_v61 = vpop.xlane.xlu1 %190 }
 0x1d6   :  { %v199_v1 = vadd.f32 %v5518_v62, %v191_v61 }
 0x1d9   :  { %v194_v63 = vpop.xlane.xlu1 %193 }
 0x1da   :  { %v200_v0 = vadd.f32 %v5518_v62, %v194_v63 }
 0x1dc   :  { %v202_v12 = vmax.f32 %v199_v1, %v200_v0 }
 0x1dd   :  { %v197_v5 = vpop.xlane.xlu1 %196 }
 0x1de   :  { %v201_v13 = vadd.f32 %v5518_v62, %v197_v5 }
 0x1e0   :  { %v203_v14 = vmax.f32 %v202_v12, %v201_v13 }
 0x1e2   :  { %v204_v15 = vsub.f32 %v199_v1, %v203_v14  ;;  %v207_v16 = vsub.f32 %v200_v0, %v203_v14  ;;  %v210_v17 = vsub.f32 %v201_v13, %v203_v14 }
 0x1e4   :  { %v205_v19 = vmul.f32 1.442695, %v204_v15  ;;  %v208_v20 = vmul.f32 1.442695, %v207_v16  ;;  %v211_v24 = vmul.f32 1.442695, %v210_v17 }
 0x1e6   :  { %5040 = vpow2.f32 %v205_v19 }
 0x1e7   :  { %5042 = vpow2.f32 %v208_v20 }
 0x1e8   :  { %5044 = vpow2.f32 %v211_v24 }
 0x1f3   :  { %v5041_v25 = vpop.eup %5040 }
 0x1f4   :  { %v5043_v26 = vpop.eup %5042 }
 0x1f5   :  { %v213_v27 = vadd.f32 %v5043_v26, %v5041_v25  ;;  %v5045_v28 = vpop.eup %5044 }
 0x1f7   :  { %v214_v30 = vadd.f32 %v5045_v28, %v213_v27 }
 0x1f9   :  { %5046 = vrcp.f32 %v214_v30 }
 0x206   :  { %v5047_v31 = vpop.eup %5046 }
 0x207   :  { %v217_v32 = vmul.f32 %v5047_v31, %v5041_v25  ;;  %v218_v33 = vmul.f32 %v5047_v31, %v5043_v26  ;;  %v219_v34 = vmul.f32 %v5047_v31, %v5045_v28 }
 0x209   :  { %v221_v35 = vsel %vm220_vm3, %v217_v32, %v218_v33 }
 0x20a   :  { %v223_v36 = vsel %vm222_vm4, %v221_v35, %v219_v34 }
 0x20b   :  { %225 = vst.msk [vmem:[%s6577_s10] sm:$0xff] %vm224_vm5, %v223_v36 }
 0x219   :  { %v394_v37 = vpop.f32.mrf.mxu0 }
 0x21a   :  { %5048 = vtanh.f32 %v394_v37 }
 0x21b   :  { %v4462_v38 = vpop.f32.mrf.mxu0 }
 0x21d   :  { %v399_v39 = vpop.f32.mrf.mxu0 }
 0x21e   :  { %5050 = vtanh.f32 %v399_v39 }
 0x21f   :  { %v4465_v40 = vpop.f32.mrf.mxu0 }
 0x221   :  { %v404_v41 = vpop.f32.mrf.mxu0 }
 0x222   :  { %5052 = vtanh.f32 %v404_v41 }
 0x223   :  { %v4468_v42 = vpop.f32.mrf.mxu0 }
 0x227   :  { %v5049_v44 = vpop.eup %5048 }
 0x228   :  { %v414_v45 = vsub.f32 %v5049_v44, %v411_v43  ;;  %v619_v13 = vmul.f32 3.0, %v5049_v44  ;;  %v515_v14 = vsub.f32 %v5485_v48, %v5049_v44 }
 0x22a   :  { %v417_v46 = vmul.f32 0.1, %v414_v45  ;;  %v622_v20 = vadd.f32 %v5485_v48, %v619_v13 }
 0x22b   :  { %v5051_v49 = vpop.eup %5050 }
 0x22c   :  { %v420_v50 = vadd.f32 %v417_v46, %v5418_v18  ;;  %v415_v51 = vsub.f32 %v5051_v49, %v412_v47  ;;  %v620_v16 = vmul.f32 3.0, %v5051_v49  ;;  %v516_v25 = vsub.f32 %v5489_v52, %v5051_v49 }
 0x22e   :  { %4478 = vmatmul.mubr.msk.f32.vlgmr.msra.gmra.mxu1 %vm86_vm1, %v420_v50  ;;  %v418_v53 = vmul.f32 0.1, %v415_v51  ;;  %v623_v28 = vadd.f32 %v5489_v52, %v620_v16 }
 0x22f   :  { %v5053_v55 = vpop.eup %5052  ;;  %4480 = vmatprep.mubr.msk.f32.mxu1 %vm5288_vm0, %v5287_v2  ;;  %4504 = vmatpush3.msra.mxu1 %v5351_v3 }
 0x230   :  { %v421_v57 = vadd.f32 %v418_v53, %v5428_v21  ;;  %v416_v58 = vsub.f32 %v5053_v55, %v413_v54  ;;  %4505 = vmatprep.subr.mxu1 %v5287_v2  ;;  %v621_v33 = vmul.f32 3.0, %v5053_v55  ;;  %v517_v35 = vsub.f32 %v5494_v56, %v5053_v55 }
 0x231   :  { %4506 = vmatpush3.msra.mxu1 %v5367_v6 }
 0x232   :  { %4481 = vmatmul.mubr.msk.f32.gmra.mxu1 %vm86_vm1, %v421_v57  ;;  %v419_v59 = vmul.f32 0.1, %v416_v58  ;;  %4507 = vmatprep.subr.mxu1 %v5287_v2  ;;  %v624_v39 = vadd.f32 %v5494_v56, %v621_v33 }
 0x233   :  { %4483 = vmatprep.mubr.msk.f32.mxu1 %vm5288_vm0, %v5287_v2  ;;  %4508 = vmatpush3.msra.mxu1 %v5379_v8 }
 0x234   :  { %v422_v60 = vadd.f32 %v419_v59, %v5445_v22  ;;  %4509 = vmatprep.subr.mxu1 %v5287_v2 }
 0x235   :  { %4510 = vmatpush3.msra.mxu1 %v5392_v10 }
 0x236   :  { %4484 = vmatmul.mubr.msk.f32.gmra.mxu1 %vm86_vm1, %v422_v60  ;;  %4537 = vmatprep.subr.mxu1 %v5287_v2 }
 0x237   :  { %4511 = vmatprep.mubr.msk.f32.mxu1 %vm5288_vm0, %v5287_v2 }
 0x2ee   :  { %v498_v61 = vpop.f32.mrf.mxu1 }
 0x2ef   :  { %5054 = vtanh.f32 %v498_v61 }
 0x2f0   :  { %v4479_v63 = vpop.f32.mrf.mxu1 }
 0x2f2   :  { %v503_v0 = vpop.f32.mrf.mxu1 }
 0x2f3   :  { %5056 = vtanh.f32 %v503_v0 }
 0x2f4   :  { %v4482_v1 = vpop.f32.mrf.mxu1 }
 0x2f6   :  { %v508_v5 = vpop.f32.mrf.mxu1 }
 0x2f7   :  { %5058 = vtanh.f32 %v508_v5 }
 0x2f8   :  { %v4485_v12 = vpop.f32.mrf.mxu1 }
 0x2fc   :  { %v5055_v15 = vpop.eup %5054 }
 0x2fd   :  { %v518_v17 = vadd.f32 %v5055_v15, %v515_v14  ;;  %v625_v19 = vmul.f32 3.0, %v5055_v15 }
 0x2ff   :  { %v521_v24 = vmul.f32 0.1, %v518_v17  ;;  %v628_v26 = vadd.f32 %v625_v19, %v622_v20 }
 0x300   :  { %v5057_v27 = vpop.eup %5056 }
 0x301   :  { %v524_v30 = vadd.f32 %v521_v24, %v5418_v18  ;;  %v626_v31 = vmul.f32 3.0, %v5057_v27  ;;  %v519_v32 = vadd.f32 %v5057_v27, %v516_v25 }
 0x303   :  { %4495 = vmatmul.mubr.msk.f32.vlgmr.msra.gmra.mxu0 %vm86_vm1, %v524_v30  ;;  %v522_v34 = vmul.f32 0.1, %v519_v32  ;;  %v629_v36 = vadd.f32 %v626_v31, %v623_v28 }
 0x304   :  { %v5059_v37 = vpop.eup %5058  ;;  %4497 = vmatprep.mubr.msk.f32.mxu0 %vm5288_vm0, %v5287_v2  ;;  %4521 = vmatpush3.msra.mxu0 %v5357_v4 }
 0x305   :  { %v627_v48 = vmul.f32 3.0, %v5059_v37  ;;  %v525_v52 = vadd.f32 %v522_v34, %v5428_v21  ;;  %v520_v38 = vadd.f32 %v5059_v37, %v517_v35  ;;  %4522 = vmatprep.subr.mxu0 %v5287_v2 }
 0x306   :  { %4523 = vmatpush3.msra.mxu0 %v5372_v7 }
 0x307   :  { %4498 = vmatmul.mubr.msk.f32.gmra.mxu0 %vm86_vm1, %v525_v52  ;;  %v523_v40 = vmul.f32 0.1, %v520_v38  ;;  %v630_v41 = vadd.f32 %v627_v48, %v624_v39  ;;  %4524 = vmatprep.subr.mxu0 %v5287_v2 }
 0x308   :  { %4500 = vmatprep.mubr.msk.f32.mxu0 %vm5288_vm0, %v5287_v2  ;;  %4525 = vmatpush3.msra.mxu0 %v5386_v9 }
 0x309   :  { %v526_v42 = vadd.f32 %v523_v40, %v5445_v22  ;;  %4526 = vmatprep.subr.mxu0 %v5287_v2 }
 0x30a   :  { %4527 = vmatpush3.msra.mxu0 %v5399_v11 }
 0x30b   :  { %4501 = vmatmul.mubr.msk.f32.gmra.mxu0 %vm86_vm1, %v526_v42  ;;  %4554 = vmatprep.subr.mxu0 %v5287_v2 }
 0x30c   :  { %4528 = vmatprep.mubr.msk.f32.mxu0 %vm5288_vm0, %v5287_v2 }
 0x3c3   :  { %v602_v56 = vpop.f32.mrf.mxu0 }
 0x3c4   :  { %5060 = vtanh.f32 %v602_v56 }
 0x3c5   :  { %v4496_v43 = vpop.f32.mrf.mxu0 }
 0x3c7   :  { %v607_v44 = vpop.f32.mrf.mxu0 }
 0x3c8   :  { %5062 = vtanh.f32 %v607_v44 }
 0x3c9   :  { %v4499_v45 = vpop.f32.mrf.mxu0 }
 0x3cb   :  { %v612_v46 = vpop.f32.mrf.mxu0 }
 0x3cc   :  { %5064 = vtanh.f32 %v612_v46 }
 0x3cd   :  { %v4502_v47 = vpop.f32.mrf.mxu0 }
 0x3d1   :  { %v5061_v49 = vpop.eup %5060 }
 0x3d2   :  { %v631_v50 = vadd.f32 %v5061_v49, %v628_v26 }
 0x3d4   :  { %v634_v51 = vmul.f32 0.1, %v631_v50 }
 0x3d5   :  { %v5063_v53 = vpop.eup %5062 }
 0x3d6   :  { %v638_v54 = vmul.f32 0.125, %v634_v51  ;;  %v632_v55 = vadd.f32 %v5063_v53, %v629_v36 }
 0x3d8   :  { %v635_v57 = vmul.f32 0.1, %v632_v55  ;;  %v5579_v58 = vadd.f32 %v638_v54, %v5418_v18 }
 0x3d9   :  { %v5065_v59 = vpop.eup %5064 }
 0x3da   :  { %v639_v60 = vmul.f32 0.125, %v635_v57  ;;  %v633_v61 = vadd.f32 %v5065_v59, %v630_v41  ;;  %4512 = vmatmul.mubr.msk.f32.vlgmr.msra.gmra.mxu1 %vm86_vm1, %v5579_v58  ;;  %4529 = vmatmul.mubr.msk.f32.vlgmr.msra.gmra.mxu0 %vm86_vm1, %v5579_v58 }
 0x3db   :  { %4514 = vmatprep.mubr.msk.f32.mxu1 %vm5288_vm0, %v5287_v2  ;;  %4531 = vmatprep.mubr.msk.f32.mxu0 %vm5288_vm0, %v5287_v2 }
 0x3dc   :  { %v636_v63 = vmul.f32 0.1, %v633_v61  ;;  %v5590_v0 = vadd.f32 %v639_v60, %v5428_v21  ;;  %4538 = vmatpush3.msra.mxu1 %v5357_v4  ;;  %4555 = vmatpush3.msra.mxu0 %v5357_v4 }
 0x3dd   :  { %4539 = vmatprep.subr.mxu1 %v5287_v2  ;;  %4556 = vmatprep.subr.mxu0 %v5287_v2 }
 0x3de   :  { %v640_v18 = vmul.f32 0.125, %v636_v63  ;;  %4515 = vmatmul.mubr.msk.f32.gmra.mxu1 %vm86_vm1, %v5590_v0  ;;  %4532 = vmatmul.mubr.msk.f32.gmra.mxu0 %vm86_vm1, %v5590_v0 }
 0x3df   :  { %4517 = vmatprep.mubr.msk.f32.mxu1 %vm5288_vm0, %v5287_v2  ;;  %4534 = vmatprep.mubr.msk.f32.mxu0 %vm5288_vm0, %v5287_v2 }
 0x3e0   :  { %v5605_v21 = vadd.f32 %v640_v18, %v5445_v22  ;;  %4540 = vmatpush3.msra.mxu1 %v5372_v7  ;;  %4557 = vmatpush3.msra.mxu0 %v5372_v7 }
 0x3e1   :  { %4541 = vmatprep.subr.mxu1 %v5287_v2  ;;  %4558 = vmatprep.subr.mxu0 %v5287_v2 }
 0x3e2   :  { %4518 = vmatmul.mubr.msk.f32.gmra.mxu1 %vm86_vm1, %v5605_v21  ;;  %4535 = vmatmul.mubr.msk.f32.gmra.mxu0 %vm86_vm1, %v5605_v21 }
 0x3e3   :  { %4542 = vmatpush3.msra.mxu1 %v5386_v9  ;;  %4545 = vmatprep.mubr.msk.f32.mxu1 %vm5288_vm0, %v5287_v2 }
 0x3e4   :  { %4543 = vmatprep.subr.mxu1 %v5287_v2  ;;  %4559 = vmatpush3.msra.mxu0 %v5386_v9 }
 0x3e5   :  { %4544 = vmatpush3.msra.mxu1 %v5399_v11  ;;  %4560 = vmatprep.subr.mxu0 %v5287_v2 }
 0x3e6   :  { %4561 = vmatpush3.msra.mxu0 %v5399_v11  ;;  %4562 = vmatprep.mubr.msk.f32.mxu0 %vm5288_vm0, %v5287_v2 }
 0x3e7   :  { %4571 = vmatprep.subr.mxu1 %v5287_v2  ;;  %4588 = vmatprep.subr.mxu0 %v5287_v2 }
 0x49a   :  { %v719_v22 = vpop.f32.mrf.mxu1  ;;  %v839_v1 = vpop.f32.mrf.mxu0 }
 0x49b   :  { %v720_v5 = vadd.f32 %v5470_v23, %v719_v22  ;;  %5066 = vtanh.f32 %v839_v1 }
 0x49c   :  { %v4513_v12 = vpop.f32.mrf.mxu1  ;;  %v4530_v13 = vpop.f32.mrf.mxu0 }
 0x49d   :  { %v733_v14 = vmax.f32 %v720_v5, 0.0 }
 0x49e   :  { %v724_v15 = vpop.f32.mrf.mxu1  ;;  %v844_v16 = vpop.f32.mrf.mxu0 }
 0x49f   :  { %v725_v17 = vadd.f32 %v5470_v23, %v724_v15  ;;  %5068 = vtanh.f32 %v844_v16  ;;  %v736_v19 = vmul.f32 %v5476_v29, %v733_v14 }
 0x4a0   :  { %v4516_v20 = vpop.f32.mrf.mxu1  ;;  %v4533_v24 = vpop.f32.mrf.mxu0 }
 0x4a1   :  { %v734_v25 = vmax.f32 %v725_v17, 0.0  ;;  %v739_v26 = vsel %vm188_vm2, %v736_v19, 0.0 }
 0x4a2   :  { %740 = vadd.xlane.f32.xlu0 %v739_v26  ;;  %v729_v27 = vpop.f32.mrf.mxu1  ;;  %v849_v28 = vpop.f32.mrf.mxu0 }
 0x4a3   :  { %v730_v30 = vadd.f32 %v5470_v23, %v729_v27  ;;  %5070 = vtanh.f32 %v849_v28  ;;  %v737_v31 = vmul.f32 %v5476_v29, %v734_v25 }
 0x4a4   :  { %v4519_v32 = vpop.f32.mrf.mxu1  ;;  %v4536_v33 = vpop.f32.mrf.mxu0 }
 0x4a5   :  { %v735_v34 = vmax.f32 %v730_v30, 0.0  ;;  %v742_v35 = vsel %vm188_vm2, %v737_v31, 0.0 }
 0x4a6   :  { %743 = vadd.xlane.f32.xlu1 %v742_v35 }
 0x4a7   :  { %v738_v36 = vmul.f32 %v5476_v29, %v735_v34 }
 0x4a8   :  { %v5635_v37 = vpop.eup %5066 }
 0x4a9   :  { %v745_v48 = vsel %vm188_vm2, %v738_v36, 0.0  ;;  %v856_v52 = vmul.f32 0.1, %v5635_v37  ;;  %v957_v32 = vmul.f32 0.33333334, %v5635_v37 }
 0x4aa   :  { %746 = vadd.xlane.f32.xlu0 %v745_v48 }
 0x4ab   :  { %v859_v38 = vmul.f32 0.33333334, %v856_v52 }
 0x4ac   :  { %v5639_v39 = vpop.eup %5068 }
 0x4ad   :  { %v862_v40 = vadd.f32 %v859_v38, %v5579_v58  ;;  %v857_v41 = vmul.f32 0.1, %v5639_v39  ;;  %v958_v36 = vmul.f32 0.33333334, %v5639_v39 }
 0x4af   :  { %4546 = vmatmul.mubr.msk.f32.vlgmr.msra.gmra.mxu1 %vm86_vm1, %v862_v40  ;;  %v860_v42 = vmul.f32 0.33333334, %v857_v41 }
 0x4b0   :  { %v5644_v56 = vpop.eup %5070  ;;  %4548 = vmatprep.mubr.msk.f32.mxu1 %vm5288_vm0, %v5287_v2  ;;  %4572 = vmatpush3.msra.mxu1 %v5357_v4 }
 0x4b1   :  { %v863_v43 = vadd.f32 %v860_v42, %v5590_v0  ;;  %v858_v44 = vmul.f32 0.1, %v5644_v56  ;;  %4573 = vmatprep.subr.mxu1 %v5287_v2  ;;  %v959_v41 = vmul.f32 0.33333334, %v5644_v56 }
 0x4b2   :  { %4574 = vmatpush3.msra.mxu1 %v5372_v7 }
 0x4b3   :  { %4549 = vmatmul.mubr.msk.f32.gmra.mxu1 %vm86_vm1, %v863_v43  ;;  %v861_v45 = vmul.f32 0.33333334, %v858_v44  ;;  %4575 = vmatprep.subr.mxu1 %v5287_v2 }
 0x4b4   :  { %4551 = vmatprep.mubr.msk.f32.mxu1 %vm5288_vm0, %v5287_v2  ;;  %4576 = vmatpush3.msra.mxu1 %v5386_v9 }
 0x4b5   :  { %v864_v46 = vadd.f32 %v861_v45, %v5605_v21  ;;  %4577 = vmatprep.subr.mxu1 %v5287_v2 }
 0x4b6   :  { %4578 = vmatpush3.msra.mxu1 %v5399_v11 }
 0x4b7   :  { %4552 = vmatmul.mubr.msk.f32.gmra.mxu1 %vm86_vm1, %v864_v46  ;;  %4605 = vmatprep.subr.mxu1 %v5287_v2 }
 0x4b8   :  { %4579 = vmatprep.mubr.msk.f32.mxu1 %vm5288_vm0, %v5287_v2 }
 0x52b   :  { %v741_v47 = vpop.xlane.xlu0 %740 }
 0x52c   :  { %v748_v51 = vadd.f32 %v741_v47, %v5518_v62 }
 0x52f   :  { %v744_v49 = vpop.xlane.xlu1 %743 }
 0x530   :  { %v749_v50 = vadd.f32 %v744_v49, %v5518_v62 }
 0x532   :  { %v751_v54 = vmax.f32 %v748_v51, %v749_v50 }
 0x533   :  { %v747_v53 = vpop.xlane.xlu0 %746 }
 0x534   :  { %v750_v55 = vadd.f32 %v747_v53, %v5518_v62 }
 0x536   :  { %v752_v57 = vmax.f32 %v751_v54, %v750_v55 }
 0x538   :  { %v753_v59 = vsub.f32 %v748_v51, %v752_v57  ;;  %v756_v60 = vsub.f32 %v749_v50, %v752_v57  ;;  %v759_v61 = vsub.f32 %v750_v55, %v752_v57 }
 0x53a   :  { %v754_v63 = vmul.f32 1.442695, %v753_v59  ;;  %v757_v18 = vmul.f32 1.442695, %v756_v60  ;;  %v760_v22 = vmul.f32 1.442695, %v759_v61 }
 0x53c   :  { %5072 = vpow2.f32 %v754_v63 }
 0x53d   :  { %5074 = vpow2.f32 %v757_v18 }
 0x53e   :  { %5076 = vpow2.f32 %v760_v22 }
 0x549   :  { %v5073_v1 = vpop.eup %5072 }
 0x54a   :  { %v5075_v5 = vpop.eup %5074 }
 0x54b   :  { %v762_v12 = vadd.f32 %v5075_v5, %v5073_v1  ;;  %v5077_v13 = vpop.eup %5076 }
 0x54d   :  { %v763_v14 = vadd.f32 %v5077_v13, %v762_v12 }
 0x54f   :  { %5078 = vrcp.f32 %v763_v14 }
 0x55c   :  { %v5079_v15 = vpop.eup %5078 }
 0x55d   :  { %v766_v16 = vmul.f32 %v5079_v15, %v5073_v1  ;;  %v767_v17 = vmul.f32 %v5079_v15, %v5075_v5  ;;  %v768_v19 = vmul.f32 %v5079_v15, %v5077_v13 }
 0x55f   :  { %v769_v20 = vsel %vm220_vm3, %v766_v16, %v767_v17 }
 0x560   :  { %v770_v24 = vsel %vm222_vm4, %v769_v20, %v768_v19 }
 0x561   :  { %4069 = vst.msk [vmem:[%s6577_s10 + $0x8] sm:$0xff] %vm224_vm5, %v770_v24 }
 0x56f   :  { %v940_v25 = vpop.f32.mrf.mxu1 }
 0x570   :  { %5080 = vtanh.f32 %v940_v25 }
 0x571   :  { %v4547_v26 = vpop.f32.mrf.mxu1 }
 0x573   :  { %v945_v27 = vpop.f32.mrf.mxu1 }
 0x574   :  { %5082 = vtanh.f32 %v945_v27 }
 0x575   :  { %v4550_v28 = vpop.f32.mrf.mxu1 }
 0x577   :  { %v950_v30 = vpop.f32.mrf.mxu1 }
 0x578   :  { %5084 = vtanh.f32 %v950_v30 }
 0x579   :  { %v4553_v31 = vpop.f32.mrf.mxu1 }
 0x57d   :  { %v5081_v33 = vpop.eup %5080 }
 0x57e   :  { %v960_v34 = vsub.f32 %v5081_v33, %v957_v32  ;;  %v1165_v51 = vmul.f32 3.0, %v5081_v33  ;;  %v1061_v53 = vsub.f32 %v5635_v37, %v5081_v33 }
 0x580   :  { %v963_v35 = vmul.f32 0.1, %v960_v34  ;;  %v1168_v59 = vadd.f32 %v5635_v37, %v1165_v51 }
 0x581   :  { %v5083_v48 = vpop.eup %5082 }
 0x582   :  { %v966_v52 = vadd.f32 %v963_v35, %v5579_v58  ;;  %v961_v38 = vsub.f32 %v5083_v48, %v958_v36  ;;  %v1166_v54 = vmul.f32 3.0, %v5083_v48  ;;  %v1062_v61 = vsub.f32 %v5639_v39, %v5083_v48 }
 0x584   :  { %4563 = vmatmul.mubr.msk.f32.vlgmr.msra.gmra.mxu0 %vm86_vm1, %v966_v52  ;;  %v964_v40 = vmul.f32 0.1, %v961_v38  ;;  %v1169_v22 = vadd.f32 %v5639_v39, %v1166_v54 }
 0x585   :  { %v5085_v42 = vpop.eup %5084  ;;  %4565 = vmatprep.mubr.msk.f32.mxu0 %vm5288_vm0, %v5287_v2  ;;  %4589 = vmatpush3.msra.mxu0 %v5351_v3 }
 0x586   :  { %v967_v43 = vadd.f32 %v964_v40, %v5590_v0  ;;  %v962_v44 = vsub.f32 %v5085_v42, %v959_v41  ;;  %4590 = vmatprep.subr.mxu0 %v5287_v2  ;;  %v1167_v13 = vmul.f32 3.0, %v5085_v42  ;;  %v1063_v15 = vsub.f32 %v5644_v56, %v5085_v42 }
 0x587   :  { %4591 = vmatpush3.msra.mxu0 %v5367_v6 }
 0x588   :  { %4566 = vmatmul.mubr.msk.f32.gmra.mxu0 %vm86_vm1, %v967_v43  ;;  %v965_v45 = vmul.f32 0.1, %v962_v44  ;;  %4592 = vmatprep.subr.mxu0 %v5287_v2  ;;  %v1170_v20 = vadd.f32 %v5644_v56, %v1167_v13  ;;  %v5780_v44 = vld [vmem:[%s6570_s5] sm:$0xff] }
 0x589   :  { %4568 = vmatprep.mubr.msk.f32.mxu0 %vm5288_vm0, %v5287_v2  ;;  %4593 = vmatpush3.msra.mxu0 %v5379_v8 }
 0x58a   :  { %v968_v46 = vadd.f32 %v965_v45, %v5605_v21  ;;  %4594 = vmatprep.subr.mxu0 %v5287_v2 }
 0x58b   :  { %4595 = vmatpush3.msra.mxu0 %v5392_v10 }
 0x58c   :  { %4569 = vmatmul.mubr.msk.f32.gmra.mxu0 %vm86_vm1, %v968_v46  ;;  %4622 = vmatprep.subr.mxu0 %v5287_v2 }
 0x58d   :  { %4596 = vmatprep.mubr.msk.f32.mxu0 %vm5288_vm0, %v5287_v2 }
 0x644   :  { %v1044_v3 = vpop.f32.mrf.mxu0 }
 0x645   :  { %5086 = vtanh.f32 %v1044_v3 }
 0x646   :  { %v4564_v6 = vpop.f32.mrf.mxu0 }
 0x648   :  { %v1049_v47 = vpop.f32.mrf.mxu0 }
 0x649   :  { %5088 = vtanh.f32 %v1049_v47 }
 0x64a   :  { %v4567_v49 = vpop.f32.mrf.mxu0 }
 0x64c   :  { %v1054_v8 = vpop.f32.mrf.mxu0 }
 0x64d   :  { %5090 = vtanh.f32 %v1054_v8 }
 0x64e   :  { %v4570_v50 = vpop.f32.mrf.mxu0 }
 0x652   :  { %v5087_v10 = vpop.eup %5086 }
 0x653   :  { %v1064_v55 = vadd.f32 %v5087_v10, %v1061_v53  ;;  %v1171_v57 = vmul.f32 3.0, %v5087_v10 }
 0x655   :  { %v1067_v60 = vmul.f32 0.1, %v1064_v55  ;;  %v1174_v63 = vadd.f32 %v1171_v57, %v1168_v59 }
 0x656   :  { %v5089_v18 = vpop.eup %5088 }
 0x657   :  { %v1070_v1 = vadd.f32 %v1067_v60, %v5579_v58  ;;  %v1172_v5 = vmul.f32 3.0, %v5089_v18  ;;  %v1065_v12 = vadd.f32 %v5089_v18, %v1062_v61 }
 0x659   :  { %4580 = vmatmul.mubr.msk.f32.vlgmr.msra.gmra.mxu1 %vm86_vm1, %v1070_v1  ;;  %v1068_v14 = vmul.f32 0.1, %v1065_v12  ;;  %v1175_v16 = vadd.f32 %v1172_v5, %v1169_v22 }
 0x65a   :  { %v5091_v17 = vpop.eup %5090  ;;  %4582 = vmatprep.mubr.msk.f32.mxu1 %vm5288_vm0, %v5287_v2  ;;  %4606 = vmatpush3.msra.mxu1 %v5357_v4 }
 0x65b   :  { %v1173_v37 = vmul.f32 3.0, %v5091_v17  ;;  %v1071_v39 = vadd.f32 %v1068_v14, %v5590_v0  ;;  %v1066_v19 = vadd.f32 %v5091_v17, %v1063_v15  ;;  %4607 = vmatprep.subr.mxu1 %v5287_v2 }
 0x65c   :  { %4608 = vmatpush3.msra.mxu1 %v5372_v7 }
 0x65d   :  { %4583 = vmatmul.mubr.msk.f32.gmra.mxu1 %vm86_vm1, %v1071_v39  ;;  %v1069_v24 = vmul.f32 0.1, %v1066_v19  ;;  %v1176_v25 = vadd.f32 %v1173_v37, %v1170_v20  ;;  %4609 = vmatprep.subr.mxu1 %v5287_v2 }
 0x65e   :  { %4585 = vmatprep.mubr.msk.f32.mxu1 %vm5288_vm0, %v5287_v2  ;;  %4610 = vmatpush3.msra.mxu1 %v5386_v9 }
 0x65f   :  { %v1072_v26 = vadd.f32 %v1069_v24, %v5605_v21  ;;  %4611 = vmatprep.subr.mxu1 %v5287_v2 }
 0x660   :  { %4612 = vmatpush3.msra.mxu1 %v5399_v11 }
 0x661   :  { %4586 = vmatmul.mubr.msk.f32.gmra.mxu1 %vm86_vm1, %v1072_v26  ;;  %4639 = vmatprep.subr.mxu1 %v5287_v2 }
 0x662   :  { %4613 = vmatprep.mubr.msk.f32.mxu1 %vm5288_vm0, %v5287_v2 }
 0x719   :  { %v1148_v7 = vpop.f32.mrf.mxu1 }
 0x71a   :  { %5092 = vtanh.f32 %v1148_v7 }
 0x71b   :  { %v4581_v56 = vpop.f32.mrf.mxu1 }
 0x71d   :  { %v1153_v27 = vpop.f32.mrf.mxu1 }
 0x71e   :  { %5094 = vtanh.f32 %v1153_v27 }
 0x71f   :  { %v4584_v28 = vpop.f32.mrf.mxu1 }
 0x721   :  { %v1158_v9 = vpop.f32.mrf.mxu1 }
 0x722   :  { %5096 = vtanh.f32 %v1158_v9 }
 0x723   :  { %v4587_v30 = vpop.f32.mrf.mxu1 }
 0x727   :  { %v5093_v31 = vpop.eup %5092 }
 0x728   :  { %v1177_v32 = vadd.f32 %v5093_v31, %v1174_v63 }
 0x72a   :  { %v1180_v33 = vmul.f32 0.1, %v1177_v32 }
 0x72b   :  { %v5095_v34 = vpop.eup %5094 }
 0x72c   :  { %v1183_v35 = vmul.f32 0.125, %v1180_v33  ;;  %v1178_v36 = vadd.f32 %v5095_v34, %v1175_v16 }
 0x72e   :  { %v1181_v48 = vmul.f32 0.1, %v1178_v36  ;;  %v5724_v52 = vadd.f32 %v1183_v35, %v5579_v58 }
 0x72f   :  { %v5097_v38 = vpop.eup %5096 }
 0x730   :  { %v1184_v40 = vmul.f32 0.125, %v1181_v48  ;;  %v1179_v41 = vadd.f32 %v5097_v38, %v1176_v25  ;;  %4597 = vmatmul.mubr.msk.f32.vlgmr.msra.gmra.mxu0 %vm86_vm1, %v5724_v52  ;;  %4614 = vmatmul.mubr.msk.f32.vlgmr.msra.gmra.mxu1 %vm86_vm1, %v5724_v52 }
 0x731   :  { %4599 = vmatprep.mubr.msk.f32.mxu0 %vm5288_vm0, %v5287_v2  ;;  %4616 = vmatprep.mubr.msk.f32.mxu1 %vm5288_vm0, %v5287_v2 }
 0x732   :  { %v1182_v42 = vmul.f32 0.1, %v1179_v41  ;;  %v5735_v43 = vadd.f32 %v1184_v40, %v5590_v0  ;;  %4623 = vmatpush3.msra.mxu0 %v5357_v4  ;;  %4640 = vmatpush3.msra.mxu1 %v5357_v4  ;;  %v5755_v4 = vld [vmem:[%s6570_s5 + $0x10] sm:$0xff] }
 0x733   :  { %4624 = vmatprep.subr.mxu0 %v5287_v2  ;;  %4641 = vmatprep.subr.mxu1 %v5287_v2 }
 0x734   :  { %v1185_v58 = vmul.f32 0.125, %v1182_v42  ;;  %4600 = vmatmul.mubr.msk.f32.gmra.mxu0 %vm86_vm1, %v5735_v43  ;;  %4617 = vmatmul.mubr.msk.f32.gmra.mxu1 %vm86_vm1, %v5735_v43 }
 0x735   :  { %4602 = vmatprep.mubr.msk.f32.mxu0 %vm5288_vm0, %v5287_v2  ;;  %4619 = vmatprep.mubr.msk.f32.mxu1 %vm5288_vm0, %v5287_v2 }
 0x736   :  { %v5750_v0 = vadd.f32 %v1185_v58, %v5605_v21  ;;  %4625 = vmatpush3.msra.mxu0 %v5755_v4  ;;  %4642 = vmatpush3.msra.mxu1 %v5755_v4  ;;  %v5768_v21 = vld [vmem:[%s6570_s5 + $0x8] sm:$0xff] }
 0x737   :  { %4626 = vmatprep.subr.mxu0 %v5287_v2  ;;  %4643 = vmatprep.subr.mxu1 %v5287_v2 }
 0x738   :  { %4603 = vmatmul.mubr.msk.f32.gmra.mxu0 %vm86_vm1, %v5750_v0  ;;  %4620 = vmatmul.mubr.msk.f32.gmra.mxu1 %vm86_vm1, %v5750_v0 }
 0x739   :  { %4627 = vmatpush3.msra.mxu0 %v5768_v21  ;;  %4630 = vmatprep.mubr.msk.f32.mxu0 %vm5288_vm0, %v5287_v2 }
 0x73a   :  { %4628 = vmatprep.subr.mxu0 %v5287_v2  ;;  %4644 = vmatpush3.msra.mxu1 %v5768_v21 }
 0x73b   :  { %4629 = vmatpush3.msra.mxu0 %v5399_v11  ;;  %4645 = vmatprep.subr.mxu1 %v5287_v2 }
 0x73c   :  { %4646 = vmatpush3.msra.mxu1 %v5780_v44  ;;  %4647 = vmatprep.mubr.msk.f32.mxu1 %vm5288_vm0, %v5287_v2 }
 0x73d   :  { %4656 = vmatprep.subr.mxu0 %v5287_v2  ;;  %4673 = vmatprep.subr.mxu1 %v5287_v2 }
 0x7f0   :  { %v1264_v45 = vpop.f32.mrf.mxu0  ;;  %v1384_v46 = vpop.f32.mrf.mxu1 }
 0x7f1   :  { %v1265_v11 = vadd.f32 %v5470_v23, %v1264_v45  ;;  %5098 = vtanh.f32 %v1384_v46 }
 0x7f2   :  { %v4598_v3 = vpop.f32.mrf.mxu0  ;;  %v4615_v6 = vpop.f32.mrf.mxu1 }
 0x7f3   :  { %v1278_v47 = vmax.f32 %v1265_v11, 0.0 }
 0x7f4   :  { %v1269_v49 = vpop.f32.mrf.mxu0  ;;  %v1389_v8 = vpop.f32.mrf.mxu1 }
 0x7f5   :  { %v1270_v50 = vadd.f32 %v5470_v23, %v1269_v49  ;;  %5100 = vtanh.f32 %v1389_v8  ;;  %v1281_v51 = vmul.f32 %v5476_v29, %v1278_v47 }
 0x7f6   :  { %v4601_v53 = vpop.f32.mrf.mxu0  ;;  %v4618_v10 = vpop.f32.mrf.mxu1 }
 0x7f7   :  { %v1279_v54 = vmax.f32 %v1270_v50, 0.0  ;;  %v1284_v55 = vsel %vm188_vm2, %v1281_v51, 0.0 }
 0x7f8   :  { %v1394_v57 = vpop.f32.mrf.mxu1  ;;  %1285 = vadd.xlane.f32.xlu1 %v1284_v55  ;;  %v1274_v59 = vpop.f32.mrf.mxu0 }
 0x7f9   :  { %5102 = vtanh.f32 %v1394_v57  ;;  %v1275_v60 = vadd.f32 %v5470_v23, %v1274_v59  ;;  %v1282_v61 = vmul.f32 %v5476_v29, %v1279_v54 }
 0x7fa   :  { %v4604_v63 = vpop.f32.mrf.mxu0  ;;  %v4621_v18 = vpop.f32.mrf.mxu1 }
 0x7fb   :  { %v1280_v22 = vmax.f32 %v1275_v60, 0.0  ;;  %v1287_v1 = vsel %vm188_vm2, %v1282_v61, 0.0 }
 0x7fc   :  { %1288 = vadd.xlane.f32.xlu1 %v1287_v1 }
 0x7fd   :  { %v1283_v5 = vmul.f32 %v5476_v29, %v1280_v22  ;;  %v5811_v29 = vld [vmem:[%s6570_s5 + $0x18] sm:$0xff] }
 0x7fe   :  { %v5795_v12 = vpop.eup %5098 }
 0x7ff   :  { %v1290_v13 = vsel %vm188_vm2, %v1283_v5, 0.0  ;;  %v1401_v14 = vmul.f32 0.1, %v5795_v12  ;;  %v1502_v54 = vmul.f32 0.33333334, %v5795_v12 }
 0x800   :  { %1291 = vadd.xlane.f32.xlu1 %v1290_v13  ;;  %v5849_v13 = vld [vmem:[%s6569_s6 + $0x18] sm:$0xff] }
 0x801   :  { %v1404_v15 = vmul.f32 0.33333334, %v1401_v14 }
 0x802   :  { %v5799_v16 = vpop.eup %5100 }
 0x803   :  { %v1407_v23 = vadd.f32 %v1404_v15, %v5724_v52  ;;  %v1402_v17 = vmul.f32 0.1, %v5799_v16  ;;  %v1503_v60 = vmul.f32 0.33333334, %v5799_v16 }
 0x805   :  { %4631 = vmatmul.mubr.msk.f32.vlgmr.msra.gmra.mxu0 %vm86_vm1, %v1407_v23  ;;  %v1405_v37 = vmul.f32 0.33333334, %v1402_v17  ;;  %v5857_v23 = vld [vmem:[%s6569_s6 + $0x10] sm:$0xff] }
 0x806   :  { %v5804_v39 = vpop.eup %5102  ;;  %4633 = vmatprep.mubr.msk.f32.mxu0 %vm5288_vm0, %v5287_v2  ;;  %4657 = vmatpush3.msra.mxu0 %v5811_v29 }
 0x807   :  { %v1408_v19 = vadd.f32 %v1405_v37, %v5735_v43  ;;  %v1403_v20 = vmul.f32 0.1, %v5804_v39  ;;  %4658 = vmatprep.subr.mxu0 %v5287_v2  ;;  %v1504_v1 = vmul.f32 0.33333334, %v5804_v39  ;;  %v5867_v37 = vld [vmem:[%s6569_s6 + $0x8] sm:$0xff] }
 0x808   :  { %4659 = vmatpush3.msra.mxu0 %v5755_v4 }
 0x809   :  { %4634 = vmatmul.mubr.msk.f32.gmra.mxu0 %vm86_vm1, %v1408_v19  ;;  %v1406_v24 = vmul.f32 0.33333334, %v1403_v20  ;;  %4660 = vmatprep.subr.mxu0 %v5287_v2  ;;  %v5875_v20 = vld [vmem:[%s6569_s6] sm:$0xff] }
 0x80a   :  { %4636 = vmatprep.mubr.msk.f32.mxu0 %vm5288_vm0, %v5287_v2  ;;  %4661 = vmatpush3.msra.mxu0 %v5768_v21 }
 0x80b   :  { %v1409_v25 = vadd.f32 %v1406_v24, %v5750_v0  ;;  %4662 = vmatprep.subr.mxu0 %v5287_v2 }
 0x80c   :  { %4663 = vmatpush3.msra.mxu0 %v5780_v44 }
 0x80d   :  { %4637 = vmatmul.mubr.msk.f32.gmra.mxu0 %vm86_vm1, %v1409_v25  ;;  %4690 = vmatprep.subr.mxu0 %v5287_v2 }
 0x80e   :  { %4664 = vmatprep.mubr.msk.f32.mxu0 %vm5288_vm0, %v5287_v2 }
 0x881   :  { %v1286_v26 = vpop.xlane.xlu1 %1285 }
 0x882   :  { %v1293_v27 = vadd.f32 %v1286_v26, %v5518_v62 }
 0x885   :  { %v1289_v7 = vpop.xlane.xlu1 %1288 }
 0x886   :  { %v1294_v56 = vadd.f32 %v1289_v7, %v5518_v62 }
 0x888   :  { %v1296_v9 = vmax.f32 %v1293_v27, %v1294_v56 }
 0x889   :  { %v1292_v28 = vpop.xlane.xlu1 %1291 }
 0x88a   :  { %v1295_v30 = vadd.f32 %v1292_v28, %v5518_v62 }
 0x88c   :  { %v1297_v31 = vmax.f32 %v1296_v9, %v1295_v30 }
 0x88e   :  { %v1298_v32 = vsub.f32 %v1293_v27, %v1297_v31  ;;  %v1301_v33 = vsub.f32 %v1294_v56, %v1297_v31  ;;  %v1304_v34 = vsub.f32 %v1295_v30, %v1297_v31 }
 0x890   :  { %v1299_v35 = vmul.f32 1.442695, %v1298_v32  ;;  %v1302_v36 = vmul.f32 1.442695, %v1301_v33  ;;  %v1305_v48 = vmul.f32 1.442695, %v1304_v34 }
 0x892   :  { %5104 = vpow2.f32 %v1299_v35 }
 0x893   :  { %5106 = vpow2.f32 %v1302_v36 }
 0x894   :  { %5108 = vpow2.f32 %v1305_v48 }
 0x89f   :  { %v5105_v38 = vpop.eup %5104 }
 0x8a0   :  { %v5107_v40 = vpop.eup %5106 }
 0x8a1   :  { %v1307_v41 = vadd.f32 %v5107_v40, %v5105_v38  ;;  %v5109_v42 = vpop.eup %5108 }
 0x8a3   :  { %v1308_v58 = vadd.f32 %v5109_v42, %v1307_v41 }
 0x8a5   :  { %5110 = vrcp.f32 %v1308_v58 }
 0x8b2   :  { %v5111_v45 = vpop.eup %5110 }
 0x8b3   :  { %v1311_v46 = vmul.f32 %v5111_v45, %v5105_v38  ;;  %v1312_v11 = vmul.f32 %v5111_v45, %v5107_v40  ;;  %v1313_v3 = vmul.f32 %v5111_v45, %v5109_v42 }
 0x8b5   :  { %v1314_v6 = vsel %vm220_vm3, %v1311_v46, %v1312_v11 }
 0x8b6   :  { %v1315_v47 = vsel %vm222_vm4, %v1314_v6, %v1313_v3 }
 0x8b7   :  { %4085 = vst.msk [vmem:[%s6577_s10 + $0x10] sm:$0xff] %vm224_vm5, %v1315_v47 }
 0x8c5   :  { %v1485_v49 = vpop.f32.mrf.mxu0 }
 0x8c6   :  { %5112 = vtanh.f32 %v1485_v49 }
 0x8c7   :  { %v4632_v8 = vpop.f32.mrf.mxu0 }
 0x8c9   :  { %v1490_v50 = vpop.f32.mrf.mxu0 }
 0x8ca   :  { %5114 = vtanh.f32 %v1490_v50 }
 0x8cb   :  { %v4635_v51 = vpop.f32.mrf.mxu0 }
 0x8cd   :  { %v1495_v53 = vpop.f32.mrf.mxu0 }
 0x8ce   :  { %5116 = vtanh.f32 %v1495_v53 }
 0x8cf   :  { %v4638_v10 = vpop.f32.mrf.mxu0 }
 0x8d3   :  { %v5113_v55 = vpop.eup %5112 }
 0x8d4   :  { %v1505_v57 = vsub.f32 %v5113_v55, %v1502_v54  ;;  %v1710_v28 = vmul.f32 3.0, %v5113_v55  ;;  %v1606_v9 = vsub.f32 %v5795_v12, %v5113_v55 }
 0x8d6   :  { %v1508_v59 = vmul.f32 0.1, %v1505_v57  ;;  %v1713_v34 = vadd.f32 %v5795_v12, %v1710_v28 }
 0x8d7   :  { %v5115_v61 = vpop.eup %5114 }
 0x8d8   :  { %v1511_v63 = vadd.f32 %v1508_v59, %v5724_v52  ;;  %v1506_v18 = vsub.f32 %v5115_v61, %v1503_v60  ;;  %v1711_v31 = vmul.f32 3.0, %v5115_v61  ;;  %v1607_v36 = vsub.f32 %v5799_v16, %v5115_v61 }
 0x8da   :  { %4648 = vmatmul.mubr.msk.f32.vlgmr.msra.gmra.mxu1 %vm86_vm1, %v1511_v63  ;;  %v1509_v22 = vmul.f32 0.1, %v1506_v18  ;;  %v1714_v40 = vadd.f32 %v5799_v16, %v1711_v31 }
 0x8db   :  { %v5117_v5 = vpop.eup %5116  ;;  %4650 = vmatprep.mubr.msk.f32.mxu1 %vm5288_vm0, %v5287_v2  ;;  %4674 = vmatpush3.msra.mxu1 %v5849_v13 }
 0x8dc   :  { %v1512_v14 = vadd.f32 %v1509_v22, %v5735_v43  ;;  %v1507_v15 = vsub.f32 %v5117_v5, %v1504_v1  ;;  %4675 = vmatprep.subr.mxu1 %v5287_v2  ;;  %v1712_v45 = vmul.f32 3.0, %v5117_v5  ;;  %v1608_v11 = vsub.f32 %v5804_v39, %v5117_v5 }
 0x8dd   :  { %4676 = vmatpush3.msra.mxu1 %v5857_v23 }
 0x8de   :  { %4651 = vmatmul.mubr.msk.f32.gmra.mxu1 %vm86_vm1, %v1512_v14  ;;  %v1510_v17 = vmul.f32 0.1, %v1507_v15  ;;  %4677 = vmatprep.subr.mxu1 %v5287_v2  ;;  %v1715_v49 = vadd.f32 %v5804_v39, %v1712_v45 }
 0x8df   :  { %4653 = vmatprep.mubr.msk.f32.mxu1 %vm5288_vm0, %v5287_v2  ;;  %4678 = vmatpush3.msra.mxu1 %v5867_v37 }
 0x8e0   :  { %v1513_v19 = vadd.f32 %v1510_v17, %v5750_v0  ;;  %4679 = vmatprep.subr.mxu1 %v5287_v2 }
 0x8e1   :  { %4680 = vmatpush3.msra.mxu1 %v5875_v20 }
 0x8e2   :  { %4654 = vmatmul.mubr.msk.f32.gmra.mxu1 %vm86_vm1, %v1513_v19  ;;  %4707 = vmatprep.subr.mxu1 %v5287_v2 }
 0x8e3   :  { %4681 = vmatprep.mubr.msk.f32.mxu1 %vm5288_vm0, %v5287_v2 }
 0x99a   :  { %v1589_v24 = vpop.f32.mrf.mxu1 }
 0x99b   :  { %5118 = vtanh.f32 %v1589_v24 }
 0x99c   :  { %v4649_v25 = vpop.f32.mrf.mxu1 }
 0x99e   :  { %v1594_v26 = vpop.f32.mrf.mxu1 }
 0x99f   :  { %5120 = vtanh.f32 %v1594_v26  ;;  %v5960_v26 = vld [vmem:[%s6574_s7] ss:$0 sm:$0xff] }
 0x9a0   :  { %v4652_v7 = vpop.f32.mrf.mxu1 }
 0x9a2   :  { %v1599_v56 = vpop.f32.mrf.mxu1 }
 0x9a3   :  { %5122 = vtanh.f32 %v1599_v56 }
 0x9a4   :  { %v4655_v27 = vpop.f32.mrf.mxu1 }
 0x9a8   :  { %v5119_v30 = vpop.eup %5118 }
 0x9a9   :  { %v1609_v32 = vadd.f32 %v5119_v30, %v1606_v9  ;;  %v1716_v33 = vmul.f32 3.0, %v5119_v30 }
 0x9ab   :  { %v1612_v35 = vmul.f32 0.1, %v1609_v32  ;;  %v1719_v48 = vadd.f32 %v1716_v33, %v1713_v34  ;;  %v5967_v32 = vld [vmem:[%s6575_s8] ss:$0 sm:$0xff] }
 0x9ac   :  { %v5121_v38 = vpop.eup %5120 }
 0x9ad   :  { %v1615_v41 = vadd.f32 %v1612_v35, %v5724_v52  ;;  %v1717_v42 = vmul.f32 3.0, %v5121_v38  ;;  %v1610_v58 = vadd.f32 %v5121_v38, %v1607_v36 }
 0x9af   :  { %4665 = vmatmul.mubr.msk.f32.vlgmr.msra.gmra.mxu0 %vm86_vm1, %v1615_v41  ;;  %v1613_v46 = vmul.f32 0.1, %v1610_v58  ;;  %v1720_v3 = vadd.f32 %v1717_v42, %v1714_v40 }
 0x9b0   :  { %v5123_v6 = vpop.eup %5122  ;;  %4667 = vmatprep.mubr.msk.f32.mxu0 %vm5288_vm0, %v5287_v2  ;;  %4691 = vmatpush3.msra.mxu0 %v5811_v29 }
 0x9b1   :  { %v1718_v12 = vmul.f32 3.0, %v5123_v6  ;;  %v1616_v16 = vadd.f32 %v1613_v46, %v5735_v43  ;;  %v1611_v47 = vadd.f32 %v5123_v6, %v1608_v11  ;;  %4692 = vmatprep.subr.mxu0 %v5287_v2 }
 0x9b2   :  { %4693 = vmatpush3.msra.mxu0 %v5755_v4 }
 0x9b3   :  { %4668 = vmatmul.mubr.msk.f32.gmra.mxu0 %vm86_vm1, %v1616_v16  ;;  %v1614_v8 = vmul.f32 0.1, %v1611_v47  ;;  %v1721_v50 = vadd.f32 %v1718_v12, %v1715_v49  ;;  %4694 = vmatprep.subr.mxu0 %v5287_v2 }
 0x9b4   :  { %4670 = vmatprep.mubr.msk.f32.mxu0 %vm5288_vm0, %v5287_v2  ;;  %4695 = vmatpush3.msra.mxu0 %v5768_v21 }
 0x9b5   :  { %v1617_v51 = vadd.f32 %v1614_v8, %v5750_v0  ;;  %4696 = vmatprep.subr.mxu0 %v5287_v2 }
 0x9b6   :  { %4697 = vmatpush3.msra.mxu0 %v5780_v44 }
 0x9b7   :  { %4671 = vmatmul.mubr.msk.f32.gmra.mxu0 %vm86_vm1, %v1617_v51  ;;  %4724 = vmatprep.subr.mxu0 %v5287_v2 }
 0x9b8   :  { %4698 = vmatprep.mubr.msk.f32.mxu0 %vm5288_vm0, %v5287_v2 }
 0xa6f   :  { %v1693_v39 = vpop.f32.mrf.mxu0 }
 0xa70   :  { %5124 = vtanh.f32 %v1693_v39 }
 0xa71   :  { %v4666_v53 = vpop.f32.mrf.mxu0 }
 0xa73   :  { %v1698_v10 = vpop.f32.mrf.mxu0 }
 0xa74   :  { %5126 = vtanh.f32 %v1698_v10 }
 0xa75   :  { %v4669_v54 = vpop.f32.mrf.mxu0 }
 0xa77   :  { %v1703_v55 = vpop.f32.mrf.mxu0 }
 0xa78   :  { %5128 = vtanh.f32 %v1703_v55 }
 0xa79   :  { %v4672_v57 = vpop.f32.mrf.mxu0 }
 0xa7d   :  { %v5125_v59 = vpop.eup %5124 }
 0xa7e   :  { %v1722_v60 = vadd.f32 %v5125_v59, %v1719_v48 }
 0xa80   :  { %v1725_v61 = vmul.f32 0.1, %v1722_v60 }
 0xa81   :  { %v5127_v63 = vpop.eup %5126 }
 0xa82   :  { %v1728_v18 = vmul.f32 0.125, %v1725_v61  ;;  %v1723_v22 = vadd.f32 %v5127_v63, %v1720_v3 }
 0xa84   :  { %v1726_v1 = vmul.f32 0.1, %v1723_v22  ;;  %v5909_v5 = vadd.f32 %v1728_v18, %v5724_v52 }
 0xa85   :  { %v5129_v14 = vpop.eup %5128 }
 0xa86   :  { %v1729_v15 = vmul.f32 0.125, %v1726_v1  ;;  %v1724_v17 = vadd.f32 %v5129_v14, %v1721_v50  ;;  %4682 = vmatmul.mubr.msk.f32.vlgmr.msra.gmra.mxu1 %vm86_vm1, %v5909_v5  ;;  %4699 = vmatmul.mubr.msk.f32.vlgmr.msra.gmra.mxu0 %vm86_vm1, %v5909_v5 }
 0xa87   :  { %4684 = vmatprep.mubr.msk.f32.mxu1 %vm5288_vm0, %v5287_v2  ;;  %4701 = vmatprep.mubr.msk.f32.mxu0 %vm5288_vm0, %v5287_v2 }
 0xa88   :  { %v1727_v19 = vmul.f32 0.1, %v1724_v17  ;;  %v5920_v24 = vadd.f32 %v1729_v15, %v5735_v43  ;;  %4708 = vmatpush3.msra.mxu1 %v5811_v29  ;;  %4725 = vmatpush3.msra.mxu0 %v5811_v29 }
 0xa89   :  { %4709 = vmatprep.subr.mxu1 %v5287_v2  ;;  %4726 = vmatprep.subr.mxu0 %v5287_v2 }
 0xa8a   :  { %v1730_v52 = vmul.f32 0.125, %v1727_v19  ;;  %4685 = vmatmul.mubr.msk.f32.gmra.mxu1 %vm86_vm1, %v5920_v24  ;;  %4702 = vmatmul.mubr.msk.f32.gmra.mxu0 %vm86_vm1, %v5920_v24 }
 0xa8b   :  { %4687 = vmatprep.mubr.msk.f32.mxu1 %vm5288_vm0, %v5287_v2  ;;  %4704 = vmatprep.mubr.msk.f32.mxu0 %vm5288_vm0, %v5287_v2 }
 0xa8c   :  { %v5935_v43 = vadd.f32 %v1730_v52, %v5750_v0  ;;  %4710 = vmatpush3.msra.mxu1 %v5755_v4  ;;  %4727 = vmatpush3.msra.mxu0 %v5755_v4 }
 0xa8d   :  { %4711 = vmatprep.subr.mxu1 %v5287_v2  ;;  %4728 = vmatprep.subr.mxu0 %v5287_v2 }
 0xa8e   :  { %4688 = vmatmul.mubr.msk.f32.gmra.mxu1 %vm86_vm1, %v5935_v43  ;;  %4705 = vmatmul.mubr.msk.f32.gmra.mxu0 %vm86_vm1, %v5935_v43 }
 0xa8f   :  { %4712 = vmatpush3.msra.mxu1 %v5768_v21  ;;  %4715 = vmatprep.mubr.msk.f32.mxu1 %vm5288_vm0, %v5287_v2 }
 0xa90   :  { %4713 = vmatprep.subr.mxu1 %v5287_v2  ;;  %4729 = vmatpush3.msra.mxu0 %v5768_v21 }
 0xa91   :  { %4714 = vmatpush3.msra.mxu1 %v5780_v44  ;;  %4730 = vmatprep.subr.mxu0 %v5287_v2 }
 0xa92   :  { %4731 = vmatpush3.msra.mxu0 %v5780_v44  ;;  %4732 = vmatprep.mubr.msk.f32.mxu0 %vm5288_vm0, %v5287_v2 }
 0xa93   :  { %4741 = vmatprep.subr.mxu1 %v5287_v2  ;;  %4758 = vmatprep.subr.mxu0 %v5287_v2 }
 0xb46   :  { %v1809_v0 = vpop.f32.mrf.mxu1  ;;  %v1929_v25 = vpop.f32.mrf.mxu0 }
 0xb47   :  { %v1810_v7 = vadd.f32 %v5960_v26, %v1809_v0  ;;  %5130 = vtanh.f32 %v1929_v25 }
 0xb48   :  { %v4683_v56 = vpop.f32.mrf.mxu1  ;;  %v4700_v27 = vpop.f32.mrf.mxu0 }
 0xb49   :  { %v1823_v28 = vmax.f32 %v1810_v7, 0.0 }
 0xb4a   :  { %v1814_v9 = vpop.f32.mrf.mxu1  ;;  %v1934_v30 = vpop.f32.mrf.mxu0 }
 0xb4b   :  { %v1815_v31 = vadd.f32 %v5960_v26, %v1814_v9  ;;  %5132 = vtanh.f32 %v1934_v30  ;;  %v1826_v33 = vmul.f32 %v5967_v32, %v1823_v28 }
 0xb4c   :  { %v4686_v34 = vpop.f32.mrf.mxu1  ;;  %v4703_v35 = vpop.f32.mrf.mxu0 }
 0xb4d   :  { %v1824_v36 = vmax.f32 %v1815_v31, 0.0  ;;  %v1829_v48 = vsel %vm188_vm2, %v1826_v33, 0.0 }
 0xb4e   :  { %1830 = vadd.xlane.f32.xlu1 %v1829_v48  ;;  %v1819_v38 = vpop.f32.mrf.mxu1  ;;  %v1939_v40 = vpop.f32.mrf.mxu0 }
 0xb4f   :  { %v1820_v41 = vadd.f32 %v5960_v26, %v1819_v38  ;;  %5134 = vtanh.f32 %v1939_v40  ;;  %v1827_v42 = vmul.f32 %v5967_v32, %v1824_v36 }
 0xb50   :  { %v4689_v58 = vpop.f32.mrf.mxu1  ;;  %v4706_v45 = vpop.f32.mrf.mxu0 }
 0xb51   :  { %v1825_v46 = vmax.f32 %v1820_v41, 0.0  ;;  %v1832_v11 = vsel %vm188_vm2, %v1827_v42, 0.0 }
 0xb52   :  { %1833 = vadd.xlane.f32.xlu1 %v1832_v11 }
 0xb53   :  { %v1828_v3 = vmul.f32 %v5967_v32, %v1825_v46 }
 0xb54   :  { %v5975_v6 = vpop.eup %5130 }
 0xb55   :  { %v1835_v12 = vsel %vm188_vm2, %v1828_v3, 0.0  ;;  %v1946_v16 = vmul.f32 0.1, %v5975_v6  ;;  %v2047_v58 = vmul.f32 0.33333334, %v5975_v6 }
 0xb56   :  { %1836 = vadd.xlane.f32.xlu0 %v1835_v12 }
 0xb57   :  { %v1949_v47 = vmul.f32 0.33333334, %v1946_v16 }
 0xb58   :  { %v5979_v49 = vpop.eup %5132 }
 0xb59   :  { %v1952_v8 = vadd.f32 %v1949_v47, %v5909_v5  ;;  %v1947_v50 = vmul.f32 0.1, %v5979_v49  ;;  %v2048_v3 = vmul.f32 0.33333334, %v5979_v49 }
 0xb5b   :  { %4716 = vmatmul.mubr.msk.f32.vlgmr.msra.gmra.mxu1 %vm86_vm1, %v1952_v8  ;;  %v1950_v51 = vmul.f32 0.33333334, %v1947_v50 }
 0xb5c   :  { %v5984_v39 = vpop.eup %5134  ;;  %4718 = vmatprep.mubr.msk.f32.mxu1 %vm5288_vm0, %v5287_v2  ;;  %4742 = vmatpush3.msra.mxu1 %v5811_v29 }
 0xb5d   :  { %v1953_v53 = vadd.f32 %v1950_v51, %v5920_v24  ;;  %v1948_v10 = vmul.f32 0.1, %v5984_v39  ;;  %4743 = vmatprep.subr.mxu1 %v5287_v2  ;;  %v2049_v50 = vmul.f32 0.33333334, %v5984_v39 }
 0xb5e   :  { %4744 = vmatpush3.msra.mxu1 %v5755_v4 }
 0xb5f   :  { %4719 = vmatmul.mubr.msk.f32.gmra.mxu1 %vm86_vm1, %v1953_v53  ;;  %v1951_v54 = vmul.f32 0.33333334, %v1948_v10  ;;  %4745 = vmatprep.subr.mxu1 %v5287_v2 }
 0xb60   :  { %4721 = vmatprep.mubr.msk.f32.mxu1 %vm5288_vm0, %v5287_v2  ;;  %4746 = vmatpush3.msra.mxu1 %v5768_v21 }
 0xb61   :  { %v1954_v55 = vadd.f32 %v1951_v54, %v5935_v43  ;;  %4747 = vmatprep.subr.mxu1 %v5287_v2 }
 0xb62   :  { %4748 = vmatpush3.msra.mxu1 %v5780_v44 }
 0xb63   :  { %4722 = vmatmul.mubr.msk.f32.gmra.mxu1 %vm86_vm1, %v1954_v55  ;;  %4775 = vmatprep.subr.mxu1 %v5287_v2 }
 0xb64   :  { %4749 = vmatprep.mubr.msk.f32.mxu1 %vm5288_vm0, %v5287_v2 }
 0xbd7   :  { %v1831_v57 = vpop.xlane.xlu1 %1830 }
 0xbd8   :  { %v1838_v61 = vadd.f32 %v1831_v57, %v5518_v62 }
 0xbdb   :  { %v1834_v59 = vpop.xlane.xlu1 %1833 }
 0xbdc   :  { %v1839_v60 = vadd.f32 %v1834_v59, %v5518_v62 }
 0xbde   :  { %v1841_v18 = vmax.f32 %v1838_v61, %v1839_v60 }
 0xbdf   :  { %v1837_v63 = vpop.xlane.xlu0 %1836 }
 0xbe0   :  { %v1840_v22 = vadd.f32 %v1837_v63, %v5518_v62 }
 0xbe2   :  { %v1842_v1 = vmax.f32 %v1841_v18, %v1840_v22 }
 0xbe4   :  { %v1843_v14 = vsub.f32 %v1838_v61, %v1842_v1  ;;  %v1846_v15 = vsub.f32 %v1839_v60, %v1842_v1  ;;  %v1849_v17 = vsub.f32 %v1840_v22, %v1842_v1 }
 0xbe6   :  { %v1844_v19 = vmul.f32 1.442695, %v1843_v14  ;;  %v1847_v52 = vmul.f32 1.442695, %v1846_v15  ;;  %v1850_v0 = vmul.f32 1.442695, %v1849_v17 }
 0xbe8   :  { %5136 = vpow2.f32 %v1844_v19 }
 0xbe9   :  { %5138 = vpow2.f32 %v1847_v52 }
 0xbea   :  { %5140 = vpow2.f32 %v1850_v0 }
 0xbf5   :  { %v5137_v25 = vpop.eup %5136 }
 0xbf6   :  { %v5139_v7 = vpop.eup %5138 }
 0xbf7   :  { %v1852_v56 = vadd.f32 %v5139_v7, %v5137_v25  ;;  %v5141_v27 = vpop.eup %5140 }
 0xbf9   :  { %v1853_v28 = vadd.f32 %v5141_v27, %v1852_v56 }
 0xbfb   :  { %5142 = vrcp.f32 %v1853_v28 }
 0xc08   :  { %v5143_v9 = vpop.eup %5142 }
 0xc09   :  { %v1856_v30 = vmul.f32 %v5143_v9, %v5137_v25  ;;  %v1857_v31 = vmul.f32 %v5143_v9, %v5139_v7  ;;  %v1858_v33 = vmul.f32 %v5143_v9, %v5141_v27 }
 0xc0b   :  { %v1859_v34 = vsel %vm220_vm3, %v1856_v30, %v1857_v31 }
 0xc0c   :  { %v1860_v35 = vsel %vm222_vm4, %v1859_v34, %v1858_v33 }
 0xc0d   :  { %4101 = vst.msk [vmem:[%s6577_s10 + $0x18] sm:$0xff] %vm224_vm5, %v1860_v35 }
 0xc1b   :  { %v2030_v36 = vpop.f32.mrf.mxu1 }
 0xc1c   :  { %5144 = vtanh.f32 %v2030_v36 }
 0xc1d   :  { %v4717_v48 = vpop.f32.mrf.mxu1 }
 0xc1f   :  { %v2035_v38 = vpop.f32.mrf.mxu1 }
 0xc20   :  { %5146 = vtanh.f32 %v2035_v38 }
 0xc21   :  { %v4720_v40 = vpop.f32.mrf.mxu1 }
 0xc23   :  { %v2040_v41 = vpop.f32.mrf.mxu1 }
 0xc24   :  { %5148 = vtanh.f32 %v2040_v41 }
 0xc25   :  { %v4723_v42 = vpop.f32.mrf.mxu1 }
 0xc29   :  { %v5145_v45 = vpop.eup %5144 }
 0xc2a   :  { %v2050_v46 = vsub.f32 %v5145_v45, %v2047_v58  ;;  %v2255_v22 = vmul.f32 3.0, %v5145_v45  ;;  %v2151_v1 = vsub.f32 %v5975_v6, %v5145_v45 }
 0xc2c   :  { %v2053_v11 = vmul.f32 0.1, %v2050_v46  ;;  %v2258_v52 = vadd.f32 %v5975_v6, %v2255_v22 }
 0xc2d   :  { %v5147_v12 = vpop.eup %5146 }
 0xc2e   :  { %v2056_v16 = vadd.f32 %v2053_v11, %v5909_v5  ;;  %v2051_v47 = vsub.f32 %v5147_v12, %v2048_v3  ;;  %v2256_v15 = vmul.f32 3.0, %v5147_v12  ;;  %v2152_v25 = vsub.f32 %v5979_v49, %v5147_v12 }
 0xc30   :  { %4733 = vmatmul.mubr.msk.f32.vlgmr.msra.gmra.mxu0 %vm86_vm1, %v2056_v16  ;;  %v2054_v8 = vmul.f32 0.1, %v2051_v47  ;;  %v2259_v27 = vadd.f32 %v5979_v49, %v2256_v15 }
 0xc31   :  { %v5149_v51 = vpop.eup %5148  ;;  %4735 = vmatprep.mubr.msk.f32.mxu0 %vm5288_vm0, %v5287_v2  ;;  %4759 = vmatpush3.msra.mxu0 %v5849_v13 }
 0xc32   :  { %v2057_v53 = vadd.f32 %v2054_v8, %v5920_v24  ;;  %v2052_v10 = vsub.f32 %v5149_v51, %v2049_v50  ;;  %4760 = vmatprep.subr.mxu0 %v5287_v2  ;;  %v2257_v31 = vmul.f32 3.0, %v5149_v51  ;;  %v2153_v34 = vsub.f32 %v5984_v39, %v5149_v51 }
 0xc33   :  { %4761 = vmatpush3.msra.mxu0 %v5857_v23 }
 0xc34   :  { %4736 = vmatmul.mubr.msk.f32.gmra.mxu0 %vm86_vm1, %v2057_v53  ;;  %v2055_v54 = vmul.f32 0.1, %v2052_v10  ;;  %4762 = vmatprep.subr.mxu0 %v5287_v2  ;;  %v2260_v38 = vadd.f32 %v5984_v39, %v2257_v31 }
 0xc35   :  { %4738 = vmatprep.mubr.msk.f32.mxu0 %vm5288_vm0, %v5287_v2  ;;  %4763 = vmatpush3.msra.mxu0 %v5867_v37 }
 0xc36   :  { %v2058_v55 = vadd.f32 %v2055_v54, %v5935_v43  ;;  %4764 = vmatprep.subr.mxu0 %v5287_v2 }
 0xc37   :  { %4765 = vmatpush3.msra.mxu0 %v5875_v20 }
 0xc38   :  { %4739 = vmatmul.mubr.msk.f32.gmra.mxu0 %vm86_vm1, %v2058_v55  ;;  %4792 = vmatprep.subr.mxu0 %v5287_v2 }
 0xc39   :  { %4766 = vmatprep.mubr.msk.f32.mxu0 %vm5288_vm0, %v5287_v2 }
 0xcf0   :  { %v2134_v57 = vpop.f32.mrf.mxu0 }
 0xcf1   :  { %5150 = vtanh.f32 %v2134_v57 }
 0xcf2   :  { %v4734_v59 = vpop.f32.mrf.mxu0 }
 0xcf4   :  { %v2139_v60 = vpop.f32.mrf.mxu0 }
 0xcf5   :  { %5152 = vtanh.f32 %v2139_v60 }
 0xcf6   :  { %v4737_v61 = vpop.f32.mrf.mxu0 }
 0xcf8   :  { %v2144_v63 = vpop.f32.mrf.mxu0 }
 0xcf9   :  { %5154 = vtanh.f32 %v2144_v63 }
 0xcfa   :  { %v4740_v18 = vpop.f32.mrf.mxu0 }
 0xcfe   :  { %v5151_v14 = vpop.eup %5150 }
 0xcff   :  { %v2154_v17 = vadd.f32 %v5151_v14, %v2151_v1  ;;  %v2261_v19 = vmul.f32 3.0, %v5151_v14 }
 0xd01   :  { %v2157_v0 = vmul.f32 0.1, %v2154_v17  ;;  %v2264_v7 = vadd.f32 %v2261_v19, %v2258_v52 }
 0xd02   :  { %v5153_v56 = vpop.eup %5152 }
 0xd03   :  { %v2160_v28 = vadd.f32 %v2157_v0, %v5909_v5  ;;  %v2262_v9 = vmul.f32 3.0, %v5153_v56  ;;  %v2155_v30 = vadd.f32 %v5153_v56, %v2152_v25 }
 0xd05   :  { %4750 = vmatmul.mubr.msk.f32.vlgmr.msra.gmra.mxu1 %vm86_vm1, %v2160_v28  ;;  %v2158_v33 = vmul.f32 0.1, %v2155_v30  ;;  %v2265_v35 = vadd.f32 %v2262_v9, %v2259_v27 }
 0xd06   :  { %v5155_v36 = vpop.eup %5154  ;;  %4752 = vmatprep.mubr.msk.f32.mxu1 %vm5288_vm0, %v5287_v2  ;;  %4776 = vmatpush3.msra.mxu1 %v5811_v29 }
 0xd07   :  { %v2263_v6 = vmul.f32 3.0, %v5155_v36  ;;  %v2161_v49 = vadd.f32 %v2158_v33, %v5920_v24  ;;  %v2156_v48 = vadd.f32 %v5155_v36, %v2153_v34  ;;  %4777 = vmatprep.subr.mxu1 %v5287_v2 }
 0xd08   :  { %4778 = vmatpush3.msra.mxu1 %v5755_v4 }
 0xd09   :  { %4753 = vmatmul.mubr.msk.f32.gmra.mxu1 %vm86_vm1, %v2161_v49  ;;  %v2159_v40 = vmul.f32 0.1, %v2156_v48  ;;  %v2266_v41 = vadd.f32 %v2263_v6, %v2260_v38  ;;  %4779 = vmatprep.subr.mxu1 %v5287_v2 }
 0xd0a   :  { %4755 = vmatprep.mubr.msk.f32.mxu1 %vm5288_vm0, %v5287_v2  ;;  %4780 = vmatpush3.msra.mxu1 %v5768_v21 }
 0xd0b   :  { %v2162_v42 = vadd.f32 %v2159_v40, %v5935_v43  ;;  %4781 = vmatprep.subr.mxu1 %v5287_v2 }
 0xd0c   :  { %4782 = vmatpush3.msra.mxu1 %v5780_v44 }
 0xd0d   :  { %4756 = vmatmul.mubr.msk.f32.gmra.mxu1 %vm86_vm1, %v2162_v42  ;;  %4809 = vmatprep.subr.mxu1 %v5287_v2 }
 0xd0e   :  { %4783 = vmatprep.mubr.msk.f32.mxu1 %vm5288_vm0, %v5287_v2 }
 0xdc5   :  { %v2238_v39 = vpop.f32.mrf.mxu1 }
 0xdc6   :  { %5156 = vtanh.f32 %v2238_v39 }
 0xdc7   :  { %v4751_v58 = vpop.f32.mrf.mxu1 }
 0xdc9   :  { %v2243_v45 = vpop.f32.mrf.mxu1 }
 0xdca   :  { %5158 = vtanh.f32 %v2243_v45  ;;  %v6140_v45 = vld [vmem:[%s6570_s5 + $0x10] sm:$0xff] }
 0xdcb   :  { %v4754_v46 = vpop.f32.mrf.mxu1 }
 0xdcd   :  { %v2248_v11 = vpop.f32.mrf.mxu1 }
 0xdce   :  { %5160 = vtanh.f32 %v2248_v11 }
 0xdcf   :  { %v4757_v3 = vpop.f32.mrf.mxu1 }
 0xdd3   :  { %v5157_v12 = vpop.eup %5156 }
 0xdd4   :  { %v2267_v16 = vadd.f32 %v5157_v12, %v2264_v7 }
 0xdd6   :  { %v2270_v47 = vmul.f32 0.1, %v2267_v16 }
 0xdd7   :  { %v5159_v8 = vpop.eup %5158 }
 0xdd8   :  { %v2273_v50 = vmul.f32 0.125, %v2270_v47  ;;  %v2268_v51 = vadd.f32 %v5159_v8, %v2265_v35 }
 0xdda   :  { %v2271_v53 = vmul.f32 0.1, %v2268_v51  ;;  %v6064_v10 = vadd.f32 %v2273_v50, %v5909_v5 }
 0xddb   :  { %v5161_v54 = vpop.eup %5160 }
 0xddc   :  { %v2274_v55 = vmul.f32 0.125, %v2271_v53  ;;  %v2269_v57 = vadd.f32 %v5161_v54, %v2266_v41  ;;  %4767 = vmatmul.mubr.msk.f32.vlgmr.msra.gmra.mxu0 %vm86_vm1, %v6064_v10  ;;  %4784 = vmatmul.mubr.msk.f32.vlgmr.msra.gmra.mxu1 %vm86_vm1, %v6064_v10 }
 0xddd   :  { %4769 = vmatprep.mubr.msk.f32.mxu0 %vm5288_vm0, %v5287_v2  ;;  %4786 = vmatprep.mubr.msk.f32.mxu1 %vm5288_vm0, %v5287_v2 }
 0xdde   :  { %v2272_v59 = vmul.f32 0.1, %v2269_v57  ;;  %v6075_v60 = vadd.f32 %v2274_v55, %v5920_v24  ;;  %4793 = vmatpush3.msra.mxu0 %v5811_v29  ;;  %4810 = vmatpush3.msra.mxu1 %v5811_v29 }
 0xddf   :  { %4794 = vmatprep.subr.mxu0 %v5287_v2  ;;  %4811 = vmatprep.subr.mxu1 %v5287_v2 }
 0xde0   :  { %v2275_v5 = vmul.f32 0.125, %v2272_v59  ;;  %4770 = vmatmul.mubr.msk.f32.gmra.mxu0 %vm86_vm1, %v6075_v60  ;;  %4787 = vmatmul.mubr.msk.f32.gmra.mxu1 %vm86_vm1, %v6075_v60 }
 0xde1   :  { %4772 = vmatprep.mubr.msk.f32.mxu0 %vm5288_vm0, %v5287_v2  ;;  %4789 = vmatprep.mubr.msk.f32.mxu1 %vm5288_vm0, %v5287_v2 }
 0xde2   :  { %v6090_v24 = vadd.f32 %v2275_v5, %v5935_v43  ;;  %4795 = vmatpush3.msra.mxu0 %v5755_v4  ;;  %4812 = vmatpush3.msra.mxu1 %v5755_v4 }
 0xde3   :  { %4796 = vmatprep.subr.mxu0 %v5287_v2  ;;  %4813 = vmatprep.subr.mxu1 %v5287_v2 }
 0xde4   :  { %4773 = vmatmul.mubr.msk.f32.gmra.mxu0 %vm86_vm1, %v6090_v24  ;;  %4790 = vmatmul.mubr.msk.f32.gmra.mxu1 %vm86_vm1, %v6090_v24 }
 0xde5   :  { %4797 = vmatpush3.msra.mxu0 %v5768_v21  ;;  %4800 = vmatprep.mubr.msk.f32.mxu0 %vm5288_vm0, %v5287_v2 }
 0xde6   :  { %4798 = vmatprep.subr.mxu0 %v5287_v2  ;;  %4814 = vmatpush3.msra.mxu1 %v5768_v21 }
 0xde7   :  { %4799 = vmatpush3.msra.mxu0 %v5780_v44  ;;  %4815 = vmatprep.subr.mxu1 %v5287_v2 }
 0xde8   :  { %4816 = vmatpush3.msra.mxu1 %v5780_v44  ;;  %4817 = vmatprep.mubr.msk.f32.mxu1 %vm5288_vm0, %v5287_v2 }
 0xde9   :  { %4826 = vmatprep.subr.mxu0 %v5287_v2  ;;  %4843 = vmatprep.subr.mxu1 %v5287_v2 }
 0xe9c   :  { %v2354_v4 = vpop.f32.mrf.mxu0  ;;  %v2474_v43 = vpop.f32.mrf.mxu1 }
 0xe9d   :  { %v2355_v61 = vadd.f32 %v5960_v26, %v2354_v4  ;;  %5162 = vtanh.f32 %v2474_v43 }
 0xe9e   :  { %v4768_v63 = vpop.f32.mrf.mxu0  ;;  %v4785_v18 = vpop.f32.mrf.mxu1 }
 0xe9f   :  { %v2368_v22 = vmax.f32 %v2355_v61, 0.0 }
 0xea0   :  { %v2359_v1 = vpop.f32.mrf.mxu0  ;;  %v2479_v14 = vpop.f32.mrf.mxu1 }
 0xea1   :  { %v2360_v15 = vadd.f32 %v5960_v26, %v2359_v1  ;;  %5164 = vtanh.f32 %v2479_v14  ;;  %v2371_v17 = vmul.f32 %v5967_v32, %v2368_v22 }
 0xea2   :  { %v4771_v19 = vpop.f32.mrf.mxu0  ;;  %v4788_v52 = vpop.f32.mrf.mxu1 }
 0xea3   :  { %v2369_v0 = vmax.f32 %v2360_v15, 0.0  ;;  %v2374_v25 = vsel %vm188_vm2, %v2371_v17, 0.0 }
 0xea4   :  { %v2484_v7 = vpop.f32.mrf.mxu1  ;;  %2375 = vadd.xlane.f32.xlu1 %v2374_v25  ;;  %v2364_v56 = vpop.f32.mrf.mxu0 }
 0xea5   :  { %5166 = vtanh.f32 %v2484_v7  ;;  %v2365_v27 = vadd.f32 %v5960_v26, %v2364_v56  ;;  %v2372_v28 = vmul.f32 %v5967_v32, %v2369_v0 }
 0xea6   :  { %v4774_v9 = vpop.f32.mrf.mxu0  ;;  %v4791_v30 = vpop.f32.mrf.mxu1 }
 0xea7   :  { %v2370_v31 = vmax.f32 %v2365_v27, 0.0  ;;  %v2377_v33 = vsel %vm188_vm2, %v2372_v28, 0.0 }
 0xea8   :  { %2378 = vadd.xlane.f32.xlu1 %v2377_v33 }
 0xea9   :  { %v2373_v34 = vmul.f32 %v5967_v32, %v2370_v31 }
 0xeaa   :  { %v6120_v35 = vpop.eup %5162 }
 0xeab   :  { %v2380_v36 = vsel %vm188_vm2, %v2373_v34, 0.0  ;;  %v2491_v6 = vmul.f32 0.1, %v6120_v35  ;;  %v2592_v56 = vmul.f32 0.33333334, %v6120_v35 }
 0xeac   :  { %2381 = vadd.xlane.f32.xlu1 %v2380_v36 }
 0xead   :  { %v2494_v49 = vmul.f32 0.33333334, %v2491_v6 }
 0xeae   :  { %v6124_v48 = vpop.eup %5164 }
 0xeaf   :  { %v2497_v38 = vadd.f32 %v2494_v49, %v6064_v10  ;;  %v2492_v40 = vmul.f32 0.1, %v6124_v48  ;;  %v2593_v30 = vmul.f32 0.33333334, %v6124_v48 }
 0xeb1   :  { %4801 = vmatmul.mubr.msk.f32.vlgmr.msra.gmra.mxu0 %vm86_vm1, %v2497_v38  ;;  %v2495_v41 = vmul.f32 0.33333334, %v2492_v40 }
 0xeb2   :  { %v6129_v42 = vpop.eup %5166  ;;  %4803 = vmatprep.mubr.msk.f32.mxu0 %vm5288_vm0, %v5287_v2  ;;  %4827 = vmatpush3.msra.mxu0 %v5811_v29 }
 0xeb3   :  { %v2498_v39 = vadd.f32 %v2495_v41, %v6075_v60  ;;  %v2493_v58 = vmul.f32 0.1, %v6129_v42  ;;  %4828 = vmatprep.subr.mxu0 %v5287_v2  ;;  %v2594_v6 = vmul.f32 0.33333334, %v6129_v42 }
 0xeb4   :  { %4829 = vmatpush3.msra.mxu0 %v6140_v45 }
 0xeb5   :  { %4804 = vmatmul.mubr.msk.f32.gmra.mxu0 %vm86_vm1, %v2498_v39  ;;  %v2496_v46 = vmul.f32 0.33333334, %v2493_v58  ;;  %4830 = vmatprep.subr.mxu0 %v5287_v2 }
 0xeb6   :  { %4806 = vmatprep.mubr.msk.f32.mxu0 %vm5288_vm0, %v5287_v2  ;;  %4831 = vmatpush3.msra.mxu0 %v5768_v21 }
 0xeb7   :  { %v2499_v29 = vadd.f32 %v2496_v46, %v6090_v24  ;;  %4832 = vmatprep.subr.mxu0 %v5287_v2 }
 0xeb8   :  { %4833 = vmatpush3.msra.mxu0 %v5780_v44 }
 0xeb9   :  { %4807 = vmatmul.mubr.msk.f32.gmra.mxu0 %vm86_vm1, %v2499_v29  ;;  %4860 = vmatprep.subr.mxu0 %v5287_v2 }
 0xeba   :  { %4834 = vmatprep.mubr.msk.f32.mxu0 %vm5288_vm0, %v5287_v2 }
 0xf2d   :  { %v2376_v11 = vpop.xlane.xlu1 %2375 }
 0xf2e   :  { %v2383_v16 = vadd.f32 %v2376_v11, %v5518_v62 }
 0xf31   :  { %v2379_v3 = vpop.xlane.xlu1 %2378 }
 0xf32   :  { %v2384_v12 = vadd.f32 %v2379_v3, %v5518_v62 }
 0xf34   :  { %v2386_v47 = vmax.f32 %v2383_v16, %v2384_v12 }
 0xf35   :  { %v2382_v21 = vpop.xlane.xlu1 %2381 }
 0xf36   :  { %v2385_v8 = vadd.f32 %v2382_v21, %v5518_v62 }
 0xf38   :  { %v2387_v50 = vmax.f32 %v2386_v47, %v2385_v8 }
 0xf3a   :  { %v2388_v51 = vsub.f32 %v2383_v16, %v2387_v50  ;;  %v2391_v44 = vsub.f32 %v2384_v12, %v2387_v50  ;;  %v2394_v53 = vsub.f32 %v2385_v8, %v2387_v50 }
 0xf3c   :  { %v2389_v54 = vmul.f32 1.442695, %v2388_v51  ;;  %v2392_v55 = vmul.f32 1.442695, %v2391_v44  ;;  %v2395_v57 = vmul.f32 1.442695, %v2394_v53 }
 0xf3e   :  { %5168 = vpow2.f32 %v2389_v54 }
 0xf3f   :  { %5170 = vpow2.f32 %v2392_v55 }
 0xf40   :  { %5172 = vpow2.f32 %v2395_v57 }
 0xf4b   :  { %v5169_v59 = vpop.eup %5168 }
 0xf4c   :  { %v5171_v5 = vpop.eup %5170 }
 0xf4d   :  { %v2397_v4 = vadd.f32 %v5171_v5, %v5169_v59  ;;  %v5173_v43 = vpop.eup %5172 }
 0xf4f   :  { %v2398_v61 = vadd.f32 %v5173_v43, %v2397_v4 }
 0xf51   :  { %5174 = vrcp.f32 %v2398_v61 }
 0xf5e   :  { %v5175_v63 = vpop.eup %5174 }
 0xf5f   :  { %v2401_v18 = vmul.f32 %v5175_v63, %v5169_v59  ;;  %v2402_v22 = vmul.f32 %v5175_v63, %v5171_v5  ;;  %v2403_v1 = vmul.f32 %v5175_v63, %v5173_v43 }
 0xf61   :  { %v2404_v14 = vsel %vm220_vm3, %v2401_v18, %v2402_v22 }
 0xf62   :  { %v2405_v15 = vsel %vm222_vm4, %v2404_v14, %v2403_v1 }
 0xf63   :  { %4117 = vst.msk [vmem:[%s6577_s10 + $0x20] sm:$0xff] %vm224_vm5, %v2405_v15  ;;  %v6213_v15 = vld [vmem:[%s6570_s5 + $0x8] sm:$0xff] }
 0xf71   :  { %v2575_v17 = vpop.f32.mrf.mxu0 }
 0xf72   :  { %5176 = vtanh.f32 %v2575_v17  ;;  %v6221_v17 = vld [vmem:[%s6570_s5] sm:$0xff] }
 0xf73   :  { %v4802_v19 = vpop.f32.mrf.mxu0 }
 0xf75   :  { %v2580_v52 = vpop.f32.mrf.mxu0 }
 0xf76   :  { %5178 = vtanh.f32 %v2580_v52 }
 0xf77   :  { %v4805_v0 = vpop.f32.mrf.mxu0 }
 0xf79   :  { %v2585_v25 = vpop.f32.mrf.mxu0 }
 0xf7a   :  { %5180 = vtanh.f32 %v2585_v25 }
 0xf7b   :  { %v4808_v7 = vpop.f32.mrf.mxu0 }
 0xf7f   :  { %v5177_v27 = vpop.eup %5176 }
 0xf80   :  { %v2595_v28 = vsub.f32 %v5177_v27, %v2592_v56  ;;  %v2800_v11 = vmul.f32 3.0, %v5177_v27  ;;  %v2696_v3 = vsub.f32 %v6120_v35, %v5177_v27 }
 0xf82   :  { %v2598_v9 = vmul.f32 0.1, %v2595_v28  ;;  %v2803_v47 = vadd.f32 %v6120_v35, %v2800_v11  ;;  %v6199_v35 = vld [vmem:[%s6570_s5 + $0x18] sm:$0xff] }
 0xf83   :  { %v5179_v31 = vpop.eup %5178 }
 0xf84   :  { %v2601_v33 = vadd.f32 %v2598_v9, %v6064_v10  ;;  %v2596_v34 = vsub.f32 %v5179_v31, %v2593_v30  ;;  %v2801_v12 = vmul.f32 3.0, %v5179_v31  ;;  %v2697_v50 = vsub.f32 %v6124_v48, %v5179_v31 }
 0xf86   :  { %4818 = vmatmul.mubr.msk.f32.vlgmr.msra.gmra.mxu1 %vm86_vm1, %v2601_v33  ;;  %v2599_v36 = vmul.f32 0.1, %v2596_v34  ;;  %v2804_v53 = vadd.f32 %v6124_v48, %v2801_v12 }
 0xf87   :  { %v5181_v49 = vpop.eup %5180  ;;  %4820 = vmatprep.mubr.msk.f32.mxu1 %vm5288_vm0, %v5287_v2  ;;  %4844 = vmatpush3.msra.mxu1 %v5849_v13 }
 0xf88   :  { %v2602_v38 = vadd.f32 %v2599_v36, %v6075_v60  ;;  %v2597_v40 = vsub.f32 %v5181_v49, %v2594_v6  ;;  %4845 = vmatprep.subr.mxu1 %v5287_v2  ;;  %v2802_v59 = vmul.f32 3.0, %v5181_v49  ;;  %v2698_v4 = vsub.f32 %v6129_v42, %v5181_v49 }
 0xf89   :  { %4846 = vmatpush3.msra.mxu1 %v5857_v23 }
 0xf8a   :  { %4821 = vmatmul.mubr.msk.f32.gmra.mxu1 %vm86_vm1, %v2602_v38  ;;  %v2600_v41 = vmul.f32 0.1, %v2597_v40  ;;  %4847 = vmatprep.subr.mxu1 %v5287_v2  ;;  %v2805_v22 = vadd.f32 %v6129_v42, %v2802_v59 }
 0xf8b   :  { %4823 = vmatprep.mubr.msk.f32.mxu1 %vm5288_vm0, %v5287_v2  ;;  %4848 = vmatpush3.msra.mxu1 %v5867_v37 }
 0xf8c   :  { %v2603_v39 = vadd.f32 %v2600_v41, %v6090_v24  ;;  %4849 = vmatprep.subr.mxu1 %v5287_v2 }
 0xf8d   :  { %4850 = vmatpush3.msra.mxu1 %v5875_v20 }
 0xf8e   :  { %4824 = vmatmul.mubr.msk.f32.gmra.mxu1 %vm86_vm1, %v2603_v39  ;;  %4877 = vmatprep.subr.mxu1 %v5287_v2 }
 0xf8f   :  { %4851 = vmatprep.mubr.msk.f32.mxu1 %vm5288_vm0, %v5287_v2 }
0x1046   :  { %v2679_v13 = vpop.f32.mrf.mxu1 }
0x1047   :  { %5182 = vtanh.f32 %v2679_v13 }
0x1048   :  { %v4819_v23 = vpop.f32.mrf.mxu1 }
0x104a   :  { %v2684_v58 = vpop.f32.mrf.mxu1 }
0x104b   :  { %5184 = vtanh.f32 %v2684_v58 }
0x104c   :  { %v4822_v46 = vpop.f32.mrf.mxu1 }
0x104e   :  { %v2689_v37 = vpop.f32.mrf.mxu1 }
0x104f   :  { %5186 = vtanh.f32 %v2689_v37 }
0x1050   :  { %v4825_v29 = vpop.f32.mrf.mxu1 }
0x1054   :  { %v5183_v20 = vpop.eup %5182 }
0x1055   :  { %v2699_v16 = vadd.f32 %v5183_v20, %v2696_v3  ;;  %v2806_v21 = vmul.f32 3.0, %v5183_v20 }
0x1057   :  { %v2702_v8 = vmul.f32 0.1, %v2699_v16  ;;  %v2809_v51 = vadd.f32 %v2806_v21, %v2803_v47 }
0x1058   :  { %v5185_v44 = vpop.eup %5184 }
0x1059   :  { %v2705_v54 = vadd.f32 %v2702_v8, %v6064_v10  ;;  %v2807_v55 = vmul.f32 3.0, %v5185_v44  ;;  %v2700_v57 = vadd.f32 %v5185_v44, %v2697_v50 }
0x105b   :  { %4835 = vmatmul.mubr.msk.f32.vlgmr.msra.gmra.mxu0 %vm86_vm1, %v2705_v54  ;;  %v2703_v5 = vmul.f32 0.1, %v2700_v57  ;;  %v2810_v43 = vadd.f32 %v2807_v55, %v2804_v53 }
0x105c   :  { %v5187_v61 = vpop.eup %5186  ;;  %4837 = vmatprep.mubr.msk.f32.mxu0 %vm5288_vm0, %v5287_v2  ;;  %4861 = vmatpush3.msra.mxu0 %v6199_v35 }
0x105d   :  { %v2808_v48 = vmul.f32 3.0, %v5187_v61  ;;  %v2706_v63 = vadd.f32 %v2703_v5, %v6075_v60  ;;  %v2701_v18 = vadd.f32 %v5187_v61, %v2698_v4  ;;  %4862 = vmatprep.subr.mxu0 %v5287_v2 }
0x105e   :  { %4863 = vmatpush3.msra.mxu0 %v6140_v45 }
0x105f   :  { %4838 = vmatmul.mubr.msk.f32.gmra.mxu0 %vm86_vm1, %v2706_v63  ;;  %v2704_v1 = vmul.f32 0.1, %v2701_v18  ;;  %v2811_v14 = vadd.f32 %v2808_v48, %v2805_v22  ;;  %4864 = vmatprep.subr.mxu0 %v5287_v2 }
0x1060   :  { %4840 = vmatprep.mubr.msk.f32.mxu0 %vm5288_vm0, %v5287_v2  ;;  %4865 = vmatpush3.msra.mxu0 %v6213_v15 }
0x1061   :  { %v2707_v42 = vadd.f32 %v2704_v1, %v6090_v24  ;;  %4866 = vmatprep.subr.mxu0 %v5287_v2 }
0x1062   :  { %4867 = vmatpush3.msra.mxu0 %v6221_v17 }
0x1063   :  { %4841 = vmatmul.mubr.msk.f32.gmra.mxu0 %vm86_vm1, %v2707_v42  ;;  %4894 = vmatprep.subr.mxu0 %v5287_v2 }
0x1064   :  { %4868 = vmatprep.mubr.msk.f32.mxu0 %vm5288_vm0, %v5287_v2 }
0x111b   :  { %v2783_v19 = vpop.f32.mrf.mxu0 }
0x111c   :  { %5188 = vtanh.f32 %v2783_v19 }
0x111d   :  { %v4836_v52 = vpop.f32.mrf.mxu0 }
0x111f   :  { %v2788_v0 = vpop.f32.mrf.mxu0 }
0x1120   :  { %5190 = vtanh.f32 %v2788_v0 }
0x1121   :  { %v4839_v25 = vpop.f32.mrf.mxu0 }
0x1123   :  { %v2793_v7 = vpop.f32.mrf.mxu0 }
0x1124   :  { %5192 = vtanh.f32 %v2793_v7 }
0x1125   :  { %v4842_v56 = vpop.f32.mrf.mxu0 }
0x1129   :  { %v5189_v27 = vpop.eup %5188 }
0x112a   :  { %v2812_v28 = vadd.f32 %v5189_v27, %v2809_v51 }
0x112c   :  { %v2815_v9 = vmul.f32 0.1, %v2812_v28 }
0x112d   :  { %v5191_v30 = vpop.eup %5190 }
0x112e   :  { %v2818_v31 = vmul.f32 0.125, %v2815_v9  ;;  %v2813_v33 = vadd.f32 %v5191_v30, %v2810_v43 }
0x1130   :  { %v2816_v34 = vmul.f32 0.1, %v2813_v33  ;;  %v6229_v36 = vadd.f32 %v2818_v31, %v6064_v10 }
0x1131   :  { %v5193_v6 = vpop.eup %5192 }
0x1132   :  { %v2819_v49 = vmul.f32 0.125, %v2816_v34  ;;  %v2814_v38 = vadd.f32 %v5193_v6, %v2811_v14  ;;  %4852 = vmatmul.mubr.msk.f32.vlgmr.msra.gmra.mxu1 %vm86_vm1, %v6229_v36  ;;  %4869 = vmatmul.mubr.msk.f32.vlgmr.msra.gmra.mxu0 %vm86_vm1, %v6229_v36 }
0x1133   :  { %4854 = vmatprep.mubr.msk.f32.mxu1 %vm5288_vm0, %v5287_v2  ;;  %4871 = vmatprep.mubr.msk.f32.mxu0 %vm5288_vm0, %v5287_v2 }
0x1134   :  { %v2817_v40 = vmul.f32 0.1, %v2814_v38  ;;  %v6240_v41 = vadd.f32 %v2819_v49, %v6075_v60  ;;  %4878 = vmatpush3.msra.mxu1 %v6199_v35  ;;  %4895 = vmatpush3.msra.mxu0 %v6199_v35 }
0x1135   :  { %4879 = vmatprep.subr.mxu1 %v5287_v2  ;;  %4896 = vmatprep.subr.mxu0 %v5287_v2 }
0x1136   :  { %v2820_v10 = vmul.f32 0.125, %v2817_v40  ;;  %4855 = vmatmul.mubr.msk.f32.gmra.mxu1 %vm86_vm1, %v6240_v41  ;;  %4872 = vmatmul.mubr.msk.f32.gmra.mxu0 %vm86_vm1, %v6240_v41 }
0x1137   :  { %4857 = vmatprep.mubr.msk.f32.mxu1 %vm5288_vm0, %v5287_v2  ;;  %4874 = vmatprep.mubr.msk.f32.mxu0 %vm5288_vm0, %v5287_v2 }
0x1138   :  { %v6255_v60 = vadd.f32 %v2820_v10, %v6090_v24  ;;  %4880 = vmatpush3.msra.mxu1 %v6140_v45  ;;  %4897 = vmatpush3.msra.mxu0 %v6140_v45 }
0x1139   :  { %4881 = vmatprep.subr.mxu1 %v5287_v2  ;;  %4898 = vmatprep.subr.mxu0 %v5287_v2 }
0x113a   :  { %4858 = vmatmul.mubr.msk.f32.gmra.mxu1 %vm86_vm1, %v6255_v60  ;;  %4875 = vmatmul.mubr.msk.f32.gmra.mxu0 %vm86_vm1, %v6255_v60 }
0x113b   :  { %4882 = vmatpush3.msra.mxu1 %v6213_v15  ;;  %4885 = vmatprep.mubr.msk.f32.mxu1 %vm5288_vm0, %v5287_v2 }
0x113c   :  { %4883 = vmatprep.subr.mxu1 %v5287_v2  ;;  %4899 = vmatpush3.msra.mxu0 %v6213_v15 }
0x113d   :  { %4884 = vmatpush3.msra.mxu1 %v6221_v17  ;;  %4900 = vmatprep.subr.mxu0 %v5287_v2 }
0x113e   :  { %4901 = vmatpush3.msra.mxu0 %v6221_v17  ;;  %4902 = vmatprep.mubr.msk.f32.mxu0 %vm5288_vm0, %v5287_v2 }
0x113f   :  { %4911 = vmatprep.subr.mxu1 %v5287_v2  ;;  %4928 = vmatprep.subr.mxu0 %v5287_v2 }
0x11f2   :  { %v2899_v24 = vpop.f32.mrf.mxu1  ;;  %v3019_v39 = vpop.f32.mrf.mxu0 }
0x11f3   :  { %v2900_v13 = vadd.f32 %v5960_v26, %v2899_v24  ;;  %5194 = vtanh.f32 %v3019_v39 }
0x11f4   :  { %v4853_v23 = vpop.f32.mrf.mxu1  ;;  %v4870_v58 = vpop.f32.mrf.mxu0 }
0x11f5   :  { %v2913_v46 = vmax.f32 %v2900_v13, 0.0 }
0x11f6   :  { %v2904_v37 = vpop.f32.mrf.mxu1  ;;  %v3024_v29 = vpop.f32.mrf.mxu0 }
0x11f7   :  { %v2905_v11 = vadd.f32 %v5960_v26, %v2904_v37  ;;  %5196 = vtanh.f32 %v3024_v29  ;;  %v2916_v3 = vmul.f32 %v5967_v32, %v2913_v46 }
0x11f8   :  { %v4856_v20 = vpop.f32.mrf.mxu1  ;;  %v4873_v12 = vpop.f32.mrf.mxu0 }
0x11f9   :  { %v2914_v16 = vmax.f32 %v2905_v11, 0.0  ;;  %v2919_v21 = vsel %vm188_vm2, %v2916_v3, 0.0 }
0x11fa   :  { %2920 = vadd.xlane.f32.xlu1 %v2919_v21  ;;  %v2909_v47 = vpop.f32.mrf.mxu1  ;;  %v3029_v8 = vpop.f32.mrf.mxu0 }
0x11fb   :  { %v2910_v50 = vadd.f32 %v5960_v26, %v2909_v47  ;;  %5198 = vtanh.f32 %v3029_v8  ;;  %v2917_v51 = vmul.f32 %v5967_v32, %v2914_v16 }
0x11fc   :  { %v4859_v44 = vpop.f32.mrf.mxu1  ;;  %v4876_v53 = vpop.f32.mrf.mxu0 }
0x11fd   :  { %v2915_v54 = vmax.f32 %v2910_v50, 0.0  ;;  %v2922_v55 = vsel %vm188_vm2, %v2917_v51, 0.0 }
0x11fe   :  { %2923 = vadd.xlane.f32.xlu0 %v2922_v55 }
0x11ff   :  { %v2918_v57 = vmul.f32 %v5967_v32, %v2915_v54 }
0x1200   :  { %v6285_v59 = vpop.eup %5194 }
0x1201   :  { %v2925_v5 = vsel %vm188_vm2, %v2918_v57, 0.0  ;;  %v3036_v4 = vmul.f32 0.1, %v6285_v59  ;;  %v3137_v16 = vmul.f32 0.33333334, %v6285_v59 }
0x1202   :  { %2926 = vadd.xlane.f32.xlu0 %v2925_v5  ;;  %v6334_v5 = vld [vmem:[%s6569_s6 + $0x18] sm:$0xff] }
0x1203   :  { %v3039_v43 = vmul.f32 0.33333334, %v3036_v4 }
0x1204   :  { %v6289_v26 = vpop.eup %5196 }
0x1205   :  { %v3042_v61 = vadd.f32 %v3039_v43, %v6229_v36  ;;  %v3037_v48 = vmul.f32 0.1, %v6289_v26  ;;  %v3138_v50 = vmul.f32 0.33333334, %v6289_v26 }
0x1207   :  { %4886 = vmatmul.mubr.msk.f32.vlgmr.msra.gmra.mxu1 %vm86_vm1, %v3042_v61  ;;  %v3040_v63 = vmul.f32 0.33333334, %v3037_v48  ;;  %v6342_v61 = vld [vmem:[%s6569_s6 + $0x10] sm:$0xff] }
0x1208   :  { %v6294_v18 = vpop.eup %5198  ;;  %4888 = vmatprep.mubr.msk.f32.mxu1 %vm5288_vm0, %v5287_v2  ;;  %4912 = vmatpush3.msra.mxu1 %v6199_v35 }
0x1209   :  { %v3043_v32 = vadd.f32 %v3040_v63, %v6240_v41  ;;  %v3038_v22 = vmul.f32 0.1, %v6294_v18  ;;  %4913 = vmatprep.subr.mxu1 %v5287_v2  ;;  %v3139_v55 = vmul.f32 0.33333334, %v6294_v18  ;;  %v6352_v63 = vld [vmem:[%s6569_s6 + $0x8] sm:$0xff] }
0x120a   :  { %4914 = vmatpush3.msra.mxu1 %v6140_v45 }
0x120b   :  { %4889 = vmatmul.mubr.msk.f32.gmra.mxu1 %vm86_vm1, %v3043_v32  ;;  %v3041_v1 = vmul.f32 0.33333334, %v3038_v22  ;;  %4915 = vmatprep.subr.mxu1 %v5287_v2  ;;  %v6360_v22 = vld [vmem:[%s6569_s6] sm:$0xff] }
0x120c   :  { %4891 = vmatprep.mubr.msk.f32.mxu1 %vm5288_vm0, %v5287_v2  ;;  %4916 = vmatpush3.msra.mxu1 %v6213_v15 }
0x120d   :  { %v3044_v14 = vadd.f32 %v3041_v1, %v6255_v60  ;;  %4917 = vmatprep.subr.mxu1 %v5287_v2 }
0x120e   :  { %4918 = vmatpush3.msra.mxu1 %v6221_v17 }
0x120f   :  { %4892 = vmatmul.mubr.msk.f32.gmra.mxu1 %vm86_vm1, %v3044_v14  ;;  %4945 = vmatprep.subr.mxu1 %v5287_v2 }
0x1210   :  { %4919 = vmatprep.mubr.msk.f32.mxu1 %vm5288_vm0, %v5287_v2 }
0x1283   :  { %v2921_v42 = vpop.xlane.xlu1 %2920 }
0x1284   :  { %v2928_v0 = vadd.f32 %v2921_v42, %v5518_v62 }
0x1287   :  { %v2924_v19 = vpop.xlane.xlu0 %2923 }
0x1288   :  { %v2929_v52 = vadd.f32 %v2924_v19, %v5518_v62 }
0x128a   :  { %v2931_v7 = vmax.f32 %v2928_v0, %v2929_v52 }
0x128b   :  { %v2927_v25 = vpop.xlane.xlu0 %2926 }
0x128c   :  { %v2930_v56 = vadd.f32 %v2927_v25, %v5518_v62 }
0x128e   :  { %v2932_v27 = vmax.f32 %v2931_v7, %v2930_v56 }
0x1290   :  { %v2933_v28 = vsub.f32 %v2928_v0, %v2932_v27  ;;  %v2936_v9 = vsub.f32 %v2929_v52, %v2932_v27  ;;  %v2939_v30 = vsub.f32 %v2930_v56, %v2932_v27 }
0x1292   :  { %v2934_v31 = vmul.f32 1.442695, %v2933_v28  ;;  %v2937_v33 = vmul.f32 1.442695, %v2936_v9  ;;  %v2940_v34 = vmul.f32 1.442695, %v2939_v30 }
0x1294   :  { %5200 = vpow2.f32 %v2934_v31 }
0x1295   :  { %5202 = vpow2.f32 %v2937_v33 }
0x1296   :  { %5204 = vpow2.f32 %v2940_v34 }
0x12a1   :  { %v5201_v6 = vpop.eup %5200 }
0x12a2   :  { %v5203_v49 = vpop.eup %5202 }
0x12a3   :  { %v2942_v38 = vadd.f32 %v5203_v49, %v5201_v6  ;;  %v5205_v40 = vpop.eup %5204 }
0x12a5   :  { %v2943_v10 = vadd.f32 %v5205_v40, %v2942_v38 }
0x12a7   :  { %5206 = vrcp.f32 %v2943_v10 }
0x12b4   :  { %v5207_v24 = vpop.eup %5206 }
0x12b5   :  { %v2946_v39 = vmul.f32 %v5207_v24, %v5201_v6  ;;  %v2947_v13 = vmul.f32 %v5207_v24, %v5203_v49  ;;  %v2948_v23 = vmul.f32 %v5207_v24, %v5205_v40 }
0x12b7   :  { %v2949_v58 = vsel %vm220_vm3, %v2946_v39, %v2947_v13 }
0x12b8   :  { %v2950_v46 = vsel %vm222_vm4, %v2949_v58, %v2948_v23 }
0x12b9   :  { %4133 = vst.msk [vmem:[%s6577_s10 + $0x28] sm:$0xff] %vm224_vm5, %v2950_v46 }
0x12c7   :  { %v3120_v37 = vpop.f32.mrf.mxu1 }
0x12c8   :  { %5208 = vtanh.f32 %v3120_v37 }
0x12c9   :  { %v4887_v29 = vpop.f32.mrf.mxu1 }
0x12cb   :  { %v3125_v11 = vpop.f32.mrf.mxu1 }
0x12cc   :  { %5210 = vtanh.f32 %v3125_v11 }
0x12cd   :  { %v4890_v3 = vpop.f32.mrf.mxu1 }
0x12cf   :  { %v3130_v20 = vpop.f32.mrf.mxu1 }
0x12d0   :  { %5212 = vtanh.f32 %v3130_v20 }
0x12d1   :  { %v4893_v12 = vpop.f32.mrf.mxu1 }
0x12d5   :  { %v5209_v21 = vpop.eup %5208 }
0x12d6   :  { %v3140_v47 = vsub.f32 %v5209_v21, %v3137_v16  ;;  %v3345_v25 = vmul.f32 3.0, %v5209_v21  ;;  %v3241_v7 = vsub.f32 %v6285_v59, %v5209_v21 }
0x12d8   :  { %v3143_v8 = vmul.f32 0.1, %v3140_v47  ;;  %v3348_v30 = vadd.f32 %v6285_v59, %v3345_v25 }
0x12d9   :  { %v5211_v51 = vpop.eup %5210 }
0x12da   :  { %v3146_v44 = vadd.f32 %v3143_v8, %v6229_v36  ;;  %v3141_v53 = vsub.f32 %v5211_v51, %v3138_v50  ;;  %v3346_v27 = vmul.f32 3.0, %v5211_v51  ;;  %v3242_v33 = vsub.f32 %v6289_v26, %v5211_v51 }
0x12dc   :  { %4903 = vmatmul.mubr.msk.f32.vlgmr.msra.gmra.mxu0 %vm86_vm1, %v3146_v44  ;;  %v3144_v54 = vmul.f32 0.1, %v3141_v53  ;;  %v3349_v49 = vadd.f32 %v6289_v26, %v3346_v27 }
0x12dd   :  { %v5213_v57 = vpop.eup %5212  ;;  %4905 = vmatprep.mubr.msk.f32.mxu0 %vm5288_vm0, %v5287_v2  ;;  %4929 = vmatpush3.msra.mxu0 %v6334_v5 }
0x12de   :  { %v3147_v4 = vadd.f32 %v3144_v54, %v6240_v41  ;;  %v3142_v43 = vsub.f32 %v5213_v57, %v3139_v55  ;;  %4930 = vmatprep.subr.mxu0 %v5287_v2  ;;  %v3347_v24 = vmul.f32 3.0, %v5213_v57  ;;  %v3243_v13 = vsub.f32 %v6294_v18, %v5213_v57 }
0x12df   :  { %4931 = vmatpush3.msra.mxu0 %v6342_v61 }
0x12e0   :  { %4906 = vmatmul.mubr.msk.f32.gmra.mxu0 %vm86_vm1, %v3147_v4  ;;  %v3145_v48 = vmul.f32 0.1, %v3142_v43  ;;  %4932 = vmatprep.subr.mxu0 %v5287_v2  ;;  %v3350_v37 = vadd.f32 %v6294_v18, %v3347_v24 }
0x12e1   :  { %4908 = vmatprep.mubr.msk.f32.mxu0 %vm5288_vm0, %v5287_v2  ;;  %4933 = vmatpush3.msra.mxu0 %v6352_v63 }
0x12e2   :  { %v3148_v32 = vadd.f32 %v3145_v48, %v6255_v60  ;;  %4934 = vmatprep.subr.mxu0 %v5287_v2 }
0x12e3   :  { %4935 = vmatpush3.msra.mxu0 %v6360_v22 }
0x12e4   :  { %4909 = vmatmul.mubr.msk.f32.gmra.mxu0 %vm86_vm1, %v3148_v32  ;;  %4962 = vmatprep.subr.mxu0 %v5287_v2 }
0x12e5   :  { %4936 = vmatprep.mubr.msk.f32.mxu0 %vm5288_vm0, %v5287_v2 }
0x139c   :  { %v3224_v1 = vpop.f32.mrf.mxu0 }
0x139d   :  { %5214 = vtanh.f32 %v3224_v1 }
0x139e   :  { %v4904_v14 = vpop.f32.mrf.mxu0 }
0x13a0   :  { %v3229_v42 = vpop.f32.mrf.mxu0 }
0x13a1   :  { %5216 = vtanh.f32 %v3229_v42  ;;  %v6445_v42 = vld [vmem:[%s6574_s7] ss:$0 sm:$0xff] }
0x13a2   :  { %v4907_v19 = vpop.f32.mrf.mxu0 }
0x13a4   :  { %v3234_v52 = vpop.f32.mrf.mxu0 }
0x13a5   :  { %5218 = vtanh.f32 %v3234_v52 }
0x13a6   :  { %v4910_v0 = vpop.f32.mrf.mxu0 }
0x13aa   :  { %v5215_v56 = vpop.eup %5214 }
0x13ab   :  { %v3244_v28 = vadd.f32 %v5215_v56, %v3241_v7  ;;  %v3351_v9 = vmul.f32 3.0, %v5215_v56 }
0x13ad   :  { %v3247_v31 = vmul.f32 0.1, %v3244_v28  ;;  %v3354_v34 = vadd.f32 %v3351_v9, %v3348_v30  ;;  %v6452_v28 = vld [vmem:[%s6575_s8] ss:$0 sm:$0xff] }
0x13ae   :  { %v5217_v6 = vpop.eup %5216 }
0x13af   :  { %v3250_v38 = vadd.f32 %v3247_v31, %v6229_v36  ;;  %v3352_v40 = vmul.f32 3.0, %v5217_v6  ;;  %v3245_v10 = vadd.f32 %v5217_v6, %v3242_v33 }
0x13b1   :  { %4920 = vmatmul.mubr.msk.f32.vlgmr.msra.gmra.mxu1 %vm86_vm1, %v3250_v38  ;;  %v3248_v39 = vmul.f32 0.1, %v3245_v10  ;;  %v3355_v23 = vadd.f32 %v3352_v40, %v3349_v49 }
0x13b2   :  { %v5219_v58 = vpop.eup %5218  ;;  %4922 = vmatprep.mubr.msk.f32.mxu1 %vm5288_vm0, %v5287_v2  ;;  %4946 = vmatpush3.msra.mxu1 %v6199_v35 }
0x13b3   :  { %v3353_v59 = vmul.f32 3.0, %v5219_v58  ;;  %v3251_v26 = vadd.f32 %v3248_v39, %v6240_v41  ;;  %v3246_v46 = vadd.f32 %v5219_v58, %v3243_v13  ;;  %4947 = vmatprep.subr.mxu1 %v5287_v2 }
0x13b4   :  { %4948 = vmatpush3.msra.mxu1 %v6140_v45 }
0x13b5   :  { %4923 = vmatmul.mubr.msk.f32.gmra.mxu1 %vm86_vm1, %v3251_v26  ;;  %v3249_v29 = vmul.f32 0.1, %v3246_v46  ;;  %v3356_v11 = vadd.f32 %v3353_v59, %v3350_v37  ;;  %4949 = vmatprep.subr.mxu1 %v5287_v2 }
0x13b6   :  { %4925 = vmatprep.mubr.msk.f32.mxu1 %vm5288_vm0, %v5287_v2  ;;  %4950 = vmatpush3.msra.mxu1 %v6213_v15 }
0x13b7   :  { %v3252_v3 = vadd.f32 %v3249_v29, %v6255_v60  ;;  %4951 = vmatprep.subr.mxu1 %v5287_v2 }
0x13b8   :  { %4952 = vmatpush3.msra.mxu1 %v6221_v17 }
0x13b9   :  { %4926 = vmatmul.mubr.msk.f32.gmra.mxu1 %vm86_vm1, %v3252_v3  ;;  %4979 = vmatprep.subr.mxu1 %v5287_v2 }
0x13ba   :  { %4953 = vmatprep.mubr.msk.f32.mxu1 %vm5288_vm0, %v5287_v2 }
0x1471   :  { %v3328_v18 = vpop.f32.mrf.mxu1 }
0x1472   :  { %5220 = vtanh.f32 %v3328_v18 }
0x1473   :  { %v4921_v20 = vpop.f32.mrf.mxu1 }
0x1475   :  { %v3333_v12 = vpop.f32.mrf.mxu1 }
0x1476   :  { %5222 = vtanh.f32 %v3333_v12 }
0x1477   :  { %v4924_v16 = vpop.f32.mrf.mxu1 }
0x1479   :  { %v3338_v21 = vpop.f32.mrf.mxu1 }
0x147a   :  { %5224 = vtanh.f32 %v3338_v21 }
0x147b   :  { %v4927_v47 = vpop.f32.mrf.mxu1 }
0x147f   :  { %v5221_v8 = vpop.eup %5220 }
0x1480   :  { %v3357_v50 = vadd.f32 %v5221_v8, %v3354_v34 }
0x1482   :  { %v3360_v51 = vmul.f32 0.1, %v3357_v50 }
0x1483   :  { %v5223_v44 = vpop.eup %5222 }
0x1484   :  { %v3363_v53 = vmul.f32 0.125, %v3360_v51  ;;  %v3358_v54 = vadd.f32 %v5223_v44, %v3355_v23 }
0x1486   :  { %v3361_v55 = vmul.f32 0.1, %v3358_v54  ;;  %v6394_v57 = vadd.f32 %v3363_v53, %v6229_v36 }
0x1487   :  { %v5225_v4 = vpop.eup %5224 }
0x1488   :  { %v3364_v43 = vmul.f32 0.125, %v3361_v55  ;;  %v3359_v48 = vadd.f32 %v5225_v4, %v3356_v11  ;;  %4937 = vmatmul.mubr.msk.f32.vlgmr.msra.gmra.mxu0 %vm86_vm1, %v6394_v57  ;;  %4954 = vmatmul.mubr.msk.f32.vlgmr.msra.gmra.mxu1 %vm86_vm1, %v6394_v57 }
0x1489   :  { %4939 = vmatprep.mubr.msk.f32.mxu0 %vm5288_vm0, %v5287_v2  ;;  %4956 = vmatprep.mubr.msk.f32.mxu1 %vm5288_vm0, %v5287_v2 }
0x148a   :  { %v3362_v32 = vmul.f32 0.1, %v3359_v48  ;;  %v6405_v1 = vadd.f32 %v3364_v43, %v6240_v41  ;;  %4963 = vmatpush3.msra.mxu0 %v6199_v35  ;;  %4980 = vmatpush3.msra.mxu1 %v6199_v35 }
0x148b   :  { %4964 = vmatprep.subr.mxu0 %v5287_v2  ;;  %4981 = vmatprep.subr.mxu1 %v5287_v2 }
0x148c   :  { %v3365_v36 = vmul.f32 0.125, %v3362_v32  ;;  %4940 = vmatmul.mubr.msk.f32.gmra.mxu0 %vm86_vm1, %v6405_v1  ;;  %4957 = vmatmul.mubr.msk.f32.gmra.mxu1 %vm86_vm1, %v6405_v1 }
0x148d   :  { %4942 = vmatprep.mubr.msk.f32.mxu0 %vm5288_vm0, %v5287_v2  ;;  %4959 = vmatprep.mubr.msk.f32.mxu1 %vm5288_vm0, %v5287_v2 }
0x148e   :  { %v6420_v41 = vadd.f32 %v3365_v36, %v6255_v60  ;;  %4965 = vmatpush3.msra.mxu0 %v6140_v45  ;;  %4982 = vmatpush3.msra.mxu1 %v6140_v45 }
0x148f   :  { %4966 = vmatprep.subr.mxu0 %v5287_v2  ;;  %4983 = vmatprep.subr.mxu1 %v5287_v2 }
0x1490   :  { %4943 = vmatmul.mubr.msk.f32.gmra.mxu0 %vm86_vm1, %v6420_v41  ;;  %4960 = vmatmul.mubr.msk.f32.gmra.mxu1 %vm86_vm1, %v6420_v41 }
0x1491   :  { %4967 = vmatpush3.msra.mxu0 %v6213_v15  ;;  %4970 = vmatprep.mubr.msk.f32.mxu0 %vm5288_vm0, %v5287_v2 }
0x1492   :  { %4968 = vmatprep.subr.mxu0 %v5287_v2  ;;  %4984 = vmatpush3.msra.mxu1 %v6213_v15 }
0x1493   :  { %4969 = vmatpush3.msra.mxu0 %v6221_v17  ;;  %4985 = vmatprep.subr.mxu1 %v5287_v2 }
0x1494   :  { %4986 = vmatpush3.msra.mxu1 %v6221_v17  ;;  %4987 = vmatprep.mubr.msk.f32.mxu1 %vm5288_vm0, %v5287_v2 }
0x1495   :  { %4996 = vmatprep.subr.mxu0 %v5287_v2  ;;  %5013 = vmatprep.subr.mxu1 %v5287_v2 }
0x1548   :  { %v3444_v60 = vpop.f32.mrf.mxu0  ;;  %v3564_v14 = vpop.f32.mrf.mxu1 }
0x1549   :  { %v3445_v19 = vadd.f32 %v6445_v42, %v3444_v60  ;;  %5226 = vtanh.f32 %v3564_v14 }
0x154a   :  { %v4938_v52 = vpop.f32.mrf.mxu0  ;;  %v4955_v0 = vpop.f32.mrf.mxu1 }
0x154b   :  { %v3458_v25 = vmax.f32 %v3445_v19, 0.0 }
0x154c   :  { %v3449_v7 = vpop.f32.mrf.mxu0  ;;  %v3569_v56 = vpop.f32.mrf.mxu1 }
0x154d   :  { %v3450_v27 = vadd.f32 %v6445_v42, %v3449_v7  ;;  %5228 = vtanh.f32 %v3569_v56  ;;  %v3461_v9 = vmul.f32 %v6452_v28, %v3458_v25 }
0x154e   :  { %v4941_v30 = vpop.f32.mrf.mxu0  ;;  %v4958_v31 = vpop.f32.mrf.mxu1 }
0x154f   :  { %v3459_v33 = vmax.f32 %v3450_v27, 0.0  ;;  %v3464_v34 = vsel %vm188_vm2, %v3461_v9, 0.0 }
0x1550   :  { %v3574_v6 = vpop.f32.mrf.mxu1  ;;  %3465 = vadd.xlane.f32.xlu1 %v3464_v34  ;;  %v6456_v49 = vpop.f32.mrf.mxu0 }
0x1551   :  { %5230 = vtanh.f32 %v3574_v6  ;;  %v3462_v38 = vmul.f32 %v6452_v28, %v3459_v33 }
0x1552   :  { %v4944_v40 = vpop.f32.mrf.mxu0  ;;  %v4961_v10 = vpop.f32.mrf.mxu1 }
0x1553   :  { %v3467_v24 = vsel %vm188_vm2, %v3462_v38, 0.0 }
0x1554   :  { %3468 = vadd.xlane.f32.xlu0 %v3467_v24 }
0x1556   :  { %v6460_v39 = vpop.eup %5226 }
0x1557   :  { %v3581_v13 = vmul.f32 0.1, %v6460_v39  ;;  %v3682_v21 = vmul.f32 0.33333334, %v6460_v39 }
0x1559   :  { %v3584_v23 = vmul.f32 0.33333334, %v3581_v13 }
0x155a   :  { %v6463_v58 = vpop.eup %5228 }
0x155b   :  { %v3587_v59 = vadd.f32 %v3584_v23, %v6394_v57  ;;  %v3582_v26 = vmul.f32 0.1, %v6463_v58 }
0x155d   :  { %4971 = vmatmul.mubr.msk.f32.vlgmr.msra.gmra.mxu0 %vm86_vm1, %v3587_v59  ;;  %v3585_v46 = vmul.f32 0.33333334, %v3582_v26 }
0x155e   :  { %v6468_v37 = vpop.eup %5230  ;;  %4973 = vmatprep.mubr.msk.f32.mxu0 %vm5288_vm0, %v5287_v2  ;;  %4997 = vmatpush3.msra.mxu0 %v6199_v35 }
0x155f   :  { %v3588_v29 = vadd.f32 %v3585_v46, %v6405_v1  ;;  %v3583_v11 = vmul.f32 0.1, %v6468_v37  ;;  %4998 = vmatprep.subr.mxu0 %v5287_v2  ;;  %v3684_v55 = vmul.f32 0.33333334, %v6468_v37 }
0x1560   :  { %4999 = vmatpush3.msra.mxu0 %v6140_v45 }
0x1561   :  { %4974 = vmatmul.mubr.msk.f32.gmra.mxu0 %vm86_vm1, %v3588_v29  ;;  %v3586_v3 = vmul.f32 0.33333334, %v3583_v11  ;;  %5000 = vmatprep.subr.mxu0 %v5287_v2 }
0x1562   :  { %4976 = vmatprep.mubr.msk.f32.mxu0 %vm5288_vm0, %v5287_v2  ;;  %5001 = vmatpush3.msra.mxu0 %v6213_v15 }
0x1563   :  { %v3589_v35 = vadd.f32 %v3586_v3, %v6420_v41  ;;  %5002 = vmatprep.subr.mxu0 %v5287_v2 }
0x1564   :  { %5003 = vmatpush3.msra.mxu0 %v6221_v17  ;;  %v3683_v17 = vmul.f32 0.33333334, %v6463_v58 }
0x1565   :  { %4977 = vmatmul.mubr.msk.f32.gmra.mxu0 %vm86_vm1, %v3589_v35 }
0x1566   :  { %5004 = vmatprep.mubr.msk.f32.mxu0 %vm5288_vm0, %v5287_v2 }
0x161d   :  { %v3665_v45 = vpop.f32.mrf.mxu0 }
0x161e   :  { %5232 = vtanh.f32 %v3665_v45 }
0x161f   :  { %v4972_v18 = vpop.f32.mrf.mxu0 }
0x1621   :  { %v3670_v20 = vpop.f32.mrf.mxu0 }
0x1622   :  { %5234 = vtanh.f32 %v3670_v20 }
0x1623   :  { %v4975_v12 = vpop.f32.mrf.mxu0 }
0x1625   :  { %v3675_v16 = vpop.f32.mrf.mxu0 }
0x1626   :  { %5236 = vtanh.f32 %v3675_v16 }
0x1627   :  { %v4978_v15 = vpop.f32.mrf.mxu0 }
0x162b   :  { %v5233_v47 = vpop.eup %5232 }
0x162c   :  { %v3685_v8 = vsub.f32 %v5233_v47, %v3682_v21  ;;  %v3890_v52 = vmul.f32 3.0, %v5233_v47  ;;  %v3786_v0 = vsub.f32 %v6460_v39, %v5233_v47 }
0x162e   :  { %v3688_v50 = vmul.f32 0.1, %v3685_v8  ;;  %v3893_v27 = vadd.f32 %v6460_v39, %v3890_v52 }
0x162f   :  { %v5235_v51 = vpop.eup %5234 }
0x1630   :  { %v3691_v44 = vadd.f32 %v3688_v50, %v6394_v57  ;;  %v3686_v53 = vsub.f32 %v5235_v51, %v3683_v17  ;;  %v3891_v7 = vmul.f32 3.0, %v5235_v51  ;;  %v3787_v30 = vsub.f32 %v6463_v58, %v5235_v51 }
0x1632   :  { %4988 = vmatmul.mubr.msk.f32.vlgmr.msra.gmra.mxu1 %vm86_vm1, %v3691_v44  ;;  %v3689_v54 = vmul.f32 0.1, %v3686_v53  ;;  %v3894_v34 = vadd.f32 %v6463_v58, %v3891_v7 }
0x1633   :  { %v5237_v4 = vpop.eup %5236  ;;  %4990 = vmatprep.mubr.msk.f32.mxu1 %vm5288_vm0, %v5287_v2  ;;  %5014 = vmatpush3.msra.mxu1 %v6334_v5 }
0x1634   :  { %v3692_v43 = vadd.f32 %v3689_v54, %v6405_v1  ;;  %v3687_v48 = vsub.f32 %v5237_v4, %v3684_v55  ;;  %5015 = vmatprep.subr.mxu1 %v5287_v2  ;;  %v3892_v10 = vmul.f32 3.0, %v5237_v4  ;;  %v3788_v13 = vsub.f32 %v6468_v37, %v5237_v4 }
0x1635   :  { %5016 = vmatpush3.msra.mxu1 %v6342_v61 }
0x1636   :  { %4991 = vmatmul.mubr.msk.f32.gmra.mxu1 %vm86_vm1, %v3692_v43  ;;  %v3690_v32 = vmul.f32 0.1, %v3687_v48  ;;  %5017 = vmatprep.subr.mxu1 %v5287_v2  ;;  %v3895_v58 = vadd.f32 %v6468_v37, %v3892_v10  ;;  %v3455_v48 = vadd.f32 %v6445_v42, %v6456_v49 }
0x1637   :  { %4993 = vmatprep.mubr.msk.f32.mxu1 %vm5288_vm0, %v5287_v2  ;;  %5018 = vmatpush3.msra.mxu1 %v6352_v63 }
0x1638   :  { %v3693_v36 = vadd.f32 %v3690_v32, %v6420_v41  ;;  %5019 = vmatprep.subr.mxu1 %v5287_v2 }
0x1639   :  { %5020 = vmatpush3.msra.mxu1 %v6360_v22 }
0x163a   :  { %4994 = vmatmul.mubr.msk.f32.gmra.mxu1 %vm86_vm1, %v3693_v36 }
0x163b   :  { %5021 = vmatprep.mubr.msk.f32.mxu1 %vm5288_vm0, %v5287_v2 }
0x16f2   :  { %v3769_v5 = vpop.f32.mrf.mxu1 }
0x16f3   :  { %5238 = vtanh.f32 %v3769_v5 }
0x16f4   :  { %v4989_v61 = vpop.f32.mrf.mxu1 }
0x16f5   :  { %v3460_v61 = vmax.f32 %v3455_v48, 0.0 }
0x16f6   :  { %v3774_v60 = vpop.f32.mrf.mxu1 }
0x16f7   :  { %5240 = vtanh.f32 %v3774_v60  ;;  %v3463_v52 = vmul.f32 %v6452_v28, %v3460_v61 }
0x16f8   :  { %v4992_v14 = vpop.f32.mrf.mxu1 }
0x16fa   :  { %v3779_v19 = vpop.f32.mrf.mxu1 }
0x16fb   :  { %5242 = vtanh.f32 %v3779_v19 }
0x16fc   :  { %v4995_v63 = vpop.f32.mrf.mxu1 }
0x1700   :  { %v5239_v25 = vpop.eup %5238 }
0x1701   :  { %v3789_v22 = vadd.f32 %v5239_v25, %v3786_v0  ;;  %v3896_v56 = vmul.f32 3.0, %v5239_v25 }
0x1703   :  { %v3792_v9 = vmul.f32 0.1, %v3789_v22  ;;  %v3899_v31 = vadd.f32 %v3896_v56, %v3893_v27  ;;  %v3470_v56 = vsel %vm188_vm2, %v3463_v52, 0.0 }
0x1704   :  { %v5241_v33 = vpop.eup %5240 }
0x1705   :  { %v3795_v6 = vadd.f32 %v3792_v9, %v6394_v57  ;;  %v3790_v38 = vadd.f32 %v5241_v33, %v3787_v30  ;;  %v3897_v40 = vmul.f32 3.0, %v5241_v33  ;;  %v3469_v33 = vpop.xlane.xlu0 %3468 }
0x1707   :  { %5005 = vmatmul.mubr.msk.f32.vlgmr.msra.gmra.mxu0 %vm86_vm1, %v3795_v6  ;;  %v3793_v24 = vmul.f32 0.1, %v3790_v38  ;;  %v3900_v23 = vadd.f32 %v3897_v40, %v3894_v34 }
0x1708   :  { %v5243_v59 = vpop.eup %5242  ;;  %5007 = vmatprep.mubr.msk.f32.mxu0 %vm5288_vm0, %v5287_v2 }
0x1709   :  { %v3796_v39 = vadd.f32 %v3793_v24, %v6405_v1  ;;  %v3791_v26 = vadd.f32 %v5243_v59, %v3788_v13  ;;  %v3898_v46 = vmul.f32 3.0, %v5243_v59 }
0x170b   :  { %5008 = vmatmul.mubr.msk.f32.gmra.mxu0 %vm86_vm1, %v3796_v39  ;;  %v3794_v29 = vmul.f32 0.1, %v3791_v26  ;;  %v3901_v11 = vadd.f32 %v3898_v46, %v3895_v58 }
0x170c   :  { %5010 = vmatprep.mubr.msk.f32.mxu0 %vm5288_vm0, %v5287_v2 }
0x170d   :  { %v3797_v3 = vadd.f32 %v3794_v29, %v6420_v41 }
0x170f   :  { %5011 = vmatmul.mubr.msk.f32.gmra.mxu0 %vm86_vm1, %v3797_v3 }
0x17c7   :  { %v3873_v35 = vpop.f32.mrf.mxu0 }
0x17c8   :  { %5244 = vtanh.f32 %v3873_v35 }
0x17c9   :  { %v5006_v45 = vpop.f32.mrf.mxu0 }
0x17cb   :  { %v3878_v18 = vpop.f32.mrf.mxu0 }
0x17cc   :  { %5246 = vtanh.f32 %v3878_v18 }
0x17cd   :  { %v5009_v20 = vpop.f32.mrf.mxu0 }
0x17cf   :  { %v3883_v12 = vpop.f32.mrf.mxu0 }
0x17d0   :  { %5248 = vtanh.f32 %v3883_v12 }
0x17d1   :  { %v5012_v37 = vpop.f32.mrf.mxu0 }
0x17d5   :  { %v5245_v16 = vpop.eup %5244 }
0x17d6   :  { %v3902_v15 = vadd.f32 %v5245_v16, %v3899_v31  ;;  %v3466_v31 = vpop.xlane.xlu1 %3465 }
0x17d7   :  { %v3473_v6 = vadd.f32 %v3466_v31, %v5518_v62 }
0x17d8   :  { %v3905_v21 = vmul.f32 0.1, %v3902_v15 }
0x17d9   :  { %v5247_v47 = vpop.eup %5246 }
0x17da   :  { %v3908_v8 = vmul.f32 0.125, %v3905_v21  ;;  %v3903_v50 = vadd.f32 %v5247_v47, %v3900_v23 }
0x17dc   :  { %v3911_v17 = vadd.f32 %v3908_v8, %v6394_v57  ;;  %v3906_v51 = vmul.f32 0.1, %v3903_v50 }
0x17dd   :  { %v5249_v44 = vpop.eup %5248 }
0x17de   :  { %5022 = vmatmul.mubr.msk.f32.vlgmr.msra.gmra.mxu1 %vm86_vm1, %v3911_v17  ;;  %v3909_v53 = vmul.f32 0.125, %v3906_v51  ;;  %v3904_v54 = vadd.f32 %v5249_v44, %v3901_v11 }
0x17df   :  { %5024 = vmatprep.mubr.msk.f32.mxu1 %vm5288_vm0, %v5287_v2 }
0x17e0   :  { %v3912_v55 = vadd.f32 %v3909_v53, %v6405_v1  ;;  %v3907_v4 = vmul.f32 0.1, %v3904_v54 }
0x17e2   :  { %5025 = vmatmul.mubr.msk.f32.gmra.mxu1 %vm86_vm1, %v3912_v55  ;;  %v3910_v43 = vmul.f32 0.125, %v3907_v4 }
0x17e3   :  { %5027 = vmatprep.mubr.msk.f32.mxu1 %vm5288_vm0, %v5287_v2 }
0x17e4   :  { %v3913_v57 = vadd.f32 %v3910_v43, %v6420_v41 }
0x17e6   :  { %5028 = vmatmul.mubr.msk.f32.gmra.mxu1 %vm86_vm1, %v3913_v57 }
0x189e   :  { %v3989_v32 = vpop.f32.mrf.mxu1 }
0x189f   :  { %v3990_v36 = vadd.f32 %v6445_v42, %v3989_v32 }
0x18a0   :  { %v5023_v5 = vpop.f32.mrf.mxu1 }
0x18a1   :  { %v4003_v1 = vmax.f32 %v3990_v36, 0.0 }
0x18a2   :  { %v3994_v60 = vpop.f32.mrf.mxu1 }
0x18a3   :  { %v3995_v14 = vadd.f32 %v6445_v42, %v3994_v60  ;;  %v4006_v19 = vmul.f32 %v6452_v28, %v4003_v1 }
0x18a4   :  { %v5026_v63 = vpop.f32.mrf.mxu1 }
0x18a5   :  { %v4004_v2 = vmax.f32 %v3995_v14, 0.0  ;;  %v4009_v41 = vsel %vm188_vm2, %v4006_v19, 0.0 }
0x18a6   :  { %4010 = vadd.xlane.f32.xlu1 %v4009_v41  ;;  %v3999_v0 = vpop.f32.mrf.mxu1 }
0x18a7   :  { %v4000_v49 = vadd.f32 %v6445_v42, %v3999_v0  ;;  %v4007_v25 = vmul.f32 %v6452_v28, %v4004_v2  ;;  %v3474_v42 = vadd.f32 %v3469_v33, %v5518_v62 }
0x18a8   :  { %v5029_v7 = vpop.f32.mrf.mxu1 }
0x18a9   :  { %v4005_v22 = vmax.f32 %v4000_v49, 0.0  ;;  %v4012_v27 = vsel %vm188_vm2, %v4007_v25, 0.0  ;;  %v3476_v10 = vmax.f32 %v3473_v6, %v3474_v42 }
0x18aa   :  { %3471 = vadd.xlane.f32.xlu1 %v3470_v56  ;;  %4013 = vadd.xlane.f32.xlu0 %v4012_v27 }
0x18ab   :  { %v4008_v9 = vmul.f32 %v6452_v28, %v4005_v22 }
0x18ad   :  { %v4015_v30 = vsel %vm188_vm2, %v4008_v9, 0.0 }
0x18ae   :  { %4016 = vadd.xlane.f32.xlu0 %v4015_v30 }
0x192f   :  { %v4011_v34 = vpop.xlane.xlu1 %4010 }
0x1930   :  { %v4018_v23 = vadd.f32 %v4011_v34, %v5518_v62 }
0x1933   :  { %v3472_v38 = vpop.xlane.xlu1 %3471  ;;  %v4014_v40 = vpop.xlane.xlu0 %4013 }
0x1934   :  { %v3475_v24 = vadd.f32 %v3472_v38, %v5518_v62  ;;  %v4019_v13 = vadd.f32 %v4014_v40, %v5518_v62 }
0x1936   :  { %v3477_v28 = vmax.f32 %v3476_v10, %v3475_v24  ;;  %v4021_v59 = vmax.f32 %v4018_v23, %v4019_v13 }
0x1937   :  { %v4017_v39 = vpop.xlane.xlu0 %4016 }
0x1938   :  { %v3478_v26 = vsub.f32 %v3473_v6, %v3477_v28  ;;  %v3481_v58 = vsub.f32 %v3474_v42, %v3477_v28  ;;  %v3484_v46 = vsub.f32 %v3475_v24, %v3477_v28  ;;  %v4020_v29 = vadd.f32 %v4017_v39, %v5518_v62 }
0x193a   :  { %v3479_v11 = vmul.f32 1.442695, %v3478_v26  ;;  %v3482_v3 = vmul.f32 1.442695, %v3481_v58  ;;  %v4022_v35 = vmax.f32 %v4021_v59, %v4020_v29  ;;  %v3485_v45 = vmul.f32 1.442695, %v3484_v46 }
0x193c   :  { %5250 = vpow2.f32 %v3479_v11  ;;  %v4023_v18 = vsub.f32 %v4018_v23, %v4022_v35  ;;  %v4026_v20 = vsub.f32 %v4019_v13, %v4022_v35  ;;  %v4029_v12 = vsub.f32 %v4020_v29, %v4022_v35 }
0x193d   :  { %5252 = vpow2.f32 %v3482_v3 }
0x193e   :  { %v4024_v37 = vmul.f32 1.442695, %v4023_v18  ;;  %v4027_v16 = vmul.f32 1.442695, %v4026_v20  ;;  %5254 = vpow2.f32 %v3485_v45  ;;  %v4030_v15 = vmul.f32 1.442695, %v4029_v12 }
0x1940   :  { %5256 = vpow2.f32 %v4024_v37 }
0x1941   :  { %5258 = vpow2.f32 %v4027_v16 }
0x1942   :  { %5260 = vpow2.f32 %v4030_v15 }
0x1949   :  { %v5251_v21 = vpop.eup %5250 }
0x194a   :  { %v5253_v47 = vpop.eup %5252 }
0x194b   :  { %v3487_v8 = vadd.f32 %v5253_v47, %v5251_v21  ;;  %v5255_v62 = vpop.eup %5254 }
0x194d   :  { %v5257_v50 = vpop.eup %5256  ;;  %v3488_v17 = vadd.f32 %v5255_v62, %v3487_v8 }
0x194e   :  { %v5259_v51 = vpop.eup %5258 }
0x194f   :  { %5262 = vrcp.f32 %v3488_v17  ;;  %v4032_v44 = vadd.f32 %v5259_v51, %v5257_v50  ;;  %v5261_v53 = vpop.eup %5260 }
0x1951   :  { %v4033_v54 = vadd.f32 %v5261_v53, %v4032_v44 }
0x1953   :  { %5264 = vrcp.f32 %v4033_v54 }
0x195c   :  { %v5263_v55 = vpop.eup %5262 }
0x195d   :  { %v3491_v4 = vmul.f32 %v5263_v55, %v5251_v21  ;;  %v3492_v43 = vmul.f32 %v5263_v55, %v5253_v47  ;;  %v3493_v57 = vmul.f32 %v5263_v55, %v5255_v62 }
0x195f   :  { %v3494_v48 = vsel %vm220_vm3, %v3491_v4, %v3492_v43 }
0x1960   :  { %v5265_v32 = vpop.eup %5264  ;;  %v3495_v36 = vsel %vm222_vm4, %v3494_v48, %v3493_v57 }
0x1961   :  { %4149 = vst.msk [vmem:[%s6577_s10 + $0x30] sm:$0xff] %vm224_vm5, %v3495_v36  ;;  %v4036_v5 = vmul.f32 %v5265_v32, %v5257_v50  ;;  %v4037_v61 = vmul.f32 %v5265_v32, %v5259_v51  ;;  %v4038_v1 = vmul.f32 %v5265_v32, %v5261_v53 }
0x1963   :  { %v4039_v60 = vsel %vm220_vm3, %v4036_v5, %v4037_v61 }
0x1964   :  { %v4040_v14 = vsel %vm222_vm4, %v4039_v60, %v4038_v1 }
0x1965   :  { %4165 = vst.msk [vmem:[%s6577_s10 + $0x38] sm:$0xff] %vm224_vm5, %v4040_v14 }

</bundles_post_ra>
